<compile_context>
chip_gen: v6e
topology: v6e:2x2x1
jax: 0.10.0
libtpu: 0.0.40
codegen_flags: <defaults>
</compile_context>

<pallas_src>
import jax
import jax.numpy as jnp
from jax.experimental import pallas as pl
from jax.experimental.pallas import tpu as pltpu

EPS = 1e-5        # nn.InstanceNorm2d default eps
_W_OFF = 8        # sublane-aligned column offset of the conv interior in halo scratch


def _instance_norm_relu(y, n, p, c, eps):
    """Per-sample, per-channel InstanceNorm (biased var, affine=False) + ReLU.

    y: (n*p, c) f32, samples in contiguous row blocks of p rows.
    Single reduction pass (sum and sum-of-squares)."""
    y3 = y.reshape(n, p, c)
    s1 = jnp.sum(y3, axis=1, keepdims=True)
    s2 = jnp.sum(y3 * y3, axis=1, keepdims=True)
    mean = s1 * (1.0 / p)
    var = jnp.maximum(s2 * (1.0 / p) - mean * mean, 0.0)
    yn = (y3 - mean) * jax.lax.rsqrt(var + eps)
    return jnp.maximum(yn, 0.0)                      # (n, p, c)


def _make_down_block_kernel(n, ho, wo, c0, c2, eps):
    p = ho * wo

    def stride1_conv(pad_ref, w_ref, cin, cout):
        """3x3 / stride-1 / pad-1 conv read from a zero-haloed VMEM scratch.

        pad_ref: (n, ho+2, _W_OFF + wo + 8, cin); interior at rows 1..ho,
                 cols _W_OFF .. _W_OFF+wo-1; everything else is zero.
        Returns (n*p, cout) f32 accumulated over the 9 taps on the MXU."""
        acc = jnp.zeros((n * p, cout), jnp.float32)
        for dy in range(3):
            # One aligned full-width row-window load, shared by the 3 dx taps.
            row = pad_ref[:, dy:dy + ho, :, :]                   # (n, ho, pad_w, cin)
            for dx in range(3):
                off = _W_OFF - 1 + dx                            # 7, 8, 9
                t = row[:, :, off:off + wo, :]                   # value slice (XLU shift)
                acc = acc + jnp.dot(t.reshape(n * p, cin), w_ref[dy, dx],
                                    preferred_element_type=jnp.float32)
        return acc

    def kernel(xpar_ref, w0_ref, b0_ref, w1_ref, w2_ref, o_ref, pad1_ref, pad2_ref):
        # ---------------- Stage 1: Conv2d(c0->c0, k=3, s=2, p=1) + bias ----------------
        # xpar_ref: (4*n, ho+1, wo+1, c0) = parity decomposition of the zero-padded
        # input; tap (dy, dx) of the strided conv is a contiguous slice of parity
        # sub-image q = (dy % 2) * 2 + (dx % 2).  Bias folded into the accumulator.
        acc1 = jnp.broadcast_to(b0_ref[...], (n * p, c0))
        for dy in range(3):
            for dx in range(3):
                q = (dy % 2) * 2 + (dx % 2)
                slab = xpar_ref[q * n:(q + 1) * n, dy // 2:dy // 2 + ho, :, :]
                t = slab[:, :, dx // 2:dx // 2 + wo, :]          # (n, ho, wo, c0)
                acc1 = acc1 + jnp.dot(t.reshape(n * p, c0), w0_ref[dy, dx],
                                      preferred_element_type=jnp.float32)

        # Stash stage-1 output in a zero-haloed VMEM scratch (halo for conv2);
        # interior store is sublane-aligned (column offset _W_OFF, width wo%8==0).
        pad1_ref[...] = jnp.zeros_like(pad1_ref)
        pad1_ref[:, 1:ho + 1, _W_OFF:_W_OFF + wo, :] = acc1.reshape(n, ho, wo, c0)

        # ------------- Stage 2: Conv(c0->c2, k3, s1, p1) -> InstanceNorm -> ReLU -------------
        y2 = _instance_norm_relu(stride1_conv(pad1_ref, w1_ref, c0, c2), n, p, c2, eps)

        pad2_ref[...] = jnp.zeros_like(pad2_ref)
        pad2_ref[:, 1:ho + 1, _W_OFF:_W_OFF + wo, :] = y2.reshape(n, ho, wo, c2)

        # ------------- Stage 3: Conv(c2->c2, k3, s1, p1) -> InstanceNorm -> ReLU -------------
        y3 = _instance_norm_relu(stride1_conv(pad2_ref, w2_ref, c2, c2), n, p, c2, eps)

        # (n, p, c2).  TODO(synk): a fully lane-dense (c2, n*p) store would need an
        # in-kernel (n*p, c2) -> (c2, n*p) transpose; at c2=8 the 4 KB masked store
        # is negligible, so the natural channels-last layout is kept.
        o_ref[...] = y3.astype(o_ref.dtype)

    return kernel


def _down_block_pallas(x_nhwc, w0, b0, w1, w2):
    """Fused DownBlock forward on NHWC input; returns NHWC output."""
    n, h, w, c0 = x_nhwc.shape
    c2 = w2.shape[-1]
    ho, wo = (h + 2 - 3) // 2 + 1, (w + 2 - 3) // 2 + 1      # stride-2, k=3, p=1
    p = ho * wo

    if (h % 2) or (w % 2) or (wo % 8):
        # TODO(synk): for odd / non-sublane-aligned spatial sizes, tile P with running
        # instance-norm statistics in scratch (finalize on the last tile) instead of
        # the single-slab design.
        raise NotImplementedError("demo kernel assumes even H, W and (W//2) % 8 == 0")

    # Parity decomposition of the zero-padded input: pure rearrangement (no 9x
    # im2col inflation); the stride-2 taps become contiguous slices in-kernel.
    xp = jnp.pad(x_nhwc, ((0, 0), (1, 1), (1, 1), (0, 0)))
    xpar = jnp.concatenate(
        [xp[:, py::2, px::2, :] for py in (0, 1) for px in (0, 1)], axis=0)
    # xpar: (4*n, ho+1, wo+1, c0), sub-image q = 2*row_parity + col_parity

    b0_2d = b0.reshape(1, c0).astype(jnp.float32)

    kernel = _make_down_block_kernel(n, ho, wo, c0, c2, EPS)
    idx4 = lambda i: (0, 0, 0, 0)
    pad_w = _W_OFF + wo + 8                    # halo-scratch width (multiple of 8)

    out = pl.pallas_call(
        kernel,
        out_shape=jax.ShapeDtypeStruct((n, p, c2), jnp.float32),
        grid_spec=pltpu.PrefetchScalarGridSpec(
            num_scalar_prefetch=0,
            grid=(1,),                       # whole batch fused in one step: all
            in_specs=[                       # matmuls are (n*p=128, K) x (K, Cout)
                pl.BlockSpec(xpar.shape, idx4),
                pl.BlockSpec(w0.shape, idx4),
                pl.BlockSpec(b0_2d.shape, lambda i: (0, 0)),
                pl.BlockSpec(w1.shape, idx4),
                pl.BlockSpec(w2.shape, idx4),
            ],
            out_specs=pl.BlockSpec((n, p, c2), lambda i: (0, 0, 0)),
            scratch_shapes=[
                pltpu.VMEM((n, ho + 2, pad_w, c0), jnp.float32),
                pltpu.VMEM((n, ho + 2, pad_w, c2), jnp.float32),
            ],
        ),
        compiler_params=pltpu.CompilerParams(
            dimension_semantics=("parallel",),
        ),
    )(xpar, w0, b0_2d, w1, w2)
    return out.reshape(n, ho, wo, c2)


def init_down_block_params(key, in_channels, out_channels):
    """Deterministic synthetic parameters (shapes from DownBlock.__init__), HWIO."""
    k0, k1, k2, kb = jax.random.split(key, 4)
    scale = 0.1
    return {
        # Conv2d(in, in, 3, stride=2, padding=1, bias=True)
        'w0': scale * jax.random.normal(k0, (3, 3, in_channels, in_channels), jnp.float32),
        'b0': scale * jax.random.normal(kb, (in_channels,), jnp.float32),
        # ConvBlock conv1: Conv2d(in, out, 3, 1, 1, bias=False)  (instance norm -> no bias)
        'w1': scale * jax.random.normal(k1, (3, 3, in_channels, out_channels), jnp.float32),
        # ConvBlock conv2: Conv2d(out, out, 3, 1, 1, bias=False)
        'w2': scale * jax.random.normal(k2, (3, 3, out_channels, out_channels), jnp.float32),
    }


@jax.jit
def down_block_forward(params, x_nchw):
    """DownBlock forward. Input/Output are NCHW to match PyTorch semantics."""
    x = jnp.transpose(x_nchw, (0, 2, 3, 1))              # NCHW -> NHWC
    y = _down_block_pallas(x, params['w0'], params['b0'], params['w1'], params['w2'])
    return jnp.transpose(y, (0, 3, 1, 2))                # NHWC -> NCHW


# ---------------- pure-JAX reference (for correctness check) ----------------
def _conv_ref(x_nhwc, w_hwio, b, stride):
    y = jax.lax.conv_general_dilated(
        x_nhwc, w_hwio, (stride, stride), ((1, 1), (1, 1)),
        dimension_numbers=('NHWC', 'HWIO', 'NHWC'))
    if b is not None:
        y = y + b.reshape(1, 1, 1, -1)
    return y


def _inorm_ref(x_nhwc):
    m = jnp.mean(x_nhwc, axis=(1, 2), keepdims=True)
    v = jnp.mean((x_nhwc - m) ** 2, axis=(1, 2), keepdims=True)
    return (x_nhwc - m) * jax.lax.rsqrt(v + EPS)


def down_block_ref(params, x_nchw):
    x = jnp.transpose(x_nchw, (0, 2, 3, 1))
    y = _conv_ref(x, params['w0'], params['b0'], 2)
    y = jnp.maximum(_inorm_ref(_conv_ref(y, params['w1'], None, 1)), 0.0)
    y = jnp.maximum(_inorm_ref(_conv_ref(y, params['w2'], None, 1)), 0.0)
    return jnp.transpose(y, (0, 3, 1, 2))


if __name__ == "__main__":
    key = jax.random.PRNGKey(0)
    kx, kp = jax.random.split(key)

    N, Cin, Cout, H, W = 2, 4, 8, 16, 16
    x = jax.random.normal(kx, (N, Cin, H, W), jnp.float32)   # NCHW, like PyTorch
    params = init_down_block_params(kp, Cin, Cout)

    out = jax.block_until_ready(down_block_forward(params, x))
    assert out.shape == (N, Cout, H // 2, W // 2), out.shape

    ref = down_block_ref(params, x)
    assert jnp.allclose(out, ref, rtol=1e-4, atol=1e-4), \
        float(jnp.max(jnp.abs(out - ref)))

    print("KERNEL_OK")
</pallas_src>

<mosaic_0001>
module attributes {stable_mosaic.version = 11 : i64} {
  func.func @kernel(%arg0: i32, %arg1: memref<8x9x9x4xf32, #tpu.memory_space<vmem>>, %arg2: memref<3x3x4x4xf32, #tpu.memory_space<vmem>>, %arg3: memref<1x4xf32, #tpu.memory_space<vmem>>, %arg4: memref<3x3x4x8xf32, #tpu.memory_space<vmem>>, %arg5: memref<3x3x8x8xf32, #tpu.memory_space<vmem>>, %arg6: memref<2x64x8xf32, #tpu.memory_space<vmem>>, %arg7: memref<2x10x24x4xf32, #tpu.memory_space<vmem>>, %arg8: memref<2x10x24x8xf32, #tpu.memory_space<vmem>>) attributes {dimension_semantics = [#tpu.dimension_semantics<parallel>], iteration_bounds = array<i64: 1>, scalar_prefetch = 0 : i64, scratch_operands = 2 : i64, tpu.core_type = #tpu.core_type<tc>, window_params = [{pipeline_mode = #tpu.pipeline_mode<synchronous>, transform_indices = @transform_0, window_bounds = array<i64: 8, 9, 9, 4>}, {pipeline_mode = #tpu.pipeline_mode<synchronous>, transform_indices = @transform_1, window_bounds = array<i64: 3, 3, 4, 4>}, {pipeline_mode = #tpu.pipeline_mode<synchronous>, transform_indices = @transform_2, window_bounds = array<i64: 1, 4>}, {pipeline_mode = #tpu.pipeline_mode<synchronous>, transform_indices = @transform_3, window_bounds = array<i64: 3, 3, 4, 8>}, {pipeline_mode = #tpu.pipeline_mode<synchronous>, transform_indices = @transform_4, window_bounds = array<i64: 3, 3, 8, 8>}, {pipeline_mode = #tpu.pipeline_mode<synchronous>, transform_indices = @transform_5, window_bounds = array<i64: 2, 64, 8>}]} {
    %c0 = arith.constant 0 : index
    %c0_0 = arith.constant 0 : index
    %0 = vector.load %arg3[%c0, %c0_0] : memref<1x4xf32, #tpu.memory_space<vmem>>, vector<1x4xf32>
    %1 = vector.shape_cast %0 : vector<1x4xf32> to vector<1x4xf32>
    %2 = vector.broadcast %1 : vector<1x4xf32> to vector<128x4xf32>
    %c0_1 = arith.constant 0 : index
    %c0_2 = arith.constant 0 : index
    %c0_3 = arith.constant 0 : index
    %c0_4 = arith.constant 0 : index
    %3 = vector.load %arg1[%c0_1, %c0_2, %c0_3, %c0_4] : memref<8x9x9x4xf32, #tpu.memory_space<vmem>>, vector<2x8x9x4xf32>
    %4 = vector.extract_strided_slice %3 {offsets = [0, 0, 0, 0], sizes = [2, 8, 8, 4], strides = [1, 1, 1, 1]} : vector<2x8x9x4xf32> to vector<2x8x8x4xf32>
    %5 = vector.shape_cast %4 : vector<2x8x8x4xf32> to vector<128x4xf32>
    %c0_5 = arith.constant 0 : index
    %c0_6 = arith.constant 0 : index
    %c0_7 = arith.constant 0 : index
    %c0_8 = arith.constant 0 : index
    %6 = vector.load %arg2[%c0_5, %c0_6, %c0_7, %c0_8] : memref<3x3x4x4xf32, #tpu.memory_space<vmem>>, vector<1x1x4x4xf32>
    %7 = vector.shape_cast %6 : vector<1x1x4x4xf32> to vector<4x4xf32>
    %cst = arith.constant dense<0.000000e+00> : vector<128x4xf32>
    %8 = tpu.matmul %5, %7, %cst {dimension_numbers = #tpu.dot_dimension_numbers<[1], [0], [0], [1], [0, 0, 1, 1], [], []>} : vector<128x4xf32>, vector<4x4xf32>, vector<128x4xf32> -> vector<128x4xf32>
    %9 = arith.addf %2, %8 : vector<128x4xf32>
    %c2 = arith.constant 2 : index
    %c0_9 = arith.constant 0 : index
    %c0_10 = arith.constant 0 : index
    %c0_11 = arith.constant 0 : index
    %10 = vector.load %arg1[%c2, %c0_9, %c0_10, %c0_11] : memref<8x9x9x4xf32, #tpu.memory_space<vmem>>, vector<2x8x9x4xf32>
    %11 = vector.extract_strided_slice %10 {offsets = [0, 0, 0, 0], sizes = [2, 8, 8, 4], strides = [1, 1, 1, 1]} : vector<2x8x9x4xf32> to vector<2x8x8x4xf32>
    %12 = vector.shape_cast %11 : vector<2x8x8x4xf32> to vector<128x4xf32>
    %c0_12 = arith.constant 0 : index
    %c1 = arith.constant 1 : index
    %c0_13 = arith.constant 0 : index
    %c0_14 = arith.constant 0 : index
    %13 = vector.load %arg2[%c0_12, %c1, %c0_13, %c0_14] : memref<3x3x4x4xf32, #tpu.memory_space<vmem>>, vector<1x1x4x4xf32>
    %14 = vector.shape_cast %13 : vector<1x1x4x4xf32> to vector<4x4xf32>
    %cst_15 = arith.constant dense<0.000000e+00> : vector<128x4xf32>
    %15 = tpu.matmul %12, %14, %cst_15 {dimension_numbers = #tpu.dot_dimension_numbers<[1], [0], [0], [1], [0, 0, 1, 1], [], []>} : vector<128x4xf32>, vector<4x4xf32>, vector<128x4xf32> -> vector<128x4xf32>
    %16 = arith.addf %9, %15 : vector<128x4xf32>
    %c0_16 = arith.constant 0 : index
    %c0_17 = arith.constant 0 : index
    %c0_18 = arith.constant 0 : index
    %c0_19 = arith.constant 0 : index
    %17 = vector.load %arg1[%c0_16, %c0_17, %c0_18, %c0_19] : memref<8x9x9x4xf32, #tpu.memory_space<vmem>>, vector<2x8x9x4xf32>
    %18 = vector.extract_strided_slice %17 {offsets = [0, 0, 1, 0], sizes = [2, 8, 8, 4], strides = [1, 1, 1, 1]} : vector<2x8x9x4xf32> to vector<2x8x8x4xf32>
    %19 = vector.shape_cast %18 : vector<2x8x8x4xf32> to vector<128x4xf32>
    %c0_20 = arith.constant 0 : index
    %c2_21 = arith.constant 2 : index
    %c0_22 = arith.constant 0 : index
    %c0_23 = arith.constant 0 : index
    %20 = vector.load %arg2[%c0_20, %c2_21, %c0_22, %c0_23] : memref<3x3x4x4xf32, #tpu.memory_space<vmem>>, vector<1x1x4x4xf32>
    %21 = vector.shape_cast %20 : vector<1x1x4x4xf32> to vector<4x4xf32>
    %cst_24 = arith.constant dense<0.000000e+00> : vector<128x4xf32>
    %22 = tpu.matmul %19, %21, %cst_24 {dimension_numbers = #tpu.dot_dimension_numbers<[1], [0], [0], [1], [0, 0, 1, 1], [], []>} : vector<128x4xf32>, vector<4x4xf32>, vector<128x4xf32> -> vector<128x4xf32>
    %23 = arith.addf %16, %22 : vector<128x4xf32>
    %c4 = arith.constant 4 : index
    %c0_25 = arith.constant 0 : index
    %c0_26 = arith.constant 0 : index
    %c0_27 = arith.constant 0 : index
    %24 = vector.load %arg1[%c4, %c0_25, %c0_26, %c0_27] : memref<8x9x9x4xf32, #tpu.memory_space<vmem>>, vector<2x8x9x4xf32>
    %25 = vector.extract_strided_slice %24 {offsets = [0, 0, 0, 0], sizes = [2, 8, 8, 4], strides = [1, 1, 1, 1]} : vector<2x8x9x4xf32> to vector<2x8x8x4xf32>
    %26 = vector.shape_cast %25 : vector<2x8x8x4xf32> to vector<128x4xf32>
    %c1_28 = arith.constant 1 : index
    %c0_29 = arith.constant 0 : index
    %c0_30 = arith.constant 0 : index
    %c0_31 = arith.constant 0 : index
    %27 = vector.load %arg2[%c1_28, %c0_29, %c0_30, %c0_31] : memref<3x3x4x4xf32, #tpu.memory_space<vmem>>, vector<1x1x4x4xf32>
    %28 = vector.shape_cast %27 : vector<1x1x4x4xf32> to vector<4x4xf32>
    %cst_32 = arith.constant dense<0.000000e+00> : vector<128x4xf32>
    %29 = tpu.matmul %26, %28, %cst_32 {dimension_numbers = #tpu.dot_dimension_numbers<[1], [0], [0], [1], [0, 0, 1, 1], [], []>} : vector<128x4xf32>, vector<4x4xf32>, vector<128x4xf32> -> vector<128x4xf32>
    %30 = arith.addf %23, %29 : vector<128x4xf32>
    %c6 = arith.constant 6 : index
    %c0_33 = arith.constant 0 : index
    %c0_34 = arith.constant 0 : index
    %c0_35 = arith.constant 0 : index
    %31 = vector.load %arg1[%c6, %c0_33, %c0_34, %c0_35] : memref<8x9x9x4xf32, #tpu.memory_space<vmem>>, vector<2x8x9x4xf32>
    %32 = vector.extract_strided_slice %31 {offsets = [0, 0, 0, 0], sizes = [2, 8, 8, 4], strides = [1, 1, 1, 1]} : vector<2x8x9x4xf32> to vector<2x8x8x4xf32>
    %33 = vector.shape_cast %32 : vector<2x8x8x4xf32> to vector<128x4xf32>
    %c1_36 = arith.constant 1 : index
    %c1_37 = arith.constant 1 : index
    %c0_38 = arith.constant 0 : index
    %c0_39 = arith.constant 0 : index
    %34 = vector.load %arg2[%c1_36, %c1_37, %c0_38, %c0_39] : memref<3x3x4x4xf32, #tpu.memory_space<vmem>>, vector<1x1x4x4xf32>
    %35 = vector.shape_cast %34 : vector<1x1x4x4xf32> to vector<4x4xf32>
    %cst_40 = arith.constant dense<0.000000e+00> : vector<128x4xf32>
    %36 = tpu.matmul %33, %35, %cst_40 {dimension_numbers = #tpu.dot_dimension_numbers<[1], [0], [0], [1], [0, 0, 1, 1], [], []>} : vector<128x4xf32>, vector<4x4xf32>, vector<128x4xf32> -> vector<128x4xf32>
    %37 = arith.addf %30, %36 : vector<128x4xf32>
    %c4_41 = arith.constant 4 : index
    %c0_42 = arith.constant 0 : index
    %c0_43 = arith.constant 0 : index
    %c0_44 = arith.constant 0 : index
    %38 = vector.load %arg1[%c4_41, %c0_42, %c0_43, %c0_44] : memref<8x9x9x4xf32, #tpu.memory_space<vmem>>, vector<2x8x9x4xf32>
    %39 = vector.extract_strided_slice %38 {offsets = [0, 0, 1, 0], sizes = [2, 8, 8, 4], strides = [1, 1, 1, 1]} : vector<2x8x9x4xf32> to vector<2x8x8x4xf32>
    %40 = vector.shape_cast %39 : vector<2x8x8x4xf32> to vector<128x4xf32>
    %c1_45 = arith.constant 1 : index
    %c2_46 = arith.constant 2 : index
    %c0_47 = arith.constant 0 : index
    %c0_48 = arith.constant 0 : index
    %41 = vector.load %arg2[%c1_45, %c2_46, %c0_47, %c0_48] : memref<3x3x4x4xf32, #tpu.memory_space<vmem>>, vector<1x1x4x4xf32>
    %42 = vector.shape_cast %41 : vector<1x1x4x4xf32> to vector<4x4xf32>
    %cst_49 = arith.constant dense<0.000000e+00> : vector<128x4xf32>
    %43 = tpu.matmul %40, %42, %cst_49 {dimension_numbers = #tpu.dot_dimension_numbers<[1], [0], [0], [1], [0, 0, 1, 1], [], []>} : vector<128x4xf32>, vector<4x4xf32>, vector<128x4xf32> -> vector<128x4xf32>
    %44 = arith.addf %37, %43 : vector<128x4xf32>
    %c0_50 = arith.constant 0 : index
    %c1_51 = arith.constant 1 : index
    %c0_52 = arith.constant 0 : index
    %c0_53 = arith.constant 0 : index
    %45 = vector.load %arg1[%c0_50, %c1_51, %c0_52, %c0_53] : memref<8x9x9x4xf32, #tpu.memory_space<vmem>>, vector<2x8x9x4xf32>
    %46 = vector.extract_strided_slice %45 {offsets = [0, 0, 0, 0], sizes = [2, 8, 8, 4], strides = [1, 1, 1, 1]} : vector<2x8x9x4xf32> to vector<2x8x8x4xf32>
    %47 = vector.shape_cast %46 : vector<2x8x8x4xf32> to vector<128x4xf32>
    %c2_54 = arith.constant 2 : index
    %c0_55 = arith.constant 0 : index
    %c0_56 = arith.constant 0 : index
    %c0_57 = arith.constant 0 : index
    %48 = vector.load %arg2[%c2_54, %c0_55, %c0_56, %c0_57] : memref<3x3x4x4xf32, #tpu.memory_space<vmem>>, vector<1x1x4x4xf32>
    %49 = vector.shape_cast %48 : vector<1x1x4x4xf32> to vector<4x4xf32>
    %cst_58 = arith.constant dense<0.000000e+00> : vector<128x4xf32>
    %50 = tpu.matmul %47, %49, %cst_58 {dimension_numbers = #tpu.dot_dimension_numbers<[1], [0], [0], [1], [0, 0, 1, 1], [], []>} : vector<128x4xf32>, vector<4x4xf32>, vector<128x4xf32> -> vector<128x4xf32>
    %51 = arith.addf %44, %50 : vector<128x4xf32>
    %c2_59 = arith.constant 2 : index
    %c1_60 = arith.constant 1 : index
    %c0_61 = arith.constant 0 : index
    %c0_62 = arith.constant 0 : index
    %52 = vector.load %arg1[%c2_59, %c1_60, %c0_61, %c0_62] : memref<8x9x9x4xf32, #tpu.memory_space<vmem>>, vector<2x8x9x4xf32>
    %53 = vector.extract_strided_slice %52 {offsets = [0, 0, 0, 0], sizes = [2, 8, 8, 4], strides = [1, 1, 1, 1]} : vector<2x8x9x4xf32> to vector<2x8x8x4xf32>
    %54 = vector.shape_cast %53 : vector<2x8x8x4xf32> to vector<128x4xf32>
    %c2_63 = arith.constant 2 : index
    %c1_64 = arith.constant 1 : index
    %c0_65 = arith.constant 0 : index
    %c0_66 = arith.constant 0 : index
    %55 = vector.load %arg2[%c2_63, %c1_64, %c0_65, %c0_66] : memref<3x3x4x4xf32, #tpu.memory_space<vmem>>, vector<1x1x4x4xf32>
    %56 = vector.shape_cast %55 : vector<1x1x4x4xf32> to vector<4x4xf32>
    %cst_67 = arith.constant dense<0.000000e+00> : vector<128x4xf32>
    %57 = tpu.matmul %54, %56, %cst_67 {dimension_numbers = #tpu.dot_dimension_numbers<[1], [0], [0], [1], [0, 0, 1, 1], [], []>} : vector<128x4xf32>, vector<4x4xf32>, vector<128x4xf32> -> vector<128x4xf32>
    %58 = arith.addf %51, %57 : vector<128x4xf32>
    %c0_68 = arith.constant 0 : index
    %c1_69 = arith.constant 1 : index
    %c0_70 = arith.constant 0 : index
    %c0_71 = arith.constant 0 : index
    %59 = vector.load %arg1[%c0_68, %c1_69, %c0_70, %c0_71] : memref<8x9x9x4xf32, #tpu.memory_space<vmem>>, vector<2x8x9x4xf32>
    %60 = vector.extract_strided_slice %59 {offsets = [0, 0, 1, 0], sizes = [2, 8, 8, 4], strides = [1, 1, 1, 1]} : vector<2x8x9x4xf32> to vector<2x8x8x4xf32>
    %61 = vector.shape_cast %60 : vector<2x8x8x4xf32> to vector<128x4xf32>
    %c2_72 = arith.constant 2 : index
    %c2_73 = arith.constant 2 : index
    %c0_74 = arith.constant 0 : index
    %c0_75 = arith.constant 0 : index
    %62 = vector.load %arg2[%c2_72, %c2_73, %c0_74, %c0_75] : memref<3x3x4x4xf32, #tpu.memory_space<vmem>>, vector<1x1x4x4xf32>
    %63 = vector.shape_cast %62 : vector<1x1x4x4xf32> to vector<4x4xf32>
    %cst_76 = arith.constant dense<0.000000e+00> : vector<128x4xf32>
    %64 = tpu.matmul %61, %63, %cst_76 {dimension_numbers = #tpu.dot_dimension_numbers<[1], [0], [0], [1], [0, 0, 1, 1], [], []>} : vector<128x4xf32>, vector<4x4xf32>, vector<128x4xf32> -> vector<128x4xf32>
    %65 = arith.addf %58, %64 : vector<128x4xf32>
    %cst_77 = arith.constant 0.000000e+00 : f32
    %66 = vector.broadcast %cst_77 : f32 to vector<2x10x24x4xf32>
    %c0_78 = arith.constant 0 : index
    %c0_79 = arith.constant 0 : index
    %c0_80 = arith.constant 0 : index
    %c0_81 = arith.constant 0 : index
    %67 = vector.load %arg7[%c0_78, %c0_79, %c0_80, %c0_81] : memref<2x10x24x4xf32, #tpu.memory_space<vmem>>, vector<2x10x24x4xf32>
    tpu.vector_store %arg7[%c0_78, %c0_79, %c0_80, %c0_81], %66 {strides = array<i32>} : memref<2x10x24x4xf32, #tpu.memory_space<vmem>>, vector<2x10x24x4xf32>,
    %68 = vector.shape_cast %65 : vector<128x4xf32> to vector<2x8x8x4xf32>
    %c0_82 = arith.constant 0 : index
    %c1_83 = arith.constant 1 : index
    %c8 = arith.constant 8 : index
    %c0_84 = arith.constant 0 : index
    %69 = vector.load %arg7[%c0_82, %c1_83, %c8, %c0_84] : memref<2x10x24x4xf32, #tpu.memory_space<vmem>>, vector<2x8x8x4xf32>
    tpu.vector_store %arg7[%c0_82, %c1_83, %c8, %c0_84], %68 {strides = array<i32>} : memref<2x10x24x4xf32, #tpu.memory_space<vmem>>, vector<2x8x8x4xf32>,
    %cst_85 = arith.constant 0.000000e+00 : f32
    %70 = vector.broadcast %cst_85 : f32 to vector<128x8xf32>
    %c0_86 = arith.constant 0 : index
    %c0_87 = arith.constant 0 : index
    %c0_88 = arith.constant 0 : index
    %c0_89 = arith.constant 0 : index
    %71 = vector.load %arg7[%c0_86, %c0_87, %c0_88, %c0_89] : memref<2x10x24x4xf32, #tpu.memory_space<vmem>>, vector<2x8x24x4xf32>
    %72 = vector.extract_strided_slice %71 {offsets = [0, 0, 7, 0], sizes = [2, 8, 8, 4], strides = [1, 1, 1, 1]} : vector<2x8x24x4xf32> to vector<2x8x8x4xf32>
    %73 = vector.shape_cast %72 : vector<2x8x8x4xf32> to vector<128x4xf32>
    %c0_90 = arith.constant 0 : index
    %c0_91 = arith.constant 0 : index
    %c0_92 = arith.constant 0 : index
    %c0_93 = arith.constant 0 : index
    %74 = vector.load %arg4[%c0_90, %c0_91, %c0_92, %c0_93] : memref<3x3x4x8xf32, #tpu.memory_space<vmem>>, vector<1x1x4x8xf32>
    %75 = vector.shape_cast %74 : vector<1x1x4x8xf32> to vector<4x8xf32>
    %cst_94 = arith.constant dense<0.000000e+00> : vector<128x8xf32>
    %76 = tpu.matmul %73, %75, %cst_94 {dimension_numbers = #tpu.dot_dimension_numbers<[1], [0], [0], [1], [0, 0, 1, 1], [], []>} : vector<128x4xf32>, vector<4x8xf32>, vector<128x8xf32> -> vector<128x8xf32>
    %77 = arith.addf %70, %76 : vector<128x8xf32>
    %78 = vector.extract_strided_slice %71 {offsets = [0, 0, 8, 0], sizes = [2, 8, 8, 4], strides = [1, 1, 1, 1]} : vector<2x8x24x4xf32> to vector<2x8x8x4xf32>
    %79 = vector.shape_cast %78 : vector<2x8x8x4xf32> to vector<128x4xf32>
    %c0_95 = arith.constant 0 : index
    %c1_96 = arith.constant 1 : index
    %c0_97 = arith.constant 0 : index
    %c0_98 = arith.constant 0 : index
    %80 = vector.load %arg4[%c0_95, %c1_96, %c0_97, %c0_98] : memref<3x3x4x8xf32, #tpu.memory_space<vmem>>, vector<1x1x4x8xf32>
    %81 = vector.shape_cast %80 : vector<1x1x4x8xf32> to vector<4x8xf32>
    %cst_99 = arith.constant dense<0.000000e+00> : vector<128x8xf32>
    %82 = tpu.matmul %79, %81, %cst_99 {dimension_numbers = #tpu.dot_dimension_numbers<[1], [0], [0], [1], [0, 0, 1, 1], [], []>} : vector<128x4xf32>, vector<4x8xf32>, vector<128x8xf32> -> vector<128x8xf32>
    %83 = arith.addf %77, %82 : vector<128x8xf32>
    %84 = vector.extract_strided_slice %71 {offsets = [0, 0, 9, 0], sizes = [2, 8, 8, 4], strides = [1, 1, 1, 1]} : vector<2x8x24x4xf32> to vector<2x8x8x4xf32>
    %85 = vector.shape_cast %84 : vector<2x8x8x4xf32> to vector<128x4xf32>
    %c0_100 = arith.constant 0 : index
    %c2_101 = arith.constant 2 : index
    %c0_102 = arith.constant 0 : index
    %c0_103 = arith.constant 0 : index
    %86 = vector.load %arg4[%c0_100, %c2_101, %c0_102, %c0_103] : memref<3x3x4x8xf32, #tpu.memory_space<vmem>>, vector<1x1x4x8xf32>
    %87 = vector.shape_cast %86 : vector<1x1x4x8xf32> to vector<4x8xf32>
    %cst_104 = arith.constant dense<0.000000e+00> : vector<128x8xf32>
    %88 = tpu.matmul %85, %87, %cst_104 {dimension_numbers = #tpu.dot_dimension_numbers<[1], [0], [0], [1], [0, 0, 1, 1], [], []>} : vector<128x4xf32>, vector<4x8xf32>, vector<128x8xf32> -> vector<128x8xf32>
    %89 = arith.addf %83, %88 : vector<128x8xf32>
    %c0_105 = arith.constant 0 : index
    %c1_106 = arith.constant 1 : index
    %c0_107 = arith.constant 0 : index
    %c0_108 = arith.constant 0 : index
    %90 = vector.load %arg7[%c0_105, %c1_106, %c0_107, %c0_108] : memref<2x10x24x4xf32, #tpu.memory_space<vmem>>, vector<2x8x24x4xf32>
    %91 = vector.extract_strided_slice %90 {offsets = [0, 0, 7, 0], sizes = [2, 8, 8, 4], strides = [1, 1, 1, 1]} : vector<2x8x24x4xf32> to vector<2x8x8x4xf32>
    %92 = vector.shape_cast %91 : vector<2x8x8x4xf32> to vector<128x4xf32>
    %c1_109 = arith.constant 1 : index
    %c0_110 = arith.constant 0 : index
    %c0_111 = arith.constant 0 : index
    %c0_112 = arith.constant 0 : index
    %93 = vector.load %arg4[%c1_109, %c0_110, %c0_111, %c0_112] : memref<3x3x4x8xf32, #tpu.memory_space<vmem>>, vector<1x1x4x8xf32>
    %94 = vector.shape_cast %93 : vector<1x1x4x8xf32> to vector<4x8xf32>
    %cst_113 = arith.constant dense<0.000000e+00> : vector<128x8xf32>
    %95 = tpu.matmul %92, %94, %cst_113 {dimension_numbers = #tpu.dot_dimension_numbers<[1], [0], [0], [1], [0, 0, 1, 1], [], []>} : vector<128x4xf32>, vector<4x8xf32>, vector<128x8xf32> -> vector<128x8xf32>
    %96 = arith.addf %89, %95 : vector<128x8xf32>
    %97 = vector.extract_strided_slice %90 {offsets = [0, 0, 8, 0], sizes = [2, 8, 8, 4], strides = [1, 1, 1, 1]} : vector<2x8x24x4xf32> to vector<2x8x8x4xf32>
    %98 = vector.shape_cast %97 : vector<2x8x8x4xf32> to vector<128x4xf32>
    %c1_114 = arith.constant 1 : index
    %c1_115 = arith.constant 1 : index
    %c0_116 = arith.constant 0 : index
    %c0_117 = arith.constant 0 : index
    %99 = vector.load %arg4[%c1_114, %c1_115, %c0_116, %c0_117] : memref<3x3x4x8xf32, #tpu.memory_space<vmem>>, vector<1x1x4x8xf32>
    %100 = vector.shape_cast %99 : vector<1x1x4x8xf32> to vector<4x8xf32>
    %cst_118 = arith.constant dense<0.000000e+00> : vector<128x8xf32>
    %101 = tpu.matmul %98, %100, %cst_118 {dimension_numbers = #tpu.dot_dimension_numbers<[1], [0], [0], [1], [0, 0, 1, 1], [], []>} : vector<128x4xf32>, vector<4x8xf32>, vector<128x8xf32> -> vector<128x8xf32>
    %102 = arith.addf %96, %101 : vector<128x8xf32>
    %103 = vector.extract_strided_slice %90 {offsets = [0, 0, 9, 0], sizes = [2, 8, 8, 4], strides = [1, 1, 1, 1]} : vector<2x8x24x4xf32> to vector<2x8x8x4xf32>
    %104 = vector.shape_cast %103 : vector<2x8x8x4xf32> to vector<128x4xf32>
    %c1_119 = arith.constant 1 : index
    %c2_120 = arith.constant 2 : index
    %c0_121 = arith.constant 0 : index
    %c0_122 = arith.constant 0 : index
    %105 = vector.load %arg4[%c1_119, %c2_120, %c0_121, %c0_122] : memref<3x3x4x8xf32, #tpu.memory_space<vmem>>, vector<1x1x4x8xf32>
    %106 = vector.shape_cast %105 : vector<1x1x4x8xf32> to vector<4x8xf32>
    %cst_123 = arith.constant dense<0.000000e+00> : vector<128x8xf32>
    %107 = tpu.matmul %104, %106, %cst_123 {dimension_numbers = #tpu.dot_dimension_numbers<[1], [0], [0], [1], [0, 0, 1, 1], [], []>} : vector<128x4xf32>, vector<4x8xf32>, vector<128x8xf32> -> vector<128x8xf32>
    %108 = arith.addf %102, %107 : vector<128x8xf32>
    %c0_124 = arith.constant 0 : index
    %c2_125 = arith.constant 2 : index
    %c0_126 = arith.constant 0 : index
    %c0_127 = arith.constant 0 : index
    %109 = vector.load %arg7[%c0_124, %c2_125, %c0_126, %c0_127] : memref<2x10x24x4xf32, #tpu.memory_space<vmem>>, vector<2x8x24x4xf32>
    %110 = vector.extract_strided_slice %109 {offsets = [0, 0, 7, 0], sizes = [2, 8, 8, 4], strides = [1, 1, 1, 1]} : vector<2x8x24x4xf32> to vector<2x8x8x4xf32>
    %111 = vector.shape_cast %110 : vector<2x8x8x4xf32> to vector<128x4xf32>
    %c2_128 = arith.constant 2 : index
    %c0_129 = arith.constant 0 : index
    %c0_130 = arith.constant 0 : index
    %c0_131 = arith.constant 0 : index
    %112 = vector.load %arg4[%c2_128, %c0_129, %c0_130, %c0_131] : memref<3x3x4x8xf32, #tpu.memory_space<vmem>>, vector<1x1x4x8xf32>
    %113 = vector.shape_cast %112 : vector<1x1x4x8xf32> to vector<4x8xf32>
    %cst_132 = arith.constant dense<0.000000e+00> : vector<128x8xf32>
    %114 = tpu.matmul %111, %113, %cst_132 {dimension_numbers = #tpu.dot_dimension_numbers<[1], [0], [0], [1], [0, 0, 1, 1], [], []>} : vector<128x4xf32>, vector<4x8xf32>, vector<128x8xf32> -> vector<128x8xf32>
    %115 = arith.addf %108, %114 : vector<128x8xf32>
    %116 = vector.extract_strided_slice %109 {offsets = [0, 0, 8, 0], sizes = [2, 8, 8, 4], strides = [1, 1, 1, 1]} : vector<2x8x24x4xf32> to vector<2x8x8x4xf32>
    %117 = vector.shape_cast %116 : vector<2x8x8x4xf32> to vector<128x4xf32>
    %c2_133 = arith.constant 2 : index
    %c1_134 = arith.constant 1 : index
    %c0_135 = arith.constant 0 : index
    %c0_136 = arith.constant 0 : index
    %118 = vector.load %arg4[%c2_133, %c1_134, %c0_135, %c0_136] : memref<3x3x4x8xf32, #tpu.memory_space<vmem>>, vector<1x1x4x8xf32>
    %119 = vector.shape_cast %118 : vector<1x1x4x8xf32> to vector<4x8xf32>
    %cst_137 = arith.constant dense<0.000000e+00> : vector<128x8xf32>
    %120 = tpu.matmul %117, %119, %cst_137 {dimension_numbers = #tpu.dot_dimension_numbers<[1], [0], [0], [1], [0, 0, 1, 1], [], []>} : vector<128x4xf32>, vector<4x8xf32>, vector<128x8xf32> -> vector<128x8xf32>
    %121 = arith.addf %115, %120 : vector<128x8xf32>
    %122 = vector.extract_strided_slice %109 {offsets = [0, 0, 9, 0], sizes = [2, 8, 8, 4], strides = [1, 1, 1, 1]} : vector<2x8x24x4xf32> to vector<2x8x8x4xf32>
    %123 = vector.shape_cast %122 : vector<2x8x8x4xf32> to vector<128x4xf32>
    %c2_138 = arith.constant 2 : index
    %c2_139 = arith.constant 2 : index
    %c0_140 = arith.constant 0 : index
    %c0_141 = arith.constant 0 : index
    %124 = vector.load %arg4[%c2_138, %c2_139, %c0_140, %c0_141] : memref<3x3x4x8xf32, #tpu.memory_space<vmem>>, vector<1x1x4x8xf32>
    %125 = vector.shape_cast %124 : vector<1x1x4x8xf32> to vector<4x8xf32>
    %cst_142 = arith.constant dense<0.000000e+00> : vector<128x8xf32>
    %126 = tpu.matmul %123, %125, %cst_142 {dimension_numbers = #tpu.dot_dimension_numbers<[1], [0], [0], [1], [0, 0, 1, 1], [], []>} : vector<128x4xf32>, vector<4x8xf32>, vector<128x8xf32> -> vector<128x8xf32>
    %127 = arith.addf %121, %126 : vector<128x8xf32>
    %128 = vector.shape_cast %127 : vector<128x8xf32> to vector<2x64x8xf32>
    %cst_143 = arith.constant dense<0.000000e+00> : vector<2x8xf32>
    %129 = vector.multi_reduction <add>, %128, %cst_143 [1] : vector<2x64x8xf32> to vector<2x8xf32>
    %130 = vector.shape_cast %129 : vector<2x8xf32> to vector<2x1x8xf32>
    %131 = arith.mulf %128, %128 : vector<2x64x8xf32>
    %cst_144 = arith.constant dense<0.000000e+00> : vector<2x8xf32>
    %132 = vector.multi_reduction <add>, %131, %cst_144 [1] : vector<2x64x8xf32> to vector<2x8xf32>
    %133 = vector.shape_cast %132 : vector<2x8xf32> to vector<2x1x8xf32>
    %cst_145 = arith.constant 1.562500e-02 : f32
    %134 = vector.broadcast %cst_145 : f32 to vector<2x1x8xf32>
    %135 = arith.mulf %130, %134 : vector<2x1x8xf32>
    %cst_146 = arith.constant 1.562500e-02 : f32
    %136 = vector.broadcast %cst_146 : f32 to vector<2x1x8xf32>
    %137 = arith.mulf %133, %136 : vector<2x1x8xf32>
    %138 = arith.mulf %135, %135 : vector<2x1x8xf32>
    %139 = arith.subf %137, %138 : vector<2x1x8xf32>
    %cst_147 = arith.constant 0.000000e+00 : f32
    %140 = vector.broadcast %cst_147 : f32 to vector<2x1x8xf32>
    %141 = arith.maximumf %139, %140 : vector<2x1x8xf32>
    %142 = vector.broadcast %135 : vector<2x1x8xf32> to vector<2x64x8xf32>
    %143 = arith.subf %128, %142 : vector<2x64x8xf32>
    %cst_148 = arith.constant 9.99999974E-6 : f32
    %144 = vector.broadcast %cst_148 : f32 to vector<2x1x8xf32>
    %145 = arith.addf %141, %144 : vector<2x1x8xf32>
    %146 = math.rsqrt %145 : vector<2x1x8xf32>
    %147 = vector.broadcast %146 : vector<2x1x8xf32> to vector<2x64x8xf32>
    %148 = arith.mulf %143, %147 : vector<2x64x8xf32>
    %cst_149 = arith.constant 0.000000e+00 : f32
    %149 = vector.broadcast %cst_149 : f32 to vector<2x64x8xf32>
    %150 = arith.maximumf %148, %149 : vector<2x64x8xf32>
    %cst_150 = arith.constant 0.000000e+00 : f32
    %151 = vector.broadcast %cst_150 : f32 to vector<2x10x24x8xf32>
    %c0_151 = arith.constant 0 : index
    %c0_152 = arith.constant 0 : index
    %c0_153 = arith.constant 0 : index
    %c0_154 = arith.constant 0 : index
    %152 = vector.load %arg8[%c0_151, %c0_152, %c0_153, %c0_154] : memref<2x10x24x8xf32, #tpu.memory_space<vmem>>, vector<2x10x24x8xf32>
    tpu.vector_store %arg8[%c0_151, %c0_152, %c0_153, %c0_154], %151 {strides = array<i32>} : memref<2x10x24x8xf32, #tpu.memory_space<vmem>>, vector<2x10x24x8xf32>,
    %153 = vector.shape_cast %150 : vector<2x64x8xf32> to vector<2x8x8x8xf32>
    %c0_155 = arith.constant 0 : index
    %c1_156 = arith.constant 1 : index
    %c8_157 = arith.constant 8 : index
    %c0_158 = arith.constant 0 : index
    %154 = vector.load %arg8[%c0_155, %c1_156, %c8_157, %c0_158] : memref<2x10x24x8xf32, #tpu.memory_space<vmem>>, vector<2x8x8x8xf32>
    tpu.vector_store %arg8[%c0_155, %c1_156, %c8_157, %c0_158], %153 {strides = array<i32>} : memref<2x10x24x8xf32, #tpu.memory_space<vmem>>, vector<2x8x8x8xf32>,
    %cst_159 = arith.constant 0.000000e+00 : f32
    %155 = vector.broadcast %cst_159 : f32 to vector<128x8xf32>
    %c0_160 = arith.constant 0 : index
    %c0_161 = arith.constant 0 : index
    %c0_162 = arith.constant 0 : index
    %c0_163 = arith.constant 0 : index
    %156 = vector.load %arg8[%c0_160, %c0_161, %c0_162, %c0_163] : memref<2x10x24x8xf32, #tpu.memory_space<vmem>>, vector<2x8x24x8xf32>
    %157 = vector.extract_strided_slice %156 {offsets = [0, 0, 7, 0], sizes = [2, 8, 8, 8], strides = [1, 1, 1, 1]} : vector<2x8x24x8xf32> to vector<2x8x8x8xf32>
    %158 = vector.shape_cast %157 : vector<2x8x8x8xf32> to vector<128x8xf32>
    %c0_164 = arith.constant 0 : index
    %c0_165 = arith.constant 0 : index
    %c0_166 = arith.constant 0 : index
    %c0_167 = arith.constant 0 : index
    %159 = vector.load %arg5[%c0_164, %c0_165, %c0_166, %c0_167] : memref<3x3x8x8xf32, #tpu.memory_space<vmem>>, vector<1x1x8x8xf32>
    %160 = vector.shape_cast %159 : vector<1x1x8x8xf32> to vector<8x8xf32>
    %cst_168 = arith.constant dense<0.000000e+00> : vector<128x8xf32>
    %161 = tpu.matmul %158, %160, %cst_168 {dimension_numbers = #tpu.dot_dimension_numbers<[1], [0], [0], [1], [0, 0, 1, 1], [], []>} : vector<128x8xf32>, vector<8x8xf32>, vector<128x8xf32> -> vector<128x8xf32>
    %162 = arith.addf %155, %161 : vector<128x8xf32>
    %163 = vector.extract_strided_slice %156 {offsets = [0, 0, 8, 0], sizes = [2, 8, 8, 8], strides = [1, 1, 1, 1]} : vector<2x8x24x8xf32> to vector<2x8x8x8xf32>
    %164 = vector.shape_cast %163 : vector<2x8x8x8xf32> to vector<128x8xf32>
    %c0_169 = arith.constant 0 : index
    %c1_170 = arith.constant 1 : index
    %c0_171 = arith.constant 0 : index
    %c0_172 = arith.constant 0 : index
    %165 = vector.load %arg5[%c0_169, %c1_170, %c0_171, %c0_172] : memref<3x3x8x8xf32, #tpu.memory_space<vmem>>, vector<1x1x8x8xf32>
    %166 = vector.shape_cast %165 : vector<1x1x8x8xf32> to vector<8x8xf32>
    %cst_173 = arith.constant dense<0.000000e+00> : vector<128x8xf32>
    %167 = tpu.matmul %164, %166, %cst_173 {dimension_numbers = #tpu.dot_dimension_numbers<[1], [0], [0], [1], [0, 0, 1, 1], [], []>} : vector<128x8xf32>, vector<8x8xf32>, vector<128x8xf32> -> vector<128x8xf32>
    %168 = arith.addf %162, %167 : vector<128x8xf32>
    %169 = vector.extract_strided_slice %156 {offsets = [0, 0, 9, 0], sizes = [2, 8, 8, 8], strides = [1, 1, 1, 1]} : vector<2x8x24x8xf32> to vector<2x8x8x8xf32>
    %170 = vector.shape_cast %169 : vector<2x8x8x8xf32> to vector<128x8xf32>
    %c0_174 = arith.constant 0 : index
    %c2_175 = arith.constant 2 : index
    %c0_176 = arith.constant 0 : index
    %c0_177 = arith.constant 0 : index
    %171 = vector.load %arg5[%c0_174, %c2_175, %c0_176, %c0_177] : memref<3x3x8x8xf32, #tpu.memory_space<vmem>>, vector<1x1x8x8xf32>
    %172 = vector.shape_cast %171 : vector<1x1x8x8xf32> to vector<8x8xf32>
    %cst_178 = arith.constant dense<0.000000e+00> : vector<128x8xf32>
    %173 = tpu.matmul %170, %172, %cst_178 {dimension_numbers = #tpu.dot_dimension_numbers<[1], [0], [0], [1], [0, 0, 1, 1], [], []>} : vector<128x8xf32>, vector<8x8xf32>, vector<128x8xf32> -> vector<128x8xf32>
    %174 = arith.addf %168, %173 : vector<128x8xf32>
    %c0_179 = arith.constant 0 : index
    %c1_180 = arith.constant 1 : index
    %c0_181 = arith.constant 0 : index
    %c0_182 = arith.constant 0 : index
    %175 = vector.load %arg8[%c0_179, %c1_180, %c0_181, %c0_182] : memref<2x10x24x8xf32, #tpu.memory_space<vmem>>, vector<2x8x24x8xf32>
    %176 = vector.extract_strided_slice %175 {offsets = [0, 0, 7, 0], sizes = [2, 8, 8, 8], strides = [1, 1, 1, 1]} : vector<2x8x24x8xf32> to vector<2x8x8x8xf32>
    %177 = vector.shape_cast %176 : vector<2x8x8x8xf32> to vector<128x8xf32>
    %c1_183 = arith.constant 1 : index
    %c0_184 = arith.constant 0 : index
    %c0_185 = arith.constant 0 : index
    %c0_186 = arith.constant 0 : index
    %178 = vector.load %arg5[%c1_183, %c0_184, %c0_185, %c0_186] : memref<3x3x8x8xf32, #tpu.memory_space<vmem>>, vector<1x1x8x8xf32>
    %179 = vector.shape_cast %178 : vector<1x1x8x8xf32> to vector<8x8xf32>
    %cst_187 = arith.constant dense<0.000000e+00> : vector<128x8xf32>
    %180 = tpu.matmul %177, %179, %cst_187 {dimension_numbers = #tpu.dot_dimension_numbers<[1], [0], [0], [1], [0, 0, 1, 1], [], []>} : vector<128x8xf32>, vector<8x8xf32>, vector<128x8xf32> -> vector<128x8xf32>
    %181 = arith.addf %174, %180 : vector<128x8xf32>
    %182 = vector.extract_strided_slice %175 {offsets = [0, 0, 8, 0], sizes = [2, 8, 8, 8], strides = [1, 1, 1, 1]} : vector<2x8x24x8xf32> to vector<2x8x8x8xf32>
    %183 = vector.shape_cast %182 : vector<2x8x8x8xf32> to vector<128x8xf32>
    %c1_188 = arith.constant 1 : index
    %c1_189 = arith.constant 1 : index
    %c0_190 = arith.constant 0 : index
    %c0_191 = arith.constant 0 : index
    %184 = vector.load %arg5[%c1_188, %c1_189, %c0_190, %c0_191] : memref<3x3x8x8xf32, #tpu.memory_space<vmem>>, vector<1x1x8x8xf32>
    %185 = vector.shape_cast %184 : vector<1x1x8x8xf32> to vector<8x8xf32>
    %cst_192 = arith.constant dense<0.000000e+00> : vector<128x8xf32>
    %186 = tpu.matmul %183, %185, %cst_192 {dimension_numbers = #tpu.dot_dimension_numbers<[1], [0], [0], [1], [0, 0, 1, 1], [], []>} : vector<128x8xf32>, vector<8x8xf32>, vector<128x8xf32> -> vector<128x8xf32>
    %187 = arith.addf %181, %186 : vector<128x8xf32>
    %188 = vector.extract_strided_slice %175 {offsets = [0, 0, 9, 0], sizes = [2, 8, 8, 8], strides = [1, 1, 1, 1]} : vector<2x8x24x8xf32> to vector<2x8x8x8xf32>
    %189 = vector.shape_cast %188 : vector<2x8x8x8xf32> to vector<128x8xf32>
    %c1_193 = arith.constant 1 : index
    %c2_194 = arith.constant 2 : index
    %c0_195 = arith.constant 0 : index
    %c0_196 = arith.constant 0 : index
    %190 = vector.load %arg5[%c1_193, %c2_194, %c0_195, %c0_196] : memref<3x3x8x8xf32, #tpu.memory_space<vmem>>, vector<1x1x8x8xf32>
    %191 = vector.shape_cast %190 : vector<1x1x8x8xf32> to vector<8x8xf32>
    %cst_197 = arith.constant dense<0.000000e+00> : vector<128x8xf32>
    %192 = tpu.matmul %189, %191, %cst_197 {dimension_numbers = #tpu.dot_dimension_numbers<[1], [0], [0], [1], [0, 0, 1, 1], [], []>} : vector<128x8xf32>, vector<8x8xf32>, vector<128x8xf32> -> vector<128x8xf32>
    %193 = arith.addf %187, %192 : vector<128x8xf32>
    %c0_198 = arith.constant 0 : index
    %c2_199 = arith.constant 2 : index
    %c0_200 = arith.constant 0 : index
    %c0_201 = arith.constant 0 : index
    %194 = vector.load %arg8[%c0_198, %c2_199, %c0_200, %c0_201] : memref<2x10x24x8xf32, #tpu.memory_space<vmem>>, vector<2x8x24x8xf32>
    %195 = vector.extract_strided_slice %194 {offsets = [0, 0, 7, 0], sizes = [2, 8, 8, 8], strides = [1, 1, 1, 1]} : vector<2x8x24x8xf32> to vector<2x8x8x8xf32>
    %196 = vector.shape_cast %195 : vector<2x8x8x8xf32> to vector<128x8xf32>
    %c2_202 = arith.constant 2 : index
    %c0_203 = arith.constant 0 : index
    %c0_204 = arith.constant 0 : index
    %c0_205 = arith.constant 0 : index
    %197 = vector.load %arg5[%c2_202, %c0_203, %c0_204, %c0_205] : memref<3x3x8x8xf32, #tpu.memory_space<vmem>>, vector<1x1x8x8xf32>
    %198 = vector.shape_cast %197 : vector<1x1x8x8xf32> to vector<8x8xf32>
    %cst_206 = arith.constant dense<0.000000e+00> : vector<128x8xf32>
    %199 = tpu.matmul %196, %198, %cst_206 {dimension_numbers = #tpu.dot_dimension_numbers<[1], [0], [0], [1], [0, 0, 1, 1], [], []>} : vector<128x8xf32>, vector<8x8xf32>, vector<128x8xf32> -> vector<128x8xf32>
    %200 = arith.addf %193, %199 : vector<128x8xf32>
    %201 = vector.extract_strided_slice %194 {offsets = [0, 0, 8, 0], sizes = [2, 8, 8, 8], strides = [1, 1, 1, 1]} : vector<2x8x24x8xf32> to vector<2x8x8x8xf32>
    %202 = vector.shape_cast %201 : vector<2x8x8x8xf32> to vector<128x8xf32>
    %c2_207 = arith.constant 2 : index
    %c1_208 = arith.constant 1 : index
    %c0_209 = arith.constant 0 : index
    %c0_210 = arith.constant 0 : index
    %203 = vector.load %arg5[%c2_207, %c1_208, %c0_209, %c0_210] : memref<3x3x8x8xf32, #tpu.memory_space<vmem>>, vector<1x1x8x8xf32>
    %204 = vector.shape_cast %203 : vector<1x1x8x8xf32> to vector<8x8xf32>
    %cst_211 = arith.constant dense<0.000000e+00> : vector<128x8xf32>
    %205 = tpu.matmul %202, %204, %cst_211 {dimension_numbers = #tpu.dot_dimension_numbers<[1], [0], [0], [1], [0, 0, 1, 1], [], []>} : vector<128x8xf32>, vector<8x8xf32>, vector<128x8xf32> -> vector<128x8xf32>
    %206 = arith.addf %200, %205 : vector<128x8xf32>
    %207 = vector.extract_strided_slice %194 {offsets = [0, 0, 9, 0], sizes = [2, 8, 8, 8], strides = [1, 1, 1, 1]} : vector<2x8x24x8xf32> to vector<2x8x8x8xf32>
    %208 = vector.shape_cast %207 : vector<2x8x8x8xf32> to vector<128x8xf32>
    %c2_212 = arith.constant 2 : index
    %c2_213 = arith.constant 2 : index
    %c0_214 = arith.constant 0 : index
    %c0_215 = arith.constant 0 : index
    %209 = vector.load %arg5[%c2_212, %c2_213, %c0_214, %c0_215] : memref<3x3x8x8xf32, #tpu.memory_space<vmem>>, vector<1x1x8x8xf32>
    %210 = vector.shape_cast %209 : vector<1x1x8x8xf32> to vector<8x8xf32>
    %cst_216 = arith.constant dense<0.000000e+00> : vector<128x8xf32>
    %211 = tpu.matmul %208, %210, %cst_216 {dimension_numbers = #tpu.dot_dimension_numbers<[1], [0], [0], [1], [0, 0, 1, 1], [], []>} : vector<128x8xf32>, vector<8x8xf32>, vector<128x8xf32> -> vector<128x8xf32>
    %212 = arith.addf %206, %211 : vector<128x8xf32>
    %213 = vector.shape_cast %212 : vector<128x8xf32> to vector<2x64x8xf32>
    %cst_217 = arith.constant dense<0.000000e+00> : vector<2x8xf32>
    %214 = vector.multi_reduction <add>, %213, %cst_217 [1] : vector<2x64x8xf32> to vector<2x8xf32>
    %215 = vector.shape_cast %214 : vector<2x8xf32> to vector<2x1x8xf32>
    %216 = arith.mulf %213, %213 : vector<2x64x8xf32>
    %cst_218 = arith.constant dense<0.000000e+00> : vector<2x8xf32>
    %217 = vector.multi_reduction <add>, %216, %cst_218 [1] : vector<2x64x8xf32> to vector<2x8xf32>
    %218 = vector.shape_cast %217 : vector<2x8xf32> to vector<2x1x8xf32>
    %cst_219 = arith.constant 1.562500e-02 : f32
    %219 = vector.broadcast %cst_219 : f32 to vector<2x1x8xf32>
    %220 = arith.mulf %215, %219 : vector<2x1x8xf32>
    %cst_220 = arith.constant 1.562500e-02 : f32
    %221 = vector.broadcast %cst_220 : f32 to vector<2x1x8xf32>
    %222 = arith.mulf %218, %221 : vector<2x1x8xf32>
    %223 = arith.mulf %220, %220 : vector<2x1x8xf32>
    %224 = arith.subf %222, %223 : vector<2x1x8xf32>
    %cst_221 = arith.constant 0.000000e+00 : f32
    %225 = vector.broadcast %cst_221 : f32 to vector<2x1x8xf32>
    %226 = arith.maximumf %224, %225 : vector<2x1x8xf32>
    %227 = vector.broadcast %220 : vector<2x1x8xf32> to vector<2x64x8xf32>
    %228 = arith.subf %213, %227 : vector<2x64x8xf32>
    %cst_222 = arith.constant 9.99999974E-6 : f32
    %229 = vector.broadcast %cst_222 : f32 to vector<2x1x8xf32>
    %230 = arith.addf %226, %229 : vector<2x1x8xf32>
    %231 = math.rsqrt %230 : vector<2x1x8xf32>
    %232 = vector.broadcast %231 : vector<2x1x8xf32> to vector<2x64x8xf32>
    %233 = arith.mulf %228, %232 : vector<2x64x8xf32>
    %cst_223 = arith.constant 0.000000e+00 : f32
    %234 = vector.broadcast %cst_223 : f32 to vector<2x64x8xf32>
    %235 = arith.maximumf %233, %234 : vector<2x64x8xf32>
    %c0_224 = arith.constant 0 : index
    %c0_225 = arith.constant 0 : index
    %c0_226 = arith.constant 0 : index
    %236 = vector.load %arg6[%c0_224, %c0_225, %c0_226] : memref<2x64x8xf32, #tpu.memory_space<vmem>>, vector<2x64x8xf32>
    tpu.vector_store %arg6[%c0_224, %c0_225, %c0_226], %235 {strides = array<i32>} : memref<2x64x8xf32, #tpu.memory_space<vmem>>, vector<2x64x8xf32>,
    return
  }
  func.func @transform_0(%arg0: i32) -> (i32, i32, i32, i32) {
    %c0_i32 = arith.constant 0 : i32
    %c0_i32_0 = arith.constant 0 : i32
    %c0_i32_1 = arith.constant 0 : i32
    %c0_i32_2 = arith.constant 0 : i32
    %c0_i32_3 = arith.constant 0 : i32
    return %c0_i32, %c0_i32_0, %c0_i32_1, %c0_i32_2 : i32, i32, i32, i32
  }
  func.func @transform_1(%arg0: i32) -> (i32, i32, i32, i32) {
    %c0_i32 = arith.constant 0 : i32
    %c0_i32_0 = arith.constant 0 : i32
    %c0_i32_1 = arith.constant 0 : i32
    %c0_i32_2 = arith.constant 0 : i32
    %c0_i32_3 = arith.constant 0 : i32
    return %c0_i32, %c0_i32_0, %c0_i32_1, %c0_i32_2 : i32, i32, i32, i32
  }
  func.func @transform_2(%arg0: i32) -> (i32, i32) {
    %c0_i32 = arith.constant 0 : i32
    %c0_i32_0 = arith.constant 0 : i32
    %c0_i32_1 = arith.constant 0 : i32
    return %c0_i32, %c0_i32_0 : i32, i32
  }
  func.func @transform_3(%arg0: i32) -> (i32, i32, i32, i32) {
    %c0_i32 = arith.constant 0 : i32
    %c0_i32_0 = arith.constant 0 : i32
    %c0_i32_1 = arith.constant 0 : i32
    %c0_i32_2 = arith.constant 0 : i32
    %c0_i32_3 = arith.constant 0 : i32
    return %c0_i32, %c0_i32_0, %c0_i32_1, %c0_i32_2 : i32, i32, i32, i32
  }
  func.func @transform_4(%arg0: i32) -> (i32, i32, i32, i32) {
    %c0_i32 = arith.constant 0 : i32
    %c0_i32_0 = arith.constant 0 : i32
    %c0_i32_1 = arith.constant 0 : i32
    %c0_i32_2 = arith.constant 0 : i32
    %c0_i32_3 = arith.constant 0 : i32
    return %c0_i32, %c0_i32_0, %c0_i32_1, %c0_i32_2 : i32, i32, i32, i32
  }
  func.func @transform_5(%arg0: i32) -> (i32, i32, i32) {
    %c0_i32 = arith.constant 0 : i32
    %c0_i32_0 = arith.constant 0 : i32
    %c0_i32_1 = arith.constant 0 : i32
    %c0_i32_2 = arith.constant 0 : i32
    return %c0_i32, %c0_i32_0, %c0_i32_1 : i32, i32, i32
  }
}

</mosaic_0001>

<bundles_post_ra>
// kernel: down_block_forward.1
= control target key start
LH: loop header
LB: loop body
LE: loop exit
PB: predicated region body
PF: predicated region fallthrough
CT: control target
= control target key end

     0   :  { %vm109_vm0 = vcmask 1043456   ;;  %vm60_vm1 = vcmask 31744   ;;  %vm521_vm2 = vcmask 1046528   ;;  %vm2405_vm3 = vcmask 1040384   ;;  %s12580_s1 = inlined_call_operand.vmem [shape: f32[3,3,4,4], index: 1, kind: input, shape index: {}]   ;;  %s12581_s0 = inlined_call_operand.vmem [shape: f32[8,9,9,4], index: 0, kind: input, shape index: {}]   ;;  %s12582_s3 = inlined_call_operand.vmem [shape: f32[3,3,4,8], index: 3, kind: input, shape index: {}]   ;;  %s12583_s2 = inlined_call_operand.vmem [shape: f32[1,4], index: 2, kind: input, shape index: {}]   ;;  %s12584_s4 = inlined_call_operand.vmem [shape: f32[3,3,8,8], index: 4, kind: input, shape index: {}]   ;;  %s12585_s5 = inlined_call_operand.vmem [shape: f32[2,64,8], index: 5, kind: output, shape index: {}]  }
   0x1   :  { %v59_v0 = vld [vmem:[%s12580_s1] sm:$0xf]  ;;  %v9169_v1 = vld [vmem:[%s12581_s0 + $0x90] sm:$0xff]  ;;  %v7407_v4 = vld [vmem:[%s12580_s1 + $0x4] sm:$0xf]  ;;  %vm4652_vm4 = vcmask 64512  }
   0x2   :  { %v27_v2 = vld [vmem:[%s12581_s0] sm:$0xff]  ;;  %9121 = vmatprep.subr.msk.mxu1 %vm109_vm0, %v59_v0  ;;  %8419 = vmatprep.subr.msk.mxu0 %vm109_vm0, %v59_v0  ;;  %v9190_v5 = vld [vmem:[%s12581_s0 + $0x10] sm:$0xff]  ;;  %v7425_v6 = vld [vmem:[%s12580_s1 + $0x8] sm:$0xf]  ;;  %v546_v61 = vrot.slane %v9169_v1, 1 }
   0x3   :  { %v9179_v3 = vld [vmem:[%s12581_s0 + $0xa0] sm:$0xff]  ;;  %9122 = vmatpush3.msk.msra.mxu1 %vm109_vm0, %v59_v0  ;;  %8433 = vmatprep.mubr.msk.f32.mxu1 %vm60_vm1, %v9169_v1  ;;  %v9200_v7 = vld [vmem:[%s12581_s0 + $0xb0] sm:$0xff]  ;;  %v7475_v13 = vld [vmem:[%s12580_s1 + $0xc] sm:$0xf]  ;;  %v522_v19 = vrot.slane %v27_v2, 1  ;;  %v525_v25 = vrot.slane %v9190_v5, 1 }
   0x4   :  { %8420 = vmatpush3.msk.msra.mxu0 %vm109_vm0, %v59_v0  ;;  %8421 = vmatprep.mubr.msk.f32.mxu0 %vm60_vm1, %v27_v2  ;;  %v9208_v8 = vld [vmem:[%s12581_s0 + $0x20] sm:$0xff]  ;;  %v9224_v10 = vld [vmem:[%s12581_s0 + $0x30] sm:$0xff]  ;;  %v28_v14 = vld [vmem:[%s12581_s0 + $0x8] sm:$0x1] }
   0x5   :  { %8434 = vmatmul.mubr.msk.f32.vlgmr.msra.gmra.mxu1 %vm60_vm1, %v9179_v3  ;;  %8445 = vmatprep.subr.msk.mxu1 %vm109_vm0, %v7407_v4  ;;  %v9216_v9 = vld [vmem:[%s12581_s0 + $0xc0] sm:$0xff]  ;;  %v9229_v11 = vld [vmem:[%s12581_s0 + $0xd0] sm:$0xff]  ;;  %v523_v21 = vrot.slane %v28_v14, 1  ;;  %v30_v22 = vld [vmem:[%s12581_s0 + $0x18] sm:$0x1]  ;;  %v528_v31 = vrot.slane %v9208_v8, 1 }
   0x6   :  { %8422 = vmatmul.mubr.msk.f32.vlgmr.msra.gmra.mxu0 %vm60_vm1, %v9190_v5  ;;  %8446 = vmatpush3.msk.msra.mxu1 %vm109_vm0, %v7407_v4  ;;  %v9237_v12 = vld [vmem:[%s12581_s0 + $0x40] sm:$0xff]  ;;  %v7509_v15 = vld [vmem:[%s12580_s1 + $0x10] sm:$0xf]  ;;  %v32_v24 = vld [vmem:[%s12581_s0 + $0x28] sm:$0x1]  ;;  %v526_v28 = vrot.slane %v30_v22, 1 }
   0x7   :  { %8471 = vmatprep.subr.msk.mxu0 %vm109_vm0, %v7425_v6  ;;  %8436 = vmatprep.mubr.msk.f32.mxu1 %vm60_vm1, %v9200_v7  ;;  %v9258_v16 = vld [vmem:[%s12581_s0 + $0xe0] sm:$0xff]  ;;  %v9265_v17 = vld [vmem:[%s12581_s0 + $0x50] sm:$0xff]  ;;  %v524_v29 = vsel %vm521_vm2, %v522_v19, %v523_v21  ;;  %v34_v30 = vld [vmem:[%s12581_s0 + $0x38] sm:$0x1]  ;;  %v529_v32 = vrot.slane %v32_v24, 1  ;;  %v531_v35 = vrot.slane %v9224_v10, 1 }
   0x8   :  { %8472 = vmatpush3.msk.msra.mxu0 %vm109_vm0, %v7425_v6  ;;  %8424 = vmatprep.mubr.msk.f32.mxu0 %vm60_vm1, %v9208_v8  ;;  %v9270_v18 = vld [vmem:[%s12581_s0 + $0xf0] sm:$0xff]  ;;  %v9276_v20 = vld [vmem:[%s12581_s0 + $0x60] sm:$0xff]  ;;  %v36_v33 = vld [vmem:[%s12581_s0 + $0x48] sm:$0x1]  ;;  %v527_v36 = vsel %vm521_vm2, %v525_v25, %v526_v28  ;;  %v532_v37 = vrot.slane %v34_v30, 1  ;;  %v534_v38 = vrot.slane %v9237_v12, 1 }
   0x9   :  { %8437 = vmatmul.mubr.msk.f32.gmra.mxu1 %vm60_vm1, %v9216_v9  ;;  %8497 = vmatprep.subr.msk.mxu1 %vm109_vm0, %v7475_v13  ;;  %v9290_v23 = vld [vmem:[%s12581_s0 + $0x100] sm:$0xff]  ;;  %v9301_v26 = vld [vmem:[%s12581_s0 + $0x70] sm:$0xff]  ;;  %v535_v40 = vrot.slane %v36_v33, 1  ;;  %v38_v41 = vld [vmem:[%s12581_s0 + $0x58] sm:$0x1]  ;;  %v530_v42 = vsel %vm521_vm2, %v528_v31, %v529_v32  ;;  %v537_v47 = vrot.slane %v9265_v17, 1 }
   0xa   :  { %8425 = vmatmul.mubr.msk.f32.gmra.mxu0 %vm60_vm1, %v9224_v10  ;;  %8439 = vmatprep.mubr.msk.f32.mxu1 %vm60_vm1, %v9229_v11  ;;  %v7391_v27 = vld [vmem:[%s12581_s0 + $0x120] sm:$0xff]  ;;  %v9322_v34 = vld [vmem:[%s12581_s0 + $0x130] sm:$0xff]  ;;  %v40_v43 = vld [vmem:[%s12581_s0 + $0x68] sm:$0x1]  ;;  %v533_v48 = vsel %vm521_vm2, %v531_v35, %v532_v37  ;;  %v538_v50 = vrot.slane %v38_v41, 1  ;;  %v540_v51 = vrot.slane %v9276_v20, 1 }
   0xb   :  { %8427 = vmatprep.mubr.msk.f32.mxu0 %vm60_vm1, %v9237_v12  ;;  %8523 = vmatprep.subr.msk.mxu0 %vm109_vm0, %v7509_v15  ;;  %v9333_v39 = vld [vmem:[%s12581_s0 + $0x140] sm:$0xff]  ;;  %v9349_v44 = vld [vmem:[%s12580_s1 + $0x14] sm:$0xf]  ;;  %v9361_v46 = vld [vmem:[%s12580_s1 + $0x18] sm:$0xf]  ;;  %v536_v52 = vsel %vm521_vm2, %v534_v38, %v535_v40  ;;  %v541_v53 = vrot.slane %v40_v43, 1 }
   0xc   :  { %v9356_v45 = vld [vmem:[%s12581_s0 + $0x150] sm:$0xff]  ;;  %v9373_v49 = vld [vmem:[%s12581_s0 + $0x160] sm:$0xff]  ;;  %v42_v54 = vld [vmem:[%s12581_s0 + $0x78] sm:$0x1]  ;;  %v543_v57 = vrot.slane %v9301_v26, 1  ;;  %v539_v58 = vsel %vm521_vm2, %v537_v47, %v538_v50  ;;  %v549_v4 = vrot.slane %v9179_v3, 1 }
   0xd   :  { %8440 = vmatmul.mubr.msk.f32.gmra.mxu1 %vm60_vm1, %v9258_v16  ;;  %v44_v55 = vld [vmem:[%s12581_s0 + $0x98] sm:$0x1]  ;;  %v9398_v56 = vld [vmem:[%s12581_s0 + $0x170] sm:$0xff]  ;;  %v9408_v59 = vld [vmem:[%s12581_s0 + $0x180] sm:$0xff]  ;;  %v544_v60 = vrot.slane %v42_v54, 1  ;;  %v542_v62 = vsel %vm521_vm2, %v540_v51, %v541_v53  ;;  %v555_v28 = vrot.slane %v9216_v9, 1 }
   0xe   :  { %8428 = vmatmul.mubr.msk.f32.gmra.mxu0 %vm60_vm1, %v9265_v17  ;;  %8442 = vmatprep.mubr.msk.f32.mxu1 %vm60_vm1, %v9270_v18  ;;  %v547_v63 = vrot.slane %v44_v55, 1  ;;  %v46_v0 = vld [vmem:[%s12581_s0 + $0xa8] sm:$0x1]  ;;  %v48_v2 = vld [vmem:[%s12581_s0 + $0xb8] sm:$0x1]  ;;  %v9428_v1 = vld [vmem:[%s12581_s0 + $0x190] sm:$0xff] }
   0xf   :  { %8430 = vmatprep.mubr.msk.f32.mxu0 %vm60_vm1, %v9276_v20  ;;  %v545_v6 = vsel %vm521_vm2, %v543_v57, %v544_v60  ;;  %v550_v14 = vrot.slane %v46_v0, 1  ;;  %v553_v21 = vrot.slane %v48_v2, 1  ;;  %v50_v22 = vld [vmem:[%s12581_s0 + $0xc8] sm:$0x1]  ;;  %v52_v24 = vld [vmem:[%s12581_s0 + $0xd8] sm:$0x1] }
  0x10   :  { %v548_v19 = vsel %vm521_vm2, %v546_v61, %v547_v63  ;;  %v9463_v30 = vld [vmem:[%s12581_s0 + $0x1d0] sm:$0xff]  ;;  %v556_v32 = vrot.slane %v50_v22, 1  ;;  %v54_v33 = vld [vmem:[%s12581_s0 + $0xe8] sm:$0x1]  ;;  %v559_v40 = vrot.slane %v52_v24, 1  ;;  %v9484_v43 = vld [vmem:[%s12581_s0 + $0x1e0] sm:$0xff] }
  0x11   :  { %8443 = vmatmul.mubr.msk.f32.gmra.mxu1 %vm60_vm1, %v9290_v23  ;;  %v56_v41 = vld [vmem:[%s12581_s0 + $0xf8] sm:$0x1]  ;;  %v564_v50 = vrot.slane %v9270_v18, 1  ;;  %v9494_v53 = vld [vmem:[%s12581_s0 + $0x1f0] sm:$0xff]  ;;  %v58_v54 = vld [vmem:[%s12581_s0 + $0x108] sm:$0x1] }
  0x12   :  { %8431 = vmatmul.mubr.msk.f32.gmra.mxu0 %vm60_vm1, %v9301_v26  ;;  %8447 = vmatprep.mubr.msk.f32.mxu1 %vm60_vm1, %v7391_v27  ;;  %v9453_v27 = vld [vmem:[%s12581_s0 + $0x1c0] sm:$0xff]  ;;  %12598 = vst [vmem:[#allocation4_spill] sm:$0xff] %v9494_v53  ;;  %v7546_v55 = vld [vmem:[%s12581_s0 + $0x18] sm:$0x1]  ;;  %v565_v61 = vrot.slane %v56_v41, 1 }
  0x13   :  { %8473 = vmatprep.mubr.msk.f32.mxu0 %vm60_vm1, %v524_v29  ;;  %v551_v29 = vsel %vm521_vm2, %v549_v4, %v550_v14  ;;  %v7548_v63 = vld [vmem:[%s12581_s0 + $0x28] sm:$0x1]  ;;  %v9514_v0 = vld [vmem:[%s12581_s0 + $0x200] sm:$0xff]  ;;  %v7554_v24 = vld [vmem:[%s12581_s0 + $0x58] sm:$0x1] }
  0x14   :  { %12599 = vst [vmem:[#allocation5_spill] sm:$0xff] %v9514_v0  ;;  %v2006_v2 = vrot.slane %v7548_v63, 1  ;;  %v7558_v41 = vld [vmem:[%s12581_s0 + $0x78] sm:$0x1] }
  0x15   :  { %8448 = vmatmul.mubr.msk.f32.vlgmr.msra.gmra.mxu1 %vm60_vm1, %v9322_v34 }
  0x16   :  { %8474 = vmatmul.mubr.msk.f32.vlgmr.msra.gmra.mxu0 %vm60_vm1, %v527_v36  ;;  %8498 = vmatpush3.msk.msra.mxu1 %vm109_vm0, %v7475_v13  ;;  %v7399_v13 = vld [vmem:[%s12581_s0 + $0x1b0] sm:$0xff]  ;;  %v558_v36 = vrot.slane %v9229_v11, 1 }
  0x17   :  { %8450 = vmatprep.mubr.msk.f32.mxu1 %vm60_vm1, %v9333_v39  ;;  %8524 = vmatpush3.msk.msra.mxu0 %vm109_vm0, %v7509_v15  ;;  %v552_v15 = vrot.slane %v9200_v7, 1 }
  0x18   :  { %8476 = vmatprep.mubr.msk.f32.mxu0 %vm60_vm1, %v530_v42  ;;  %8549 = vmatprep.subr.msk.mxu1 %vm109_vm0, %v9349_v44  ;;  %v561_v42 = vrot.slane %v9258_v16, 1  ;;  %v560_v60 = vsel %vm521_vm2, %v558_v36, %v559_v40 }
  0x19   :  { %8451 = vmatmul.mubr.msk.f32.gmra.mxu1 %vm60_vm1, %v9356_v45  ;;  %8575 = vmatprep.subr.msk.mxu0 %vm109_vm0, %v9361_v46  ;;  %v554_v37 = vsel %vm521_vm2, %v552_v15, %v553_v21 }
  0x1a   :  { %8477 = vmatmul.mubr.msk.f32.gmra.mxu0 %vm60_vm1, %v533_v48  ;;  %8453 = vmatprep.mubr.msk.f32.mxu1 %vm60_vm1, %v9373_v49  ;;  %v562_v48 = vrot.slane %v54_v33, 1 }
  0x1b   :  { %8479 = vmatprep.mubr.msk.f32.mxu0 %vm60_vm1, %v536_v52  ;;  %v557_v52 = vsel %vm521_vm2, %v555_v28, %v556_v32  ;;  %v9543_v32 = vld [vmem:[%s12581_s0 + $0x210] sm:$0xff] }
  0x1c   :  { %v563_v14 = vsel %vm521_vm2, %v561_v42, %v562_v48  ;;  %12600 = vst [vmem:[#allocation6_spill] sm:$0xff] %v9543_v32  ;;  %v566_v48 = vsel %vm521_vm2, %v564_v50, %v565_v61  ;;  %v7564_v61 = vld [vmem:[%s12581_s0 + $0xb8] sm:$0x1] }
  0x1d   :  { %8454 = vmatmul.mubr.msk.f32.gmra.mxu1 %vm60_vm1, %v9398_v56  ;;  %v2030_v63 = vrot.slane %v7564_v61, 1 }
  0x1e   :  { %8480 = vmatmul.mubr.msk.f32.gmra.mxu0 %vm60_vm1, %v539_v58  ;;  %8456 = vmatprep.mubr.msk.f32.mxu1 %vm60_vm1, %v9408_v59  ;;  %v567_v58 = vrot.slane %v9290_v23, 1 }
  0x1f   :  { %8482 = vmatprep.mubr.msk.f32.mxu0 %vm60_vm1, %v542_v62  ;;  %v2003_v62 = vrot.slane %v7546_v55, 1 }
  0x21   :  { %8457 = vmatmul.mubr.msk.f32.gmra.mxu1 %vm60_vm1, %v9428_v1  ;;  %v9531_v21 = vsel %vm521_vm2, %v525_v25, %v2003_v62  ;;  %v9548_v25 = vsel %vm521_vm2, %v528_v31, %v2006_v2  ;;  %v7562_v31 = vld [vmem:[%s12581_s0 + $0xa8] sm:$0x1] }
  0x22   :  { %8483 = vmatmul.mubr.msk.f32.gmra.mxu0 %vm60_vm1, %v545_v6  ;;  %8459 = vmatprep.mubr.msk.f32.mxu1 %vm60_vm1, %v7399_v13  ;;  %v7550_v6 = vld [vmem:[%s12581_s0 + $0x38] sm:$0x1]  ;;  %v7552_v13 = vld [vmem:[%s12581_s0 + $0x48] sm:$0x1] }
  0x23   :  { %8485 = vmatprep.mubr.msk.f32.mxu0 %vm60_vm1, %v548_v19  ;;  %v568_v19 = vrot.slane %v58_v54, 1  ;;  %v2009_v22 = vrot.slane %v7550_v6, 1  ;;  %v2012_v33 = vrot.slane %v7552_v13, 1  ;;  %v2021_v54 = vrot.slane %v7558_v41, 1  ;;  %v7566_v62 = vld [vmem:[%s12581_s0 + $0xc8] sm:$0x1] }
  0x24   :  { %v2033_v2 = vrot.slane %v7566_v62, 1  ;;  %v7568_v6 = vld [vmem:[%s12581_s0 + $0xd8] sm:$0x1]  ;;  %v7574_v41 = vld [vmem:[%s12581_s0 + $0x108] sm:$0x1]  ;;  %v7495_v62 = vld [vmem:[%s12581_s0 + $0x380] sm:$0xff] }
  0x25   :  { %8460 = vmatmul.mubr.msk.f32.gmra.mxu1 %vm60_vm1, %v9453_v27  ;;  %v9569_v55 = vsel %vm521_vm2, %v534_v38, %v2012_v33  ;;  %v9593_v38 = vld [vmem:[%s12581_s0 + $0x220] sm:$0xff]  ;;  %v569_v13 = vsel %vm521_vm2, %v567_v58, %v568_v19  ;;  %v9629_v33 = vsel %vm521_vm2, %v552_v15, %v2030_v63 }
  0x26   :  { %8486 = vmatmul.mubr.msk.f32.gmra.mxu0 %vm60_vm1, %v551_v29  ;;  %8462 = vmatprep.mubr.msk.f32.mxu1 %vm60_vm1, %v9463_v30  ;;  %v7556_v29 = vld [vmem:[%s12581_s0 + $0x68] sm:$0x1]  ;;  %12601 = vst [vmem:[#allocation7_spill] sm:$0xff] %v9593_v38  ;;  %v9711_v63 = vld [vmem:[%s12581_s0 + $0x280] sm:$0xff] }
  0x27   :  { %8488 = vmatprep.mubr.msk.f32.mxu0 %vm60_vm1, %v554_v37  ;;  %v2015_v37 = vrot.slane %v7554_v24, 1  ;;  %v2018_v40 = vrot.slane %v7556_v29, 1  ;;  %v7572_v24 = vld [vmem:[%s12581_s0 + $0xf8] sm:$0x1]  ;;  %v7493_v29 = vld [vmem:[%s12581_s0 + $0x360] sm:$0xff] }
  0x28   :  { %v2042_v15 = vrot.slane %v7572_v24, 1  ;;  %v7500_v24 = vld [vmem:[%s12581_s0 + $0x3d0] sm:$0xff] }
  0x29   :  { %8463 = vmatmul.mubr.msk.f32.gmra.mxu1 %vm60_vm1, %v9484_v43 }
  0x2a   :  { %8489 = vmatmul.mubr.msk.f32.gmra.mxu0 %vm60_vm1, %v557_v52  ;;  %8465 = vmatprep.mubr.msk.f32.mxu1 %vm60_vm1, %v9494_v53  ;;  %v9559_v52 = vsel %vm521_vm2, %v531_v35, %v2009_v22  ;;  %v9579_v35 = vsel %vm521_vm2, %v540_v51, %v2018_v40  ;;  %v2027_v51 = vrot.slane %v7562_v31, 1  ;;  %v7570_v22 = vld [vmem:[%s12581_s0 + $0xe8] sm:$0x1]  ;;  %v9666_v31 = vsel %vm521_vm2, %v564_v50, %v2042_v15  ;;  %v9686_v50 = vld [vmem:[%s12580_s1 + $0x1c] sm:$0xf]  ;;  %v7502_v15 = vld [vmem:[%s12581_s0 + $0x400] sm:$0xff] }
  0x2b   :  { %8491 = vmatprep.mubr.msk.f32.mxu0 %vm60_vm1, %v560_v60  ;;  %v9574_v60 = vsel %vm521_vm2, %v537_v47, %v2015_v37  ;;  %v9598_v47 = vsel %vm521_vm2, %v543_v57, %v2021_v54  ;;  %v2036_v57 = vrot.slane %v7568_v6, 1  ;;  %v9634_v37 = vsel %vm521_vm2, %v555_v28, %v2033_v2  ;;  %v9652_v28 = vld [vmem:[%s12581_s0 + $0x250] sm:$0xff]  ;;  %12604 = vst [vmem:[#allocation10_spill] sm:$0xff] %v9666_v31  ;;  %v7497_v2 = vld [vmem:[%s12581_s0 + $0x3a0] sm:$0xff] }
  0x2c   :  { %v9624_v19 = vsel %vm521_vm2, %v549_v4, %v2027_v51  ;;  %v2039_v40 = vrot.slane %v7570_v22, 1  ;;  %v9699_v51 = vld [vmem:[%s12580_s1 + $0x20] sm:$0xf]  ;;  %v7498_v6 = vld [vmem:[%s12581_s0 + $0x3b0] sm:$0xff] }
  0x2d   :  { %8466 = vmatmul.mubr.msk.f32.gmra.mxu1 %vm60_vm1, %v9514_v0  ;;  %v9644_v4 = vsel %vm521_vm2, %v558_v36, %v2036_v57  ;;  %v7494_v36 = vld [vmem:[%s12581_s0 + $0x370] sm:$0xff]  ;;  %v7499_v57 = vld [vmem:[%s12581_s0 + $0x3c0] sm:$0xff] }
  0x2e   :  { %8492 = vmatmul.mubr.msk.f32.gmra.mxu0 %vm60_vm1, %v563_v14  ;;  %8468 = vmatprep.mubr.msk.f32.mxu1 %vm60_vm1, %v9543_v32  ;;  %v9610_v14 = vld [vmem:[%s12581_s0 + $0x240] sm:$0xff]  ;;  %12602 = vst [vmem:[#allocation8_spill] sm:$0xff] %v9644_v4  ;;  %v9657_v54 = vsel %vm521_vm2, %v561_v42, %v2039_v40  ;;  %v9751_v22 = vld [vmem:[%s12581_s0 + $0x2b0] sm:$0xff]  ;;  %v7452_v4 = vld [vmem:[%s12581_s0 + $0x288] sm:$0x1] }
  0x2f   :  { %8494 = vmatprep.mubr.msk.f32.mxu0 %vm60_vm1, %v566_v48  ;;  %v2045_v48 = vrot.slane %v7574_v41, 1  ;;  %12603 = vst [vmem:[#allocation9_spill] sm:$0xff] %v9657_v54  ;;  %v9676_v42 = vld [vmem:[%s12581_s0 + $0x260] sm:$0xff]  ;;  %v7501_v40 = vld [vmem:[%s12581_s0 + $0x3f0] sm:$0xff] }
  0x30   :  { %v9773_v41 = vld [vmem:[%s12581_s0 + $0x2e0] sm:$0xff] }
  0x31   :  { %8469 = vmatmul.mubr.msk.f32.gmra.mxu1 %vm60_vm1, %v9593_v38  ;;  %v9671_v61 = vsel %vm521_vm2, %v567_v58, %v2045_v48  ;;  %v9694_v58 = vld [vmem:[%s12581_s0 + $0x270] sm:$0xff]  ;;  %v1265_v38 = vrot.slane %v9652_v28, 1  ;;  %v7508_v32 = vld [vmem:[%s12581_s0 + $0x460] sm:$0xff] }
  0x32   :  { %8495 = vmatmul.mubr.msk.f32.gmra.mxu0 %vm60_vm1, %v569_v13  ;;  %8499 = vmatprep.mubr.msk.f32.mxu1 %vm60_vm1, %v9610_v14  ;;  %12605 = vst [vmem:[#allocation11_spill] sm:$0xff] %v9671_v61  ;;  %v9738_v13 = vld [vmem:[%s12581_s0 + $0x2a0] sm:$0xff]  ;;  %v9782_v48 = vld [vmem:[%s12581_s0 + $0x2f0] sm:$0xff]  ;;  %v7446_v61 = vld [vmem:[%s12581_s0 + $0x258] sm:$0x1] }
  0x33   :  { %8525 = vmatprep.mubr.msk.f32.mxu0 %vm60_vm1, %v7493_v29  ;;  %v9760_v29 = vld [vmem:[%s12581_s0 + $0x2d0] sm:$0xff]  ;;  %v1266_v31 = vrot.slane %v7446_v61, 1  ;;  %v1271_v61 = vrot.slane %v9694_v58, 1 }
  0x35   :  { %8500 = vmatmul.mubr.msk.f32.vlgmr.msra.gmra.mxu1 %vm60_vm1, %v9652_v28  ;;  %v7450_v28 = vld [vmem:[%s12581_s0 + $0x278] sm:$0x1] }
  0x36   :  { %8526 = vmatmul.mubr.msk.f32.vlgmr.msra.gmra.mxu0 %vm60_vm1, %v7494_v36  ;;  %8550 = vmatpush3.msk.msra.mxu1 %vm109_vm0, %v9349_v44  ;;  %v7496_v44 = vld [vmem:[%s12581_s0 + $0x390] sm:$0xff] }
  0x37   :  { %8502 = vmatprep.mubr.msk.f32.mxu1 %vm60_vm1, %v9676_v42  ;;  %8576 = vmatpush3.msk.msra.mxu0 %vm109_vm0, %v9361_v46  ;;  %v9729_v46 = vld [vmem:[%s12581_s0 + $0x290] sm:$0xff] }
  0x38   :  { %8528 = vmatprep.mubr.msk.f32.mxu0 %vm60_vm1, %v7495_v62  ;;  %8601 = vmatprep.subr.msk.mxu1 %vm109_vm0, %v9686_v50  ;;  %v7503_v36 = vld [vmem:[%s12581_s0 + $0x410] sm:$0xff]  ;;  %v9795_v62 = vld [vmem:[%s12581_s0 + $0x300] sm:$0xff] }
  0x39   :  { %8503 = vmatmul.mubr.msk.f32.gmra.mxu1 %vm60_vm1, %v9694_v58  ;;  %8627 = vmatprep.subr.msk.mxu0 %vm109_vm0, %v9699_v51 }
  0x3a   :  { %8529 = vmatmul.mubr.msk.f32.gmra.mxu0 %vm60_vm1, %v7496_v44  ;;  %8505 = vmatprep.mubr.msk.f32.mxu1 %vm60_vm1, %v9711_v63  ;;  %v7504_v44 = vld [vmem:[%s12581_s0 + $0x420] sm:$0xff] }
  0x3b   :  { %8531 = vmatprep.mubr.msk.f32.mxu0 %vm60_vm1, %v7497_v2  ;;  %v9804_v2 = vld [vmem:[%s12581_s0 + $0x310] sm:$0xff] }
  0x3d   :  { %8506 = vmatmul.mubr.msk.f32.gmra.mxu1 %vm60_vm1, %v9729_v46 }
  0x3e   :  { %8532 = vmatmul.mubr.msk.f32.gmra.mxu0 %vm60_vm1, %v7498_v6  ;;  %8508 = vmatprep.mubr.msk.f32.mxu1 %vm60_vm1, %v9738_v13  ;;  %v7505_v6 = vld [vmem:[%s12581_s0 + $0x430] sm:$0xff] }
  0x3f   :  { %8534 = vmatprep.mubr.msk.f32.mxu0 %vm60_vm1, %v7499_v57  ;;  %v7444_v57 = vld [vmem:[%s12581_s0 + $0x248] sm:$0x1] }
  0x41   :  { %8509 = vmatmul.mubr.msk.f32.gmra.mxu1 %vm60_vm1, %v9751_v22 }
  0x42   :  { %8535 = vmatmul.mubr.msk.f32.gmra.mxu0 %vm60_vm1, %v7500_v24  ;;  %8511 = vmatprep.mubr.msk.f32.mxu1 %vm60_vm1, %v9760_v29  ;;  %v9820_v24 = vld [vmem:[%s12581_s0 + $0x320] sm:$0xff] }
  0x43   :  { %8537 = vmatprep.mubr.msk.f32.mxu0 %vm60_vm1, %v7501_v40  ;;  %v1262_v40 = vrot.slane %v9610_v14, 1  ;;  %v7507_v14 = vld [vmem:[%s12581_s0 + $0x450] sm:$0xff] }
  0x45   :  { %8512 = vmatmul.mubr.msk.f32.gmra.mxu1 %vm60_vm1, %v9773_v41 }
  0x46   :  { %8538 = vmatmul.mubr.msk.f32.gmra.mxu0 %vm60_vm1, %v7502_v15  ;;  %8514 = vmatprep.mubr.msk.f32.mxu1 %vm60_vm1, %v9782_v48  ;;  %v7506_v15 = vld [vmem:[%s12581_s0 + $0x440] sm:$0xff] }
  0x47   :  { %8540 = vmatprep.mubr.msk.f32.mxu0 %vm60_vm1, %v7503_v36  ;;  %v9830_v36 = vld [vmem:[%s12581_s0 + $0x330] sm:$0xff] }
  0x49   :  { %8515 = vmatmul.mubr.msk.f32.gmra.mxu1 %vm60_vm1, %v9795_v62 }
  0x4a   :  { %8541 = vmatmul.mubr.msk.f32.gmra.mxu0 %vm60_vm1, %v7504_v44  ;;  %8517 = vmatprep.mubr.msk.f32.mxu1 %vm60_vm1, %v9804_v2  ;;  %v1263_v44 = vrot.slane %v7444_v57, 1  ;;  %v9850_v57 = vld [vmem:[%s12581_s0 + $0x340] sm:$0xff] }
  0x4b   :  { %8543 = vmatprep.mubr.msk.f32.mxu0 %vm60_vm1, %v7505_v6  ;;  %v7448_v6 = vld [vmem:[%s12581_s0 + $0x268] sm:$0x1] }
  0x4c   :  { %v1264_v54 = vsel %vm521_vm2, %v1262_v40, %v1263_v44  ;;  %v1269_v0 = vrot.slane %v7448_v6, 1  ;;  %v1267_v40 = vsel %vm521_vm2, %v1265_v38, %v1266_v31  ;;  %v1272_v44 = vrot.slane %v7450_v28, 1  ;;  %v7454_v6 = vld [vmem:[%s12581_s0 + $0x298] sm:$0x1] }
  0x4d   :  { %8518 = vmatmul.mubr.msk.f32.gmra.mxu1 %vm60_vm1, %v9820_v24  ;;  %v1277_v38 = vrot.slane %v9729_v46, 1  ;;  %v1292_v28 = vrot.slane %v9782_v48, 1 }
  0x4e   :  { %8544 = vmatmul.mubr.msk.f32.gmra.mxu0 %vm60_vm1, %v7506_v15  ;;  %8520 = vmatprep.mubr.msk.f32.mxu1 %vm60_vm1, %v9830_v36  ;;  %v1268_v15 = vrot.slane %v9676_v42, 1  ;;  %v1275_v42 = vrot.slane %v7452_v4, 1  ;;  %v1278_v4 = vrot.slane %v7454_v6, 1 }
  0x4f   :  { %8546 = vmatprep.mubr.msk.f32.mxu0 %vm60_vm1, %v7507_v14  ;;  %v1274_v14 = vrot.slane %v9711_v63, 1  ;;  %v1286_v63 = vrot.slane %v9760_v29, 1 }
  0x50   :  { %v1270_v53 = vsel %vm521_vm2, %v1268_v15, %v1269_v0  ;;  %v1279_v58 = vsel %vm521_vm2, %v1277_v38, %v1278_v4  ;;  %v9928_v15 = vld [vmem:[%s12581_s0 + $0x80] sm:$0xff]  ;;  %v1301_v38 = vrot.slane %v9820_v24, 1  ;;  %v7474_v24 = vld [vmem:[%s12581_s0 + $0x348] sm:$0x1] }
  0x51   :  { %8521 = vmatmul.mubr.msk.f32.gmra.mxu1 %vm60_vm1, %v9850_v57  ;;  %v1276_v0 = vsel %vm521_vm2, %v1274_v14, %v1275_v42  ;;  %v1298_v14 = vrot.slane %v9804_v2, 1 }
  0x52   :  { %8547 = vmatmul.mubr.msk.f32.gmra.mxu0 %vm60_vm1, %v7508_v32  ;;  %8551 = vmatprep.mubr.msk.f32.mxu1 %vm60_vm1, %v1264_v54  ;;  %v7456_v32 = vld [vmem:[%s12581_s0 + $0x2a8] sm:$0x1]  ;;  %v1280_v54 = vrot.slane %v9738_v13, 1 }
  0x53   :  { %8577 = vmatprep.mubr.msk.f32.mxu0 %vm60_vm1, %v9190_v5  ;;  %v1273_v5 = vsel %vm521_vm2, %v1271_v61, %v1272_v44  ;;  %v1281_v31 = vrot.slane %v7456_v32, 1  ;;  %v7462_v13 = vld [vmem:[%s12581_s0 + $0x2e8] sm:$0x1]  ;;  %v7472_v32 = vld [vmem:[%s12581_s0 + $0x338] sm:$0x1] }
  0x54   :  { %v1290_v29 = vrot.slane %v7462_v13, 1 }
  0x55   :  { %8552 = vmatmul.mubr.msk.f32.vlgmr.msra.gmra.mxu1 %vm60_vm1, %v1267_v40  ;;  %v7468_v40 = vld [vmem:[%s12581_s0 + $0x318] sm:$0x1] }
  0x56   :  { %8578 = vmatmul.mubr.msk.f32.vlgmr.msra.gmra.mxu0 %vm60_vm1, %v9208_v8  ;;  %8602 = vmatpush3.msk.msra.mxu1 %vm109_vm0, %v9686_v50  ;;  %v7458_v8 = vld [vmem:[%s12581_s0 + $0x2b8] sm:$0x1]  ;;  %v1299_v6 = vrot.slane %v7468_v40, 1 }
  0x57   :  { %8554 = vmatprep.mubr.msk.f32.mxu1 %vm60_vm1, %v1270_v53  ;;  %8628 = vmatpush3.msk.msra.mxu0 %vm109_vm0, %v9699_v51  ;;  %v7460_v50 = vld [vmem:[%s12581_s0 + $0x2d8] sm:$0x1]  ;;  %v1283_v53 = vrot.slane %v9751_v22, 1  ;;  %v1284_v51 = vrot.slane %v7458_v8, 1  ;;  %v1289_v22 = vrot.slane %v9773_v41, 1 }
  0x58   :  { %8580 = vmatprep.mubr.msk.f32.mxu0 %vm60_vm1, %v9224_v10  ;;  %v1282_v10 = vsel %vm521_vm2, %v1280_v54, %v1281_v31  ;;  %v1287_v46 = vrot.slane %v7460_v50, 1  ;;  %v1300_v4 = vsel %vm521_vm2, %v1298_v14, %v1299_v6  ;;  %v1305_v54 = vrot.slane %v7472_v32, 1  ;;  %v2454_v50 = vld [vmem:[%s12582_s3] sm:$0xf] }
  0x59   :  { %8555 = vmatmul.mubr.msk.f32.gmra.mxu1 %vm60_vm1, %v1273_v5  ;;  %v1291_v48 = vsel %vm521_vm2, %v1289_v22, %v1290_v29  ;;  %v1304_v5 = vrot.slane %v9830_v36, 1  ;;  %8679 = vmatprep.subr.msk.mxu0 %vm109_vm0, %v2454_v50 }
  0x5a   :  { %8581 = vmatmul.mubr.msk.f32.gmra.mxu0 %vm60_vm1, %v9237_v12  ;;  %8557 = vmatprep.mubr.msk.f32.mxu1 %vm60_vm1, %v1276_v0  ;;  %v7464_v12 = vld [vmem:[%s12581_s0 + $0x2f8] sm:$0x1]  ;;  %v1288_v41 = vsel %vm521_vm2, %v1286_v63, %v1287_v46  ;;  %v1308_v0 = vrot.slane %v7474_v24, 1 }
  0x5b   :  { %8583 = vmatprep.mubr.msk.f32.mxu0 %vm60_vm1, %v9265_v17  ;;  %v1285_v17 = vsel %vm521_vm2, %v1283_v53, %v1284_v51  ;;  %v1293_v61 = vrot.slane %v7464_v12, 1 }
  0x5d   :  { %8558 = vmatmul.mubr.msk.f32.gmra.mxu1 %vm60_vm1, %v1279_v58  ;;  %v1294_v42 = vsel %vm521_vm2, %v1292_v28, %v1293_v61 }
  0x5e   :  { %8584 = vmatmul.mubr.msk.f32.gmra.mxu0 %vm60_vm1, %v9276_v20  ;;  %8560 = vmatprep.mubr.msk.f32.mxu1 %vm60_vm1, %v1282_v10  ;;  %v7466_v20 = vld [vmem:[%s12581_s0 + $0x308] sm:$0x1] }
  0x5f   :  { %8586 = vmatprep.mubr.msk.f32.mxu0 %vm60_vm1, %v9301_v26  ;;  %v1295_v26 = vrot.slane %v9795_v62, 1  ;;  %v1296_v44 = vrot.slane %v7466_v20, 1  ;;  %v7470_v62 = vld [vmem:[%s12581_s0 + $0x328] sm:$0x1]  ;;  %v10221_v20 = vld [vmem:[%s12583_s2] ss:$0 sm:$0xff] }
  0x60   :  { %v1302_v2 = vrot.slane %v7470_v62, 1  ;;  %v10206_v10 = vld [vmem:[%s12582_s3 + $0x8] sm:$0xf] }
  0x61   :  { %8561 = vmatmul.mubr.msk.f32.gmra.mxu1 %vm60_vm1, %v1285_v17 }
  0x62   :  { %8587 = vmatmul.mubr.msk.f32.gmra.mxu0 %vm60_vm1, %v9928_v15  ;;  %8563 = vmatprep.mubr.msk.f32.mxu1 %vm60_vm1, %v1288_v41  ;;  %v1303_v36 = vsel %vm521_vm2, %v1301_v38, %v1302_v2 }
  0x63   :  { %8589 = vmatprep.mubr.msk.f32.mxu0 %vm60_vm1, %v9179_v3  ;;  %v1297_v3 = vsel %vm521_vm2, %v1295_v26, %v1296_v44 }
  0x65   :  { %8564 = vmatmul.mubr.msk.f32.gmra.mxu1 %vm60_vm1, %v1291_v48 }
  0x66   :  { %8590 = vmatmul.mubr.msk.f32.gmra.mxu0 %vm60_vm1, %v9200_v7  ;;  %8566 = vmatprep.mubr.msk.f32.mxu1 %vm60_vm1, %v1294_v42  ;;  %v1307_v7 = vrot.slane %v9850_v57, 1 }
  0x67   :  { %8592 = vmatprep.mubr.msk.f32.mxu0 %vm60_vm1, %v9216_v9  ;;  %v1306_v9 = vsel %vm521_vm2, %v1304_v5, %v1305_v54 }
  0x68   :  { %v1309_v57 = vsel %vm521_vm2, %v1307_v7, %v1308_v0 }
  0x69   :  { %8567 = vmatmul.mubr.msk.f32.gmra.mxu1 %vm60_vm1, %v1297_v3 }
  0x6a   :  { %8593 = vmatmul.mubr.msk.f32.gmra.mxu0 %vm60_vm1, %v9229_v11  ;;  %8569 = vmatprep.mubr.msk.f32.mxu1 %vm60_vm1, %v1300_v4  ;;  %v7575_v11 = vld [vmem:[%s12581_s0 + $0x110] sm:$0xff] }
  0x6b   :  { %8595 = vmatprep.mubr.msk.f32.mxu0 %vm60_vm1, %v9258_v16  ;;  %v7560_v16 = vld [vmem:[%s12581_s0 + $0x88] sm:$0x1] }
  0x6d   :  { %8570 = vmatmul.mubr.msk.f32.gmra.mxu1 %vm60_vm1, %v1303_v36 }
  0x6e   :  { %8596 = vmatmul.mubr.msk.f32.gmra.mxu0 %vm60_vm1, %v9270_v18  ;;  %8572 = vmatprep.mubr.msk.f32.mxu1 %vm60_vm1, %v1306_v9  ;;  %v2023_v18 = vrot.slane %v9928_v15, 1 }
  0x6f   :  { %8598 = vmatprep.mubr.msk.f32.mxu0 %vm60_vm1, %v9290_v23  ;;  %v2024_v23 = vrot.slane %v7560_v16, 1 }
  0x71   :  { %8573 = vmatmul.mubr.msk.f32.gmra.mxu1 %vm60_vm1, %v1309_v57 }
  0x72   :  { %8599 = vmatmul.mubr.msk.f32.gmra.mxu0 %vm60_vm1, %v7575_v11  ;;  %8603 = vmatprep.mubr.msk.f32.mxu1 %vm60_vm1, %v9322_v34  ;;  %v7602_v34 = vld [vmem:[%s12581_s0 + $0x1a0] sm:$0xff] }
  0x73   :  { %8629 = vmatprep.mubr.msk.f32.mxu0 %vm60_vm1, %v9531_v21  ;;  %v12611_v21 = vld [vmem:[#allocation10_spill] sm:$0xff] }
  0x75   :  { %8604 = vmatmul.mubr.msk.f32.vlgmr.msra.gmra.mxu1 %vm60_vm1, %v9333_v39  ;;  %v2025_v39 = vsel %vm521_vm2, %v2023_v18, %v2024_v23  ;;  %v10252_v23 = vld [vmem:[%s12582_s3 + $0xc] sm:$0xf] }
  0x76   :  { %8630 = vmatmul.mubr.msk.f32.vlgmr.msra.gmra.mxu0 %vm60_vm1, %v9548_v25  ;;  %8606 = vmatprep.mubr.msk.f32.mxu1 %vm60_vm1, %v9356_v45  ;;  %v7576_v45 = vld [vmem:[%s12581_s0 + $0x118] sm:$0x1] }
  0x77   :  { %8632 = vmatprep.mubr.msk.f32.mxu0 %vm60_vm1, %v9559_v52  ;;  %v12612_v25 = vld [vmem:[#allocation7_spill] sm:$0xff]  ;;  %v7610_v52 = vld [vmem:[%s12581_s0 + $0x230] sm:$0xff]  ;;  %8680 = vmatpush3.msk.msra.mxu0 %vm109_vm0, %v2454_v50 }
  0x78   :  { %8731 = vmatprep.subr.msk.mxu0 %vm109_vm0, %v10252_v23 }
  0x79   :  { %8607 = vmatmul.mubr.msk.f32.gmra.mxu1 %vm60_vm1, %v9373_v49  ;;  %v12606_v49 = vld [vmem:[#allocation4_spill] sm:$0xff] }
  0x7a   :  { %8633 = vmatmul.mubr.msk.f32.gmra.mxu0 %vm60_vm1, %v9569_v55  ;;  %8609 = vmatprep.mubr.msk.f32.mxu1 %vm60_vm1, %v9398_v56  ;;  %v12607_v56 = vld [vmem:[#allocation8_spill] sm:$0xff]  ;;  %v12613_v55 = vld [vmem:[#allocation11_spill] sm:$0xff] }
  0x7b   :  { %8635 = vmatprep.mubr.msk.f32.mxu0 %vm60_vm1, %v9574_v60  ;;  %12615 = vst [vmem:[#allocation8_spill] sm:$0xff] %v10206_v10 }
  0x7d   :  { %8610 = vmatmul.mubr.msk.f32.gmra.mxu1 %vm60_vm1, %v9408_v59  ;;  %v12608_v59 = vld [vmem:[#allocation5_spill] sm:$0xff] }
  0x7e   :  { %8636 = vmatmul.mubr.msk.f32.gmra.mxu0 %vm60_vm1, %v9579_v35  ;;  %8612 = vmatprep.mubr.msk.f32.mxu1 %vm60_vm1, %v9428_v1  ;;  %v2047_v1 = vrot.slane %v7575_v11, 1  ;;  %v7647_v35 = vld [vmem:[%s12582_s3 + $0x4] sm:$0xf]  ;;  %12616 = vst [vmem:[#allocation5_spill] sm:$0xff] %v10252_v23 }
  0x7f   :  { %8638 = vmatprep.mubr.msk.f32.mxu0 %vm60_vm1, %v9598_v47  ;;  %8653 = vmatprep.subr.msk.mxu1 %vm109_vm0, %v7647_v35  ;;  %v12590_v47 = vmov 0.0  }
  0x80   :  { %8654 = vmatpush3.msk.msra.mxu1 %vm109_vm0, %v7647_v35  ;;  %2255 = vst.msk [vmem:[#allocation2 + $0x38] sm:$0xff] %vm60_vm1, %v12590_v47  ;;  %2248 = vst.msk [vmem:[#allocation2] sm:$0xff] %vm60_vm1, %v12590_v47 }
  0x81   :  { %8613 = vmatmul.mubr.msk.f32.gmra.mxu1 %vm60_vm1, %v7602_v34  ;;  %2249 = vst.msk [vmem:[#allocation2 + $0x8] sm:$0xff] %vm60_vm1, %v12590_v47  ;;  %2250 = vst.msk [vmem:[#allocation2 + $0x10] sm:$0xff] %vm60_vm1, %v12590_v47  ;;  %8705 = vmatprep.subr.msk.mxu1 %vm109_vm0, %v10206_v10 }
  0x82   :  { %8639 = vmatmul.mubr.msk.f32.gmra.mxu0 %vm60_vm1, %v2025_v39  ;;  %8615 = vmatprep.mubr.msk.f32.mxu1 %vm60_vm1, %v9453_v27  ;;  %v12609_v27 = vld [vmem:[#allocation9_spill] sm:$0xff]  ;;  %2251 = vst.msk [vmem:[#allocation2 + $0x18] sm:$0xff] %vm60_vm1, %v12590_v47  ;;  %2252 = vst.msk [vmem:[#allocation2 + $0x20] sm:$0xff] %vm60_vm1, %v12590_v47 }
  0x83   :  { %8641 = vmatprep.mubr.msk.f32.mxu0 %vm60_vm1, %v9624_v19  ;;  %2253 = vst.msk [vmem:[#allocation2 + $0x28] sm:$0xff] %vm60_vm1, %v12590_v47  ;;  %2254 = vst.msk [vmem:[#allocation2 + $0x30] sm:$0xff] %vm60_vm1, %v12590_v47 }
  0x84   :  { %2256 = vst.msk [vmem:[#allocation2 + $0x40] sm:$0xff] %vm60_vm1, %v12590_v47  ;;  %2257 = vst.msk [vmem:[#allocation2 + $0x48] sm:$0xff] %vm60_vm1, %v12590_v47 }
  0x85   :  { %8616 = vmatmul.mubr.msk.f32.gmra.mxu1 %vm60_vm1, %v9463_v30  ;;  %v2048_v30 = vrot.slane %v7576_v45, 1  ;;  %2258 = vst.msk [vmem:[#allocation2 + $0x50] sm:$0xff] %vm60_vm1, %v12590_v47  ;;  %2259 = vst.msk [vmem:[#allocation2 + $0x58] sm:$0xff] %vm60_vm1, %v12590_v47 }
  0x86   :  { %8642 = vmatmul.mubr.msk.f32.gmra.mxu0 %vm60_vm1, %v9629_v33  ;;  %8618 = vmatprep.mubr.msk.f32.mxu1 %vm60_vm1, %v9484_v43  ;;  %v12610_v43 = vld [vmem:[#allocation6_spill] sm:$0xff]  ;;  %2260 = vst.msk [vmem:[#allocation2 + $0x60] sm:$0xff] %vm60_vm1, %v12590_v47  ;;  %2261 = vst.msk [vmem:[#allocation2 + $0x68] sm:$0xff] %vm60_vm1, %v12590_v47 }
  0x87   :  { %8644 = vmatprep.mubr.msk.f32.mxu0 %vm60_vm1, %v9634_v37  ;;  %v2049_v60 = vsel %vm521_vm2, %v2047_v1, %v2048_v30  ;;  %2262 = vst.msk [vmem:[#allocation2 + $0x70] sm:$0xff] %vm60_vm1, %v12590_v47  ;;  %2263 = vst.msk [vmem:[#allocation2 + $0x78] sm:$0xff] %vm60_vm1, %v12590_v47  ;;  %v2325_v33 = vld [vmem:[#allocation2] sm:$0xff] }
  0x88   :  { %2264 = vst.msk [vmem:[#allocation2 + $0x80] sm:$0xff] %vm60_vm1, %v12590_v47  ;;  %2265 = vst.msk [vmem:[#allocation2 + $0x88] sm:$0xff] %vm60_vm1, %v12590_v47  ;;  %v10187_v19 = vld [vmem:[#allocation2 + $0x8] sm:$0xff]  ;;  %v2406_v31 = vrot.slane %v2325_v33, 7 }
  0x89   :  { %8619 = vmatmul.mubr.msk.f32.gmra.mxu1 %vm60_vm1, %v12606_v49  ;;  %2266 = vst.msk [vmem:[#allocation2 + $0x90] sm:$0xff] %vm60_vm1, %v12590_v47  ;;  %2267 = vst.msk [vmem:[#allocation2 + $0x98] sm:$0xff] %vm60_vm1, %v12590_v47  ;;  %v2407_v37 = vrot.slane %v10187_v19, 7 }
  0x8a   :  { %8645 = vmatmul.mubr.msk.f32.gmra.mxu0 %vm60_vm1, %v12607_v56  ;;  %8621 = vmatprep.mubr.msk.f32.mxu1 %vm60_vm1, %v12608_v59  ;;  %2268 = vst.msk [vmem:[#allocation2 + $0xa0] sm:$0xff] %vm60_vm1, %v12590_v47  ;;  %2269 = vst.msk [vmem:[#allocation2 + $0xa8] sm:$0xff] %vm60_vm1, %v12590_v47 }
  0x8b   :  { %8647 = vmatprep.mubr.msk.f32.mxu0 %vm60_vm1, %v12609_v27  ;;  %2270 = vst.msk [vmem:[#allocation2 + $0xb0] sm:$0xff] %vm60_vm1, %v12590_v47  ;;  %2271 = vst.msk [vmem:[#allocation2 + $0xb8] sm:$0xff] %vm60_vm1, %v12590_v47  ;;  %v2408_v58 = vsel %vm2405_vm3, %v2406_v31, %v2407_v37 }
  0x8c   :  { %2272 = vst.msk [vmem:[#allocation2 + $0xc0] sm:$0xff] %vm60_vm1, %v12590_v47  ;;  %2273 = vst.msk [vmem:[#allocation2 + $0xc8] sm:$0xff] %vm60_vm1, %v12590_v47 }
  0x8d   :  { %8622 = vmatmul.mubr.msk.f32.gmra.mxu1 %vm60_vm1, %v12610_v43  ;;  %2274 = vst.msk [vmem:[#allocation2 + $0xd0] sm:$0xff] %vm60_vm1, %v12590_v47  ;;  %2275 = vst.msk [vmem:[#allocation2 + $0xd8] sm:$0xff] %vm60_vm1, %v12590_v47 }
  0x8e   :  { %8648 = vmatmul.mubr.msk.f32.gmra.mxu0 %vm60_vm1, %v12611_v21  ;;  %8624 = vmatprep.mubr.msk.f32.mxu1 %vm60_vm1, %v12612_v25  ;;  %2276 = vst.msk [vmem:[#allocation2 + $0xe0] sm:$0xff] %vm60_vm1, %v12590_v47  ;;  %2277 = vst.msk [vmem:[#allocation2 + $0xe8] sm:$0xff] %vm60_vm1, %v12590_v47 }
  0x8f   :  { %8650 = vmatprep.mubr.msk.f32.mxu0 %vm60_vm1, %v12613_v55  ;;  %2278 = vst.msk [vmem:[#allocation2 + $0xf0] sm:$0xff] %vm60_vm1, %v12590_v47  ;;  %2279 = vst.msk [vmem:[#allocation2 + $0xf8] sm:$0xff] %vm60_vm1, %v12590_v47 }
  0x90   :  { %2280 = vst.msk [vmem:[#allocation2 + $0x100] sm:$0xff] %vm60_vm1, %v12590_v47  ;;  %2281 = vst.msk [vmem:[#allocation2 + $0x108] sm:$0xff] %vm60_vm1, %v12590_v47 }
  0x91   :  { %8625 = vmatmul.mubr.msk.f32.gmra.mxu1 %vm60_vm1, %v7610_v52  ;;  %2282 = vst.msk [vmem:[#allocation2 + $0x110] sm:$0xff] %vm60_vm1, %v12590_v47  ;;  %2283 = vst.msk [vmem:[#allocation2 + $0x118] sm:$0xff] %vm60_vm1, %v12590_v47 }
  0x92   :  { %8651 = vmatmul.mubr.msk.f32.gmra.mxu0 %vm60_vm1, %v2049_v60  ;;  %2284 = vst.msk [vmem:[#allocation2 + $0x120] sm:$0xff] %vm60_vm1, %v12590_v47  ;;  %2285 = vst.msk [vmem:[#allocation2 + $0x128] sm:$0xff] %vm60_vm1, %v12590_v47  ;;  %8655 = vmatprep.mubr.msk.f32.mxu1 %vm60_vm1, %v10187_v19 }
  0x93   :  { %2286 = vst.msk [vmem:[#allocation2 + $0x130] sm:$0xff] %vm60_vm1, %v12590_v47  ;;  %2287 = vst.msk [vmem:[#allocation2 + $0x138] sm:$0xff] %vm60_vm1, %v12590_v47  ;;  %8681 = vmatprep.mubr.msk.f32.mxu0 %vm60_vm1, %v2408_v58 }
  0x94   :  { %2288 = vst.msk [vmem:[#allocation2 + $0x140] sm:$0xff] %vm60_vm1, %v12590_v47  ;;  %2289 = vst.msk [vmem:[#allocation2 + $0x148] sm:$0xff] %vm60_vm1, %v12590_v47 }
  0x95   :  { %2290 = vst.msk [vmem:[#allocation2 + $0x150] sm:$0xff] %vm60_vm1, %v12590_v47  ;;  %2291 = vst.msk [vmem:[#allocation2 + $0x158] sm:$0xff] %vm60_vm1, %v12590_v47 }
  0x96   :  { %2292 = vst.msk [vmem:[#allocation2 + $0x160] sm:$0xff] %vm60_vm1, %v12590_v47  ;;  %2293 = vst.msk [vmem:[#allocation2 + $0x168] sm:$0xff] %vm60_vm1, %v12590_v47 }
  0x97   :  { %2294 = vst.msk [vmem:[#allocation2 + $0x170] sm:$0xff] %vm60_vm1, %v12590_v47  ;;  %2295 = vst.msk [vmem:[#allocation2 + $0x178] sm:$0xff] %vm60_vm1, %v12590_v47 }
  0x98   :  { %2296 = vst.msk [vmem:[#allocation2 + $0x180] sm:$0xff] %vm60_vm1, %v12590_v47  ;;  %2297 = vst.msk [vmem:[#allocation2 + $0x188] sm:$0xff] %vm60_vm1, %v12590_v47 }
  0x99   :  { %2298 = vst.msk [vmem:[#allocation2 + $0x190] sm:$0xff] %vm60_vm1, %v12590_v47  ;;  %2299 = vst.msk [vmem:[#allocation2 + $0x198] sm:$0xff] %vm60_vm1, %v12590_v47 }
  0x9a   :  { %2300 = vst.msk [vmem:[#allocation2 + $0x1a0] sm:$0xff] %vm60_vm1, %v12590_v47  ;;  %2301 = vst.msk [vmem:[#allocation2 + $0x1a8] sm:$0xff] %vm60_vm1, %v12590_v47 }
  0x9b   :  { %2302 = vst.msk [vmem:[#allocation2 + $0x1b0] sm:$0xff] %vm60_vm1, %v12590_v47  ;;  %2303 = vst.msk [vmem:[#allocation2 + $0x1b8] sm:$0xff] %vm60_vm1, %v12590_v47 }
  0x9c   :  { %2304 = vst.msk [vmem:[#allocation2 + $0x1c0] sm:$0xff] %vm60_vm1, %v12590_v47  ;;  %2305 = vst.msk [vmem:[#allocation2 + $0x1c8] sm:$0xff] %vm60_vm1, %v12590_v47 }
  0x9d   :  { %2306 = vst.msk [vmem:[#allocation2 + $0x1d0] sm:$0xff] %vm60_vm1, %v12590_v47  ;;  %2307 = vst.msk [vmem:[#allocation2 + $0x1d8] sm:$0xff] %vm60_vm1, %v12590_v47 }
  0x9e   :  { %12614 = vst [vmem:[#allocation4_spill] sm:$0xff] %v10187_v19 }
  0xc5   :  { %v8435_v8 = vpop.f32.mrf.mxu1 }
  0xc6   :  { %v8423_v53 = vpop.f32.mrf.mxu0  ;;  %v267_v56 = vadd.f32 %v8435_v8, %v10221_v20 }
  0xc7   :  { %v10197_v51 = vpop.f32.mrf.mxu1  ;;  %v259_v26 = vadd.f32 %v8423_v53, %v10221_v20 }
  0xc8   :  { %v10201_v63 = vpop.f32.mrf.mxu0 }
  0xc9   :  { %v8438_v46 = vpop.f32.mrf.mxu1 }
  0xca   :  { %v8426_v13 = vpop.f32.mrf.mxu0  ;;  %v269_v25 = vadd.f32 %v8438_v46, %v10221_v20 }
  0xcb   :  { %v10210_v12 = vpop.f32.mrf.mxu1  ;;  %v261_v62 = vadd.f32 %v8426_v13, %v10221_v20 }
  0xcc   :  { %v10212_v22 = vpop.f32.mrf.mxu0 }
  0xcd   :  { %v8441_v17 = vpop.f32.mrf.mxu1 }
  0xce   :  { %v8429_v29 = vpop.f32.mrf.mxu0  ;;  %v271_v31 = vadd.f32 %v8441_v17, %v10221_v20 }
  0xcf   :  { %v10214_v28 = vpop.f32.mrf.mxu1  ;;  %v263_v54 = vadd.f32 %v8429_v29, %v10221_v20 }
  0xd0   :  { %v10216_v15 = vpop.f32.mrf.mxu0 }
  0xd1   :  { %v8444_v41 = vpop.f32.mrf.mxu1 }
  0xd2   :  { %v8432_v61 = vpop.f32.mrf.mxu0  ;;  %v273_v46 = vadd.f32 %v8444_v41, %v10221_v20 }
  0xd3   :  { %v10223_v40 = vpop.f32.mrf.mxu1  ;;  %v265_v11 = vadd.f32 %v8432_v61, %v10221_v20 }
  0xd4   :  { %v10226_v48 = vpop.f32.mrf.mxu0 }
  0xd5   :  { %v8449_v44 = vpop.f32.mrf.mxu1 }
  0xd6   :  { %v490_v14 = vadd.f32 %v8449_v44, %v259_v26  ;;  %v8475_v42 = vpop.f32.mrf.mxu0 }
  0xd7   :  { %v10228_v6 = vpop.f32.mrf.mxu1 }
  0xd8   :  { %v10231_v32 = vadd.f32 %v8475_v42, %v490_v14  ;;  %v10233_v38 = vpop.f32.mrf.mxu0 }
  0xd9   :  { %v8452_v3 = vpop.f32.mrf.mxu1 }
  0xda   :  { %v492_v2 = vadd.f32 %v8452_v3, %v261_v62  ;;  %v8478_v5 = vpop.f32.mrf.mxu0 }
  0xdb   :  { %v10235_v4 = vpop.f32.mrf.mxu1 }
  0xdc   :  { %v10238_v24 = vadd.f32 %v8478_v5, %v492_v2  ;;  %v10240_v7 = vpop.f32.mrf.mxu0 }
  0xdd   :  { %v8455_v36 = vpop.f32.mrf.mxu1 }
  0xde   :  { %v494_v0 = vadd.f32 %v8455_v36, %v263_v54  ;;  %v8481_v9 = vpop.f32.mrf.mxu0 }
  0xdf   :  { %v10242_v57 = vpop.f32.mrf.mxu1 }
  0xe0   :  { %v10245_v16 = vadd.f32 %v8481_v9, %v494_v0  ;;  %v10247_v18 = vpop.f32.mrf.mxu0 }
  0xe1   :  { %v8458_v34 = vpop.f32.mrf.mxu1 }
  0xe2   :  { %v496_v39 = vadd.f32 %v8458_v34, %v265_v11  ;;  %v8484_v45 = vpop.f32.mrf.mxu0 }
  0xe3   :  { %v10256_v49 = vpop.f32.mrf.mxu1 }
  0xe4   :  { %v10259_v59 = vadd.f32 %v8484_v45, %v496_v39  ;;  %v10261_v1 = vpop.f32.mrf.mxu0 }
  0xe5   :  { %v8461_v27 = vpop.f32.mrf.mxu1 }
  0xe6   :  { %v498_v30 = vadd.f32 %v8461_v27, %v267_v56  ;;  %v8487_v43 = vpop.f32.mrf.mxu0 }
  0xe7   :  { %v10263_v21 = vpop.f32.mrf.mxu1 }
  0xe8   :  { %v10266_v52 = vadd.f32 %v8487_v43, %v498_v30  ;;  %v10268_v55 = vpop.f32.mrf.mxu0 }
  0xe9   :  { %v8464_v60 = vpop.f32.mrf.mxu1 }
  0xea   :  { %v500_v35 = vadd.f32 %v8464_v60, %v269_v25  ;;  %v8490_v33 = vpop.f32.mrf.mxu0 }
  0xeb   :  { %v10270_v37 = vpop.f32.mrf.mxu1 }
  0xec   :  { %v10273_v8 = vadd.f32 %v8490_v33, %v500_v35  ;;  %v10275_v50 = vpop.f32.mrf.mxu0 }
  0xed   :  { %v8467_v53 = vpop.f32.mrf.mxu1 }
  0xee   :  { %12617 = vst [vmem:[#allocation9_spill] sm:$0xff] %v10273_v8  ;;  %v502_v58 = vadd.f32 %v8467_v53, %v271_v31  ;;  %v8493_v13 = vpop.f32.mrf.mxu0  ;;  %v258_v8 = vadd.f32 %v10221_v20, %v10201_v63 }
  0xef   :  { %v10277_v29 = vpop.f32.mrf.mxu1 }
  0xf0   :  { %v10280_v61 = vadd.f32 %v8493_v13, %v502_v58  ;;  %v10282_v26 = vpop.f32.mrf.mxu0 }
  0xf1   :  { %12619 = vst [vmem:[#allocation10_spill] sm:$0xff] %v10282_v26  ;;  %v8470_v44 = vpop.f32.mrf.mxu1  ;;  %v489_v26 = vadd.f32 %v10228_v6, %v258_v8  ;;  %v262_v6 = vadd.f32 %v10221_v20, %v10216_v15  ;;  %v264_v15 = vadd.f32 %v10221_v20, %v10226_v48 }
  0xf2   :  { %12618 = vst [vmem:[#allocation6_spill] sm:$0xff] %v10280_v61  ;;  %v504_v14 = vadd.f32 %v8470_v44, %v273_v46  ;;  %v8496_v42 = vpop.f32.mrf.mxu0 }
  0xf3   :  { %v10284_v62 = vpop.f32.mrf.mxu1 }
  0xf4   :  { %12620 = vst [vmem:[#allocation7_spill] sm:$0xff] %v10284_v62  ;;  %v10286_v17 = vadd.f32 %v8496_v42, %v504_v14  ;;  %v10288_v3 = vpop.f32.mrf.mxu0 }
  0xf5   :  { %12622 = vst [vmem:[#allocation12_spill] sm:$0xff] %v10288_v3  ;;  %v8501_v2 = vpop.f32.mrf.mxu1 }
  0xf6   :  { %12621 = vst [vmem:[#allocation11_spill] sm:$0xff] %v10286_v17  ;;  %v10290_v5 = vpop.f32.mrf.mxu0 }
  0xf7   :  { %v920_v54 = vpop.f32.mrf.mxu1 }
  0xf8   :  { %v10292_v36 = vpop.f32.mrf.mxu0 }
  0xf9   :  { %v10294_v41 = vpop.f32.mrf.mxu1 }
  0xfa   :  { %v10296_v0 = vpop.f32.mrf.mxu0 }
  0xfb   :  { %v10298_v9 = vpop.f32.mrf.mxu1 }
  0xfc   :  { %v10300_v11 = vpop.f32.mrf.mxu0 }
  0xfd   :  { %v10302_v34 = vpop.f32.mrf.mxu1 }
  0xfe   :  { %v10304_v39 = vpop.f32.mrf.mxu0  ;;  %v1004_v48 = vadd.f32 %v10302_v34, %v10245_v16  ;;  %v268_v16 = vadd.f32 %v10221_v20, %v10210_v12 }
  0xff   :  { %v10306_v45 = vpop.f32.mrf.mxu1 }
 0x100   :  { %v10308_v56 = vpop.f32.mrf.mxu0  ;;  %v499_v12 = vadd.f32 %v10270_v37, %v268_v16  ;;  %v12654_v16 = vld [vmem:[#allocation9_spill] sm:$0xff] }
 0x101   :  { %v10310_v27 = vpop.f32.mrf.mxu1 }
 0x102   :  { %v10312_v30 = vpop.f32.mrf.mxu0 }
 0x103   :  { %v10314_v43 = vpop.f32.mrf.mxu1 }
 0x104   :  { %v10316_v25 = vpop.f32.mrf.mxu0 }
 0x105   :  { %v10318_v60 = vpop.f32.mrf.mxu1 }
 0x106   :  { %v10320_v35 = vpop.f32.mrf.mxu0  ;;  %v1008_v37 = vadd.f32 %v10318_v60, %v10266_v52 }
 0x107   :  { %12623 = vst [vmem:[#allocation13_spill] sm:$0xff] %v10320_v35  ;;  %v10322_v33 = vpop.f32.mrf.mxu1 }
 0x108   :  { %12624 = vst [vmem:[#allocation14_spill] sm:$0xff] %v10322_v33  ;;  %v10324_v31 = vpop.f32.mrf.mxu0 }
 0x109   :  { %12625 = vst [vmem:[#allocation15_spill] sm:$0xff] %v10324_v31  ;;  %v10326_v53 = vpop.f32.mrf.mxu1 }
 0x10a   :  { %12626 = vst [vmem:[#allocation16_spill] sm:$0xff] %v10326_v53  ;;  %v10328_v58 = vpop.f32.mrf.mxu0 }
 0x10b   :  { %12627 = vst [vmem:[#allocation17_spill] sm:$0xff] %v10328_v58  ;;  %v10330_v13 = vpop.f32.mrf.mxu1 }
 0x10c   :  { %12628 = vst [vmem:[#allocation18_spill] sm:$0xff] %v10330_v13  ;;  %v10332_v46 = vpop.f32.mrf.mxu0 }
 0x10d   :  { %12629 = vst [vmem:[#allocation19_spill] sm:$0xff] %v10332_v46  ;;  %v10334_v44 = vpop.f32.mrf.mxu1 }
 0x10e   :  { %12630 = vst [vmem:[#allocation20_spill] sm:$0xff] %v10334_v44  ;;  %v10336_v14 = vpop.f32.mrf.mxu0 }
 0x10f   :  { %12631 = vst [vmem:[#allocation21_spill] sm:$0xff] %v10336_v14  ;;  %v10338_v42 = vpop.f32.mrf.mxu1 }
 0x110   :  { %12632 = vst [vmem:[#allocation22_spill] sm:$0xff] %v10338_v42  ;;  %v10340_v47 = vpop.f32.mrf.mxu0 }
 0x111   :  { %12633 = vst [vmem:[#allocation23_spill] sm:$0xff] %v10340_v47  ;;  %v10342_v19 = vpop.f32.mrf.mxu1 }
 0x112   :  { %12634 = vst [vmem:[#allocation24_spill] sm:$0xff] %v10342_v19  ;;  %v10344_v23 = vpop.f32.mrf.mxu0 }
 0x113   :  { %12635 = vst [vmem:[#allocation25_spill] sm:$0xff] %v10344_v23  ;;  %v10346_v10 = vpop.f32.mrf.mxu1 }
 0x114   :  { %12636 = vst [vmem:[#allocation26_spill] sm:$0xff] %v10346_v10  ;;  %v10348_v17 = vpop.f32.mrf.mxu0 }
 0x115   :  { %12637 = vst [vmem:[#allocation27_spill] sm:$0xff] %v10348_v17  ;;  %v8553_v58 = vpop.f32.mrf.mxu1 }
 0x116   :  { %v8579_v3 = vpop.f32.mrf.mxu0 }
 0x117   :  { %v1413_v61 = vpop.f32.mrf.mxu1 }
 0x118   :  { %v10350_v46 = vpop.f32.mrf.mxu0 }
 0x119   :  { %v8556_v44 = vpop.f32.mrf.mxu1 }
 0x11a   :  { %v10352_v13 = vpop.f32.mrf.mxu0 }
 0x11b   :  { %v1423_v14 = vpop.f32.mrf.mxu1 }
 0x11c   :  { %v10354_v42 = vpop.f32.mrf.mxu0 }
 0x11d   :  { %v10356_v47 = vpop.f32.mrf.mxu1 }
 0x11e   :  { %v10358_v19 = vpop.f32.mrf.mxu0 }
 0x11f   :  { %12638 = vst [vmem:[#allocation28_spill] sm:$0xff] %v10358_v19  ;;  %v10360_v23 = vpop.f32.mrf.mxu1 }
 0x120   :  { %v10362_v10 = vpop.f32.mrf.mxu0 }
 0x121   :  { %12639 = vst [vmem:[#allocation29_spill] sm:$0xff] %v10362_v10  ;;  %v10364_v17 = vpop.f32.mrf.mxu1  ;;  %v260_v10 = vadd.f32 %v10221_v20, %v10212_v22  ;;  %v493_v22 = vadd.f32 %v10242_v57, %v262_v6 }
 0x122   :  { %12640 = vst [vmem:[#allocation30_spill] sm:$0xff] %v10364_v17  ;;  %v10366_v31 = vpop.f32.mrf.mxu0 }
 0x123   :  { %12641 = vst [vmem:[#allocation31_spill] sm:$0xff] %v10366_v31  ;;  %v10368_v53 = vpop.f32.mrf.mxu1  ;;  %v491_v63 = vadd.f32 %v10235_v4, %v260_v10 }
 0x124   :  { %12642 = vst [vmem:[#allocation32_spill] sm:$0xff] %v10368_v53  ;;  %v10372_v35 = vpop.f32.mrf.mxu0  ;;  %v752_v53 = vadd.f32 %v10233_v38, %v489_v26 }
 0x125   :  { %12643 = vst [vmem:[#allocation33_spill] sm:$0xff] %v10372_v35  ;;  %v10374_v62 = vpop.f32.mrf.mxu1  ;;  %v1000_v35 = vadd.f32 %v8501_v2, %v10231_v32  ;;  %v754_v38 = vadd.f32 %v10240_v7, %v491_v63  ;;  %v1002_v32 = vadd.f32 %v10294_v41, %v10238_v24  ;;  %v756_v7 = vadd.f32 %v10247_v18, %v493_v22  ;;  %v10419_v24 = vld [vmem:[#allocation2 + $0x30] sm:$0xff] }
 0x126   :  { %12644 = vst [vmem:[#allocation34_spill] sm:$0xff] %v10374_v62  ;;  %v10377_v19 = vpop.f32.mrf.mxu0  ;;  %v12649_v60 = vld [vmem:[#allocation28_spill] sm:$0xff] }
 0x127   :  { %12645 = vst [vmem:[#allocation35_spill] sm:$0xff] %v10377_v19  ;;  %v10379_v33 = vpop.f32.mrf.mxu1  ;;  %v999_v19 = vadd.f32 %v920_v54, %v752_v53  ;;  %v1231_v10 = vadd.f32 %v10290_v5, %v1000_v35  ;;  %v1001_v57 = vadd.f32 %v10298_v9, %v754_v38  ;;  %v495_v5 = vadd.f32 %v10256_v49, %v264_v15 }
 0x128   :  { %12646 = vst [vmem:[#allocation36_spill] sm:$0xff] %v10379_v33  ;;  %v10383_v17 = vpop.f32.mrf.mxu0  ;;  %v1233_v41 = vadd.f32 %v10296_v0, %v1002_v32  ;;  %v1003_v9 = vadd.f32 %v10306_v45, %v756_v7  ;;  %v2412_v0 = vrot.slane %v10419_v24, 7  ;;  %v1235_v38 = vadd.f32 %v10304_v39, %v1004_v48  ;;  %v12678_v24 = vld [vmem:[#allocation25_spill] sm:$0xff] }
 0x129   :  { %12647 = vst [vmem:[#allocation37_spill] sm:$0xff] %v10383_v17  ;;  %v10385_v31 = vpop.f32.mrf.mxu1  ;;  %v1230_v2 = vadd.f32 %v10292_v36, %v999_v19  ;;  %v1493_v54 = vadd.f32 %v8553_v58, %v1231_v10  ;;  %v266_v36 = vadd.f32 %v10221_v20, %v10197_v51  ;;  %v1232_v49 = vadd.f32 %v10300_v11, %v1001_v57 }
 0x12a   :  { %v10390_v62 = vpop.f32.mrf.mxu0  ;;  %v1495_v6 = vadd.f32 %v8556_v44, %v1233_v41  ;;  %v1006_v51 = vadd.f32 %v10310_v27, %v10259_v59  ;;  %v270_v32 = vadd.f32 %v10221_v20, %v10214_v28  ;;  %v1497_v27 = vadd.f32 %v10356_v47, %v1235_v38 }
 0x12b   :  { %v10394_v8 = vpop.f32.mrf.mxu1  ;;  %v1492_v63 = vadd.f32 %v1413_v61, %v1230_v2  ;;  %v1740_v58 = vadd.f32 %v8579_v3, %v1493_v54  ;;  %v758_v61 = vadd.f32 %v10261_v1, %v495_v5  ;;  %v497_v34 = vadd.f32 %v10263_v21, %v266_v36  ;;  %v12648_v5 = vld [vmem:[#allocation14_spill] sm:$0xff] }
 0x12c   :  { %v10396_v33 = vpop.f32.mrf.mxu0  ;;  %v1494_v11 = vadd.f32 %v1423_v14, %v1232_v49  ;;  %v1234_v1 = vadd.f32 %v10308_v56, %v1003_v9  ;;  %v1742_v59 = vadd.f32 %v10352_v13, %v1495_v6  ;;  %v501_v57 = vadd.f32 %v10277_v29, %v270_v32  ;;  %v12651_v49 = vld [vmem:[#allocation10_spill] sm:$0xff]  ;;  %v12652_v6 = vld [vmem:[#allocation7_spill] sm:$0xff] }
 0x12d   :  { %v10399_v17 = vpop.f32.mrf.mxu1  ;;  %v1739_v3 = vadd.f32 %v10350_v46, %v1492_v63  ;;  %v1005_v21 = vadd.f32 %v10314_v43, %v758_v61  ;;  %v760_v14 = vadd.f32 %v10268_v55, %v497_v34  ;;  %v1237_v28 = vadd.f32 %v10312_v30, %v1006_v51  ;;  %v2328_v51 = vld [vmem:[#allocation2 + $0x18] sm:$0xff] }
 0x12e   :  { %v10405_v4 = vpop.f32.mrf.mxu0  ;;  %v1741_v43 = vadd.f32 %v10354_v42, %v1494_v11  ;;  %v1496_v54 = vadd.f32 %v10360_v23, %v1234_v1  ;;  %v272_v55 = vadd.f32 %v10221_v20, %v10223_v40  ;;  %v762_v29 = vadd.f32 %v10275_v50, %v499_v12  ;;  %v12650_v42 = vld [vmem:[#allocation30_spill] sm:$0xff]  ;;  %v12653_v40 = vld [vmem:[#allocation13_spill] sm:$0xff]  ;;  %v10474_v12 = vld [vmem:[#allocation2 + $0x60] sm:$0xff] }
 0x12f   :  { %v10409_v26 = vpop.f32.mrf.mxu1  ;;  %v1236_v30 = vadd.f32 %v10316_v25, %v1005_v21  ;;  %v1007_v41 = vadd.f32 %v12648_v5, %v760_v14  ;;  %v1744_v48 = vadd.f32 %v12649_v60, %v1497_v27  ;;  %v1499_v63 = vadd.f32 %v12650_v42, %v1237_v28  ;;  %v12655_v25 = vld [vmem:[#allocation16_spill] sm:$0xff]  ;;  %v12658_v1 = vld [vmem:[#allocation15_spill] sm:$0xff]  ;;  %v12660_v27 = vld [vmem:[#allocation6_spill] sm:$0xff] }
 0x130   :  { %v10413_v53 = vpop.f32.mrf.mxu0  ;;  %v503_v20 = vadd.f32 %v12652_v6, %v272_v55  ;;  %v1239_v50 = vadd.f32 %v12653_v40, %v1008_v37  ;;  %v1010_v61 = vadd.f32 %v12655_v25, %v12654_v16  ;;  %v12663_v28 = vld [vmem:[#allocation31_spill] sm:$0xff]  ;;  %v12665_v55 = vld [vmem:[#allocation22_spill] sm:$0xff]  ;;  %v12666_v5 = vld [vmem:[#allocation36_spill] sm:$0xff]  ;;  %v2418_v60 = vrot.slane %v10474_v12, 7 }
 0x131   :  { %v10417_v35 = vpop.f32.mrf.mxu1  ;;  %v1238_v21 = vadd.f32 %v12658_v1, %v1007_v41  ;;  %v1746_v37 = vadd.f32 %v12663_v28, %v1499_v63  ;;  %v12668_v63 = vld [vmem:[#allocation33_spill] sm:$0xff]  ;;  %v12671_v16 = vld [vmem:[#allocation35_spill] sm:$0xff] }
 0x132   :  { %v10424_v19 = vpop.f32.mrf.mxu0  ;;  %v10492_v6 = vld [vmem:[#allocation2 + $0x48] sm:$0xff] }
 0x133   :  { %v10429_v18 = vpop.f32.mrf.mxu1  ;;  %v12670_v40 = vld [vmem:[#allocation21_spill] sm:$0xff] }
 0x134   :  { %v10432_v22 = vpop.f32.mrf.mxu0 }
 0x135   :  { %v8605_v45 = vpop.f32.mrf.mxu1 }
 0x136   :  { %v1971_v44 = vadd.f32 %v8605_v45, %v1740_v58  ;;  %v8631_v10 = vpop.f32.mrf.mxu0  ;;  %v764_v58 = vadd.f32 %v12651_v49, %v501_v57  ;;  %v12656_v45 = vld [vmem:[#allocation29_spill] sm:$0xff] }
 0x137   :  { %v1891_v15 = vpop.f32.mrf.mxu1  ;;  %v1743_v38 = vadd.f32 %v12656_v45, %v1496_v54  ;;  %v10503_v45 = vld [vmem:[%s12582_s3 + $0x10] sm:$0xf] }
 0x138   :  { %v2233_v39 = vadd.f32 %v8631_v10, %v1971_v44  ;;  %v1970_v2 = vadd.f32 %v1891_v15, %v1739_v3  ;;  %v2153_v46 = vpop.f32.mrf.mxu0  ;;  %v12657_v3 = vld [vmem:[#allocation32_spill] sm:$0xff]  ;;  %v12659_v15 = vld [vmem:[#allocation18_spill] sm:$0xff] }
 0x139   :  { %v8608_v56 = vpop.f32.mrf.mxu1  ;;  %v1498_v11 = vadd.f32 %v12657_v3, %v1236_v30  ;;  %v1011_v30 = vadd.f32 %v12665_v55, %v764_v58  ;;  %v12677_v55 = vld [vmem:[#allocation26_spill] sm:$0xff] }
 0x13a   :  { %2310 = vst.msk [vmem:[#allocation2 + $0x38] sm:$0xff] %vm60_vm1, %v2233_v39  ;;  %v2232_v47 = vadd.f32 %v2153_v46, %v1970_v2  ;;  %v1973_v13 = vadd.f32 %v8608_v56, %v1742_v59  ;;  %v8634_v7 = vpop.f32.mrf.mxu0  ;;  %v1009_v59 = vadd.f32 %v12659_v15, %v762_v29  ;;  %v12661_v39 = vld [vmem:[#allocation20_spill] sm:$0xff]  ;;  %v12662_v46 = vld [vmem:[#allocation34_spill] sm:$0xff]  ;;  %v1500_v29 = vadd.f32 %v12666_v5, %v1238_v21  ;;  %v12673_v21 = vld [vmem:[#allocation11_spill] sm:$0xff] }
 0x13b   :  { %v1901_v52 = vpop.f32.mrf.mxu1  ;;  %v1012_v2 = vadd.f32 %v12661_v39, %v12660_v27  ;;  %v1501_v14 = vadd.f32 %v12662_v46, %v1239_v50  ;;  %v12674_v15 = vld [vmem:[#allocation24_spill] sm:$0xff]  ;;  %v12675_v27 = vld [vmem:[#allocation37_spill] sm:$0xff] }
 0x13c   :  { %2309 = vst.msk [vmem:[#allocation2 + $0x20] sm:$0xff] %vm60_vm1, %v2232_v47  ;;  %v2235_v23 = vadd.f32 %v8634_v7, %v1973_v13  ;;  %v1972_v36 = vadd.f32 %v1901_v52, %v1741_v43  ;;  %v2163_v9 = vpop.f32.mrf.mxu0  ;;  %v2409_v47 = vrot.slane %v2328_v51, 7  ;;  %v12664_v13 = vld [vmem:[#allocation12_spill] sm:$0xff]  ;;  %v1747_v39 = vadd.f32 %v12675_v27, %v1500_v29 }
 0x13d   :  { %v8611_v34 = vpop.f32.mrf.mxu1  ;;  %v766_v7 = vadd.f32 %v12664_v13, %v503_v20  ;;  %v12669_v20 = vld [vmem:[#allocation19_spill] sm:$0xff]  ;;  %v1243_v50 = vadd.f32 %v12670_v40, %v1012_v2  ;;  %v1748_v25 = vadd.f32 %v12671_v16, %v1501_v14  ;;  %v2415_v14 = vrot.slane %v10492_v6, 7  ;;  %v10528_v13 = vld [vmem:[#allocation2 + $0x90] sm:$0xff] }
 0x13e   :  { %2312 = vst.msk [vmem:[#allocation2 + $0x68] sm:$0xff] %vm60_vm1, %v2235_v23  ;;  %v2234_v44 = vadd.f32 %v2163_v9, %v1972_v36  ;;  %v1975_v10 = vadd.f32 %v8611_v34, %v1744_v48  ;;  %v8637_v32 = vpop.f32.mrf.mxu0  ;;  %v12667_v48 = vld [vmem:[#allocation17_spill] sm:$0xff]  ;;  %v1745_v23 = vadd.f32 %v12668_v63, %v1498_v11  ;;  %v1240_v58 = vadd.f32 %v12669_v20, %v1009_v59 }
 0x13f   :  { %v1911_v57 = vpop.f32.mrf.mxu1  ;;  %v1241_v42 = vadd.f32 %v12667_v48, %v1010_v61  ;;  %v1014_v59 = vadd.f32 %v12674_v15, %v12673_v21  ;;  %v1505_v5 = vadd.f32 %v10399_v17, %v1243_v50  ;;  %v10547_v48 = vld [vmem:[%s12582_s3 + $0x14] sm:$0xf]  ;;  %v2424_v6 = vrot.slane %v10528_v13, 7  ;;  %v12679_v20 = vld [vmem:[#allocation5_spill] sm:$0xff] }
 0x140   :  { %2311 = vst.msk [vmem:[#allocation2 + $0x50] sm:$0xff] %vm60_vm1, %v2234_v44  ;;  %v2237_v56 = vadd.f32 %v8637_v32, %v1975_v10  ;;  %v1974_v43 = vadd.f32 %v1911_v57, %v1743_v38  ;;  %v2173_v54 = vpop.f32.mrf.mxu0  ;;  %v12672_v32 = vld [vmem:[#allocation23_spill] sm:$0xff]  ;;  %v1502_v57 = vadd.f32 %v10394_v8, %v1240_v58 }
 0x141   :  { %v8614_v41 = vpop.f32.mrf.mxu1  ;;  %v10486_v52 = vld [vmem:[#allocation2 + $0x38] sm:$0xff]  ;;  %v1503_v38 = vadd.f32 %v10385_v31, %v1241_v42  ;;  %v1242_v1 = vadd.f32 %v12672_v32, %v1011_v30  ;;  %v12676_v31 = vld [vmem:[#allocation8_spill] sm:$0xff]  ;;  %v1013_v30 = vadd.f32 %v12677_v55, %v766_v7 }
 0x142   :  { %2314 = vst.msk [vmem:[#allocation2 + $0x98] sm:$0xff] %vm60_vm1, %v2237_v56  ;;  %v2236_v36 = vadd.f32 %v2173_v54, %v1974_v43  ;;  %v1977_v9 = vadd.f32 %v8614_v41, %v1746_v37  ;;  %v8640_v49 = vpop.f32.mrf.mxu0  ;;  %v2413_v61 = vrot.slane %v10486_v52, 7  ;;  %v10526_v54 = vld [vmem:[#allocation2 + $0x78] sm:$0xff]  ;;  %v1749_v58 = vadd.f32 %v10396_v33, %v1502_v57 }
 0x143   :  { %v1921_v34 = vpop.f32.mrf.mxu1  ;;  %v10497_v51 = vld [vmem:[#allocation2 + $0x20] sm:$0xff]  ;;  %v1750_v17 = vadd.f32 %v10390_v62, %v1503_v38  ;;  %v12680_v38 = vld [vmem:[#allocation27_spill] sm:$0xff] }
 0x144   :  { %2313 = vst.msk [vmem:[#allocation2 + $0x80] sm:$0xff] %vm60_vm1, %v2236_v36  ;;  %v2239_v3 = vadd.f32 %v8640_v49, %v1977_v9  ;;  %v1976_v11 = vadd.f32 %v1921_v34, %v1745_v23  ;;  %v2183_v44 = vpop.f32.mrf.mxu0  ;;  %v2410_v10 = vrot.slane %v10497_v51, 7  ;;  %8656 = vmatmul.mubr.msk.f32.vlgmr.msra.gmra.mxu1 %vm60_vm1, %v10497_v51  ;;  %v1504_v36 = vadd.f32 %v10409_v26, %v1242_v1  ;;  %v2346_v34 = vld [vmem:[#allocation2 + $0xa8] sm:$0xff] }
 0x145   :  { %v8617_v2 = vpop.f32.mrf.mxu1  ;;  %8658 = vmatprep.mubr.msk.f32.mxu1 %vm60_vm1, %v10486_v52  ;;  %8706 = vmatpush3.msk.msra.mxu1 %vm109_vm0, %v12676_v31  ;;  %v10518_v46 = vld [vmem:[#allocation2 + $0x68] sm:$0xff]  ;;  %v2421_v49 = vrot.slane %v10526_v54, 7  ;;  %v2427_v27 = vrot.slane %v2346_v34, 7 }
 0x146   :  { %2316 = vst.msk [vmem:[#allocation2 + $0xc8] sm:$0xff] %vm60_vm1, %v2239_v3  ;;  %v2238_v28 = vadd.f32 %v2183_v44, %v1976_v11  ;;  %v1979_v37 = vadd.f32 %v8617_v2, %v1748_v25  ;;  %v8643_v56 = vpop.f32.mrf.mxu0  ;;  %v10524_v43 = vsel %vm2405_vm3, %v2409_v47, %v2410_v10  ;;  %8757 = vmatprep.subr.msk.mxu1 %vm109_vm0, %v10503_v45  ;;  %v2419_v41 = vrot.slane %v10518_v46, 7  ;;  %v10571_v25 = vld [vmem:[#allocation2 + $0xf8] sm:$0xff] }
 0x147   :  { %v1931_v8 = vpop.f32.mrf.mxu1  ;;  %8682 = vmatmul.mubr.msk.f32.vlgmr.msra.gmra.mxu0 %vm60_vm1, %v10524_v43  ;;  %v10536_v29 = vld [vmem:[#allocation2 + $0x50] sm:$0xff]  ;;  %v10541_v47 = vsel %vm2405_vm3, %v2412_v0, %v2413_v61  ;;  %v1245_v0 = vadd.f32 %v12678_v24, %v1014_v59  ;;  %v1244_v3 = vadd.f32 %v12680_v38, %v1013_v30  ;;  %v1752_v11 = vadd.f32 %v10405_v4, %v1505_v5 }
 0x148   :  { %2315 = vst.msk [vmem:[#allocation2 + $0xb0] sm:$0xff] %vm60_vm1, %v2238_v28  ;;  %v2241_v7 = vadd.f32 %v8643_v56, %v1979_v37  ;;  %v1978_v42 = vadd.f32 %v1931_v8, %v1747_v39  ;;  %v2193_v63 = vpop.f32.mrf.mxu0  ;;  %v2416_v23 = vrot.slane %v10536_v29, 7  ;;  %8659 = vmatmul.mubr.msk.f32.gmra.mxu1 %vm60_vm1, %v10536_v29  ;;  %8684 = vmatprep.mubr.msk.f32.mxu0 %vm60_vm1, %v10541_v47  ;;  %v2349_v61 = vld [vmem:[#allocation2 + $0xf0] sm:$0xff]  ;;  %v2352_v37 = vld [vmem:[#allocation2 + $0x108] sm:$0xff]  ;;  %v2355_v8 = vld [vmem:[#allocation2 + $0x120] sm:$0xff] }
 0x149   :  { %v8620_v9 = vpop.f32.mrf.mxu1  ;;  %8661 = vmatprep.mubr.msk.f32.mxu1 %vm60_vm1, %v10518_v46  ;;  %v10560_v62 = vld [vmem:[#allocation2 + $0x98] sm:$0xff]  ;;  %8732 = vmatpush3.msk.msra.mxu0 %vm109_vm0, %v12679_v20  ;;  %v10584_v10 = vsel %vm2405_vm3, %v2418_v60, %v2419_v41  ;;  %v1507_v1 = vadd.f32 %v10417_v35, %v1245_v0  ;;  %v1751_v12 = vadd.f32 %v10413_v53, %v1504_v36  ;;  %v2431_v35 = vrot.slane %v10571_v25, 7 }
 0x14a   :  { %2318 = vst.msk [vmem:[#allocation2 + $0x128] sm:$0xff] %vm60_vm1, %v2241_v7  ;;  %v2240_v40 = vadd.f32 %v2193_v63, %v1978_v42  ;;  %v1981_v50 = vadd.f32 %v8620_v9, %v1750_v17  ;;  %v8646_v26 = vpop.f32.mrf.mxu0  ;;  %v10569_v16 = vsel %vm2405_vm3, %v2415_v14, %v2416_v23  ;;  %8783 = vmatprep.subr.msk.mxu0 %vm109_vm0, %v10547_v48  ;;  %v2425_v32 = vrot.slane %v10560_v62, 7  ;;  %v2358_v20 = vld [vmem:[#allocation2 + $0x138] sm:$0xff] }
 0x14b   :  { %v1941_v33 = vpop.f32.mrf.mxu1  ;;  %8685 = vmatmul.mubr.msk.f32.gmra.mxu0 %vm60_vm1, %v10569_v16  ;;  %v10579_v44 = vld [vmem:[#allocation2 + $0x80] sm:$0xff]  ;;  %v2430_v39 = vrot.slane %v2349_v61, 7  ;;  %v1506_v2 = vadd.f32 %v10429_v18, %v1244_v3  ;;  %v1754_v18 = vadd.f32 %v10424_v19, %v1507_v1  ;;  %v2433_v7 = vrot.slane %v2352_v37, 7 }
 0x14c   :  { %2317 = vst.msk [vmem:[#allocation2 + $0x110] sm:$0xff] %vm60_vm1, %v2240_v40  ;;  %v2243_v21 = vadd.f32 %v8646_v26, %v1981_v50  ;;  %v1980_v15 = vadd.f32 %v1941_v33, %v1749_v58  ;;  %v2203_v4 = vpop.f32.mrf.mxu0  ;;  %v2422_v59 = vrot.slane %v10579_v44, 7  ;;  %8662 = vmatmul.mubr.msk.f32.gmra.mxu1 %vm60_vm1, %v10579_v44  ;;  %8687 = vmatprep.mubr.msk.f32.mxu0 %vm60_vm1, %v10584_v10  ;;  %v2361_v50 = vld [vmem:[#allocation2 + $0x150] sm:$0xff]  ;;  %v2439_v3 = vrot.slane %v2358_v20, 7 }
 0x14d   :  { %v8623_v60 = vpop.f32.mrf.mxu1  ;;  %8664 = vmatprep.mubr.msk.f32.mxu1 %vm60_vm1, %v10560_v62  ;;  %v10608_v54 = vsel %vm2405_vm3, %v2424_v6, %v2425_v32  ;;  %v2432_v19 = vsel %vm2405_vm3, %v2430_v39, %v2431_v35  ;;  %v1753_v42 = vadd.f32 %v10432_v22, %v1506_v2  ;;  %v2436_v6 = vrot.slane %v2355_v8, 7 }
 0x14e   :  { %2320 = vst.msk [vmem:[#allocation2 + $0x158] sm:$0xff] %vm60_vm1, %v2243_v21  ;;  %v2242_v31 = vadd.f32 %v2203_v4, %v1980_v15  ;;  %v1983_v14 = vadd.f32 %v8623_v60, %v1752_v11  ;;  %v8649_v57 = vpop.f32.mrf.mxu0  ;;  %v10601_v28 = vsel %vm2405_vm3, %v2421_v49, %v2422_v59  ;;  %v2442_v1 = vrot.slane %v2361_v50, 7  ;;  %v2364_v21 = vld [vmem:[#allocation2 + $0x168] sm:$0xff]  ;;  %v2327_v15 = vld [vmem:[#allocation2 + $0x10] sm:$0xff]  ;;  %v2367_v59 = vld [vmem:[#allocation2 + $0x180] sm:$0xff] }
 0x14f   :  { %v1951_v53 = vpop.f32.mrf.mxu1  ;;  %8688 = vmatmul.mubr.msk.f32.gmra.mxu0 %vm60_vm1, %v10601_v28  ;;  %v10605_v56 = vld [vmem:[#allocation2 + $0xb0] sm:$0xff]  ;;  %v12681_v60 = vld [vmem:[#allocation4_spill] sm:$0xff]  ;;  %v2445_v39 = vrot.slane %v2364_v21, 7  ;;  %v2834_v2 = vrot.slane %v2327_v15, 1  ;;  %v2448_v37 = vrot.slane %v2367_v59, 7  ;;  %v2842_v20 = vrot.slane %v10536_v29, 1 }
 0x150   :  { %2319 = vst.msk [vmem:[#allocation2 + $0x140] sm:$0xff] %vm60_vm1, %v2242_v31  ;;  %v2245_v13 = vadd.f32 %v8649_v57, %v1983_v14  ;;  %v1982_v55 = vadd.f32 %v1951_v53, %v1751_v12  ;;  %v2213_v30 = vpop.f32.mrf.mxu0  ;;  %v2428_v5 = vrot.slane %v10605_v56, 7  ;;  %8665 = vmatmul.mubr.msk.f32.gmra.mxu1 %vm60_vm1, %v10605_v56  ;;  %8690 = vmatprep.mubr.msk.f32.mxu0 %vm60_vm1, %v10608_v54  ;;  %v2833_v35 = vrot.slane %v12681_v60, 1  ;;  %v2370_v53 = vld [vmem:[#allocation2 + $0x198] sm:$0xff]  ;;  %v2351_v15 = vld [vmem:[#allocation2 + $0x100] sm:$0xff] }
 0x151   :  { %v8626_v41 = vpop.f32.mrf.mxu1  ;;  %8667 = vmatprep.mubr.msk.f32.mxu1 %vm60_vm1, %v10571_v25  ;;  %v10619_v17 = vld [vmem:[#allocation2 + $0x128] sm:$0xff]  ;;  %v2845_v50 = vrot.slane %v10518_v46, 1 }
 0x152   :  { %2322 = vst.msk [vmem:[#allocation2 + $0x188] sm:$0xff] %vm60_vm1, %v2245_v13  ;;  %v2244_v63 = vadd.f32 %v2213_v30, %v1982_v55  ;;  %v1985_v23 = vadd.f32 %v8626_v41, %v1754_v18  ;;  %v8652_v24 = vpop.f32.mrf.mxu0  ;;  %v10625_v0 = vsel %vm2405_vm3, %v2427_v27, %v2428_v5  ;;  %v2437_v49 = vrot.slane %v10619_v17, 7  ;;  %v2330_v13 = vld [vmem:[#allocation2 + $0x28] sm:$0xff]  ;;  %v2333_v55 = vld [vmem:[#allocation2 + $0x40] sm:$0xff] }
 0x153   :  { %v1961_v36 = vpop.f32.mrf.mxu1  ;;  %8691 = vmatmul.mubr.msk.f32.gmra.mxu0 %vm60_vm1, %v10625_v0  ;;  %v10629_v9 = vld [vmem:[#allocation2 + $0x110] sm:$0xff]  ;;  %v2451_v5 = vrot.slane %v2370_v53, 7  ;;  %v2835_v8 = vsel %vm521_vm2, %v2833_v35, %v2834_v2  ;;  %v2836_v41 = vrot.slane %v10497_v51, 1  ;;  %v2348_v35 = vld [vmem:[#allocation2 + $0xb8] sm:$0xff]  ;;  %v2858_v2 = vrot.slane %v2351_v15, 1 }
 0x154   :  { %2321 = vst.msk [vmem:[#allocation2 + $0x170] sm:$0xff] %vm60_vm1, %v2244_v63  ;;  %v2247_v22 = vadd.f32 %v8652_v24, %v1985_v23  ;;  %v1984_v58 = vadd.f32 %v1961_v36, %v1753_v42  ;;  %v2434_v40 = vrot.slane %v10629_v9, 7  ;;  %8668 = vmatmul.mubr.msk.f32.gmra.mxu1 %vm60_vm1, %v10629_v9  ;;  %8693 = vmatprep.mubr.msk.f32.mxu0 %vm60_vm1, %v2432_v19  ;;  %v2223_v26 = vpop.f32.mrf.mxu0  ;;  %v2837_v42 = vrot.slane %v2330_v13, 1  ;;  %v2336_v36 = vld [vmem:[#allocation2 + $0x58] sm:$0xff]  ;;  %v10761_v13 = vld [vmem:[#allocation2 + $0xc8] sm:$0xff] }
 0x155   :  { %8670 = vmatprep.mubr.msk.f32.mxu1 %vm60_vm1, %v10619_v17  ;;  %v10639_v34 = vld [vmem:[#allocation2 + $0x158] sm:$0xff]  ;;  %v10650_v33 = vsel %vm2405_vm3, %v2436_v6, %v2437_v49  ;;  %v2839_v63 = vrot.slane %v10486_v52, 1  ;;  %v2840_v24 = vrot.slane %v2333_v55, 1  ;;  %v2339_v49 = vld [vmem:[#allocation2 + $0x70] sm:$0xff]  ;;  %v2855_v53 = vrot.slane %v2348_v35, 1 }
 0x156   :  { %2324 = vst.msk [vmem:[#allocation2 + $0x1b8] sm:$0xff] %vm60_vm1, %v2247_v22  ;;  %v2246_v61 = vadd.f32 %v2223_v26, %v1984_v58  ;;  %v10643_v38 = vsel %vm2405_vm3, %v2433_v7, %v2434_v40  ;;  %v2443_v32 = vrot.slane %v10639_v34, 7  ;;  %v10708_v22 = vsel %vm521_vm2, %v2836_v41, %v2837_v42  ;;  %v10713_v40 = vld [vmem:[%s12582_s3 + $0x18] sm:$0xf]  ;;  %v2357_v55 = vld [vmem:[#allocation2 + $0x130] sm:$0xff] }
 0x157   :  { %8694 = vmatmul.mubr.msk.f32.gmra.mxu0 %vm60_vm1, %v10643_v38  ;;  %v10647_v11 = vld [vmem:[#allocation2 + $0x140] sm:$0xff]  ;;  %v2843_v58 = vrot.slane %v2336_v36, 1  ;;  %v10721_v26 = vsel %vm521_vm2, %v2839_v63, %v2840_v24  ;;  %v3181_v41 = vrot.slane %v10761_v13, 7  ;;  %v2860_v42 = vrot.slane %v10629_v9, 1  ;;  %v2366_v15 = vld [vmem:[#allocation2 + $0x178] sm:$0xff] }
 0x158   :  { %2323 = vst.msk [vmem:[#allocation2 + $0x1a0] sm:$0xff] %vm60_vm1, %v2246_v61  ;;  %v2440_v4 = vrot.slane %v10647_v11, 7  ;;  %8671 = vmatmul.mubr.msk.f32.gmra.mxu1 %vm60_vm1, %v10647_v11  ;;  %8696 = vmatprep.mubr.msk.f32.mxu0 %vm60_vm1, %v10650_v33  ;;  %v10672_v14 = vsel %vm2405_vm3, %v2442_v1, %v2443_v32  ;;  %v2846_v61 = vrot.slane %v2339_v49, 1  ;;  %v2345_v32 = vld [vmem:[#allocation2 + $0xa0] sm:$0xff]  ;;  %v2848_v1 = vrot.slane %v10579_v44, 1  ;;  %v2360_v49 = vld [vmem:[#allocation2 + $0x148] sm:$0xff] }
 0x159   :  { %8673 = vmatprep.mubr.msk.f32.mxu1 %vm60_vm1, %v10639_v34  ;;  %v10661_v12 = vld [vmem:[#allocation2 + $0x188] sm:$0xff]  ;;  %v2852_v60 = vrot.slane %v2345_v32, 1  ;;  %v2863_v24 = vrot.slane %v10619_v17, 1  ;;  %v2864_v36 = vrot.slane %v2357_v55, 1  ;;  %v2869_v32 = vrot.slane %v10639_v34, 1 }
 0x15a   :  { %v10665_v27 = vsel %vm2405_vm3, %v2439_v3, %v2440_v4  ;;  %v2449_v57 = vrot.slane %v10661_v12, 7  ;;  %v2342_v3 = vld [vmem:[#allocation2 + $0x88] sm:$0xff]  ;;  %v10738_v4 = vld [vmem:[%s12582_s3 + $0x1c] sm:$0xf]  ;;  %v10746_v59 = vsel %vm521_vm2, %v2845_v50, %v2846_v61  ;;  %v2866_v50 = vrot.slane %v10647_v11, 1 }
 0x15b   :  { %8697 = vmatmul.mubr.msk.f32.gmra.mxu0 %vm60_vm1, %v10665_v27  ;;  %v10669_v31 = vld [vmem:[#allocation2 + $0x170] sm:$0xff]  ;;  %v2849_v21 = vrot.slane %v2342_v3, 1  ;;  %v2867_v3 = vrot.slane %v2360_v49, 1  ;;  %v7790_v49 = vld [vmem:[%s12582_s3 + $0x20] sm:$0xf] }
 0x15c   :  { %v2446_v18 = vrot.slane %v10669_v31, 7  ;;  %8674 = vmatmul.mubr.msk.f32.gmra.mxu1 %vm60_vm1, %v10669_v31  ;;  %8699 = vmatprep.mubr.msk.f32.mxu0 %vm60_vm1, %v10672_v14  ;;  %v10692_v7 = vsel %vm2405_vm3, %v2448_v37, %v2449_v57  ;;  %v2854_v57 = vrot.slane %v10605_v56, 1 }
 0x15d   :  { %8676 = vmatprep.mubr.msk.f32.mxu1 %vm60_vm1, %v10661_v12  ;;  %v10759_v37 = vsel %vm521_vm2, %v2848_v1, %v2849_v21  ;;  %v10801_v1 = vsel %vm521_vm2, %v2863_v24, %v2864_v36  ;;  %v10809_v35 = vsel %vm521_vm2, %v2866_v50, %v2867_v3  ;;  %v3887_v3 = vld [vmem:[#allocation2 + $0xd8] sm:$0xff] }
 0x15e   :  { %v10683_v30 = vsel %vm2405_vm3, %v2445_v39, %v2446_v18  ;;  %v2857_v39 = vrot.slane %v10571_v25, 1  ;;  %v3100_v18 = vld [vmem:[#allocation2 + $0xc0] sm:$0xff]  ;;  %v2354_v25 = vld [vmem:[#allocation2 + $0x118] sm:$0xff]  ;;  %v10778_v63 = vsel %vm521_vm2, %v2854_v57, %v2855_v53  ;;  %v2372_v53 = vld [vmem:[#allocation2 + $0x1a8] sm:$0xff] }
 0x15f   :  { %8700 = vmatmul.mubr.msk.f32.gmra.mxu0 %vm60_vm1, %v10683_v30  ;;  %v10689_v19 = vld [vmem:[#allocation2 + $0x1a0] sm:$0xff]  ;;  %v2879_v55 = vrot.slane %v2372_v53, 1 }
 0x160   :  { %v2452_v23 = vrot.slane %v10689_v19, 7  ;;  %8677 = vmatmul.mubr.msk.f32.gmra.mxu1 %vm60_vm1, %v10689_v19  ;;  %8702 = vmatprep.mubr.msk.f32.mxu0 %vm60_vm1, %v10692_v7 }
 0x161   :  { %8707 = vmatprep.mubr.msk.f32.mxu1 %vm60_vm1, %v2835_v8  ;;  %v3180_v8 = vrot.slane %v3100_v18, 7  ;;  %v2878_v18 = vrot.slane %v10689_v19, 1 }
 0x162   :  { %v10702_v6 = vsel %vm2405_vm3, %v2451_v5, %v2452_v23  ;;  %v2859_v5 = vsel %vm521_vm2, %v2857_v39, %v2858_v2  ;;  %v2861_v23 = vrot.slane %v2354_v25, 1  ;;  %v2873_v39 = vrot.slane %v2366_v15, 1 }
 0x163   :  { %8703 = vmatmul.mubr.msk.f32.gmra.mxu0 %vm60_vm1, %v10702_v6  ;;  %v10842_v24 = vsel %vm521_vm2, %v2878_v18, %v2879_v55 }
 0x164   :  { %8708 = vmatmul.mubr.msk.f32.vlgmr.msra.gmra.mxu1 %vm60_vm1, %v10708_v22  ;;  %8733 = vmatprep.mubr.msk.f32.mxu0 %vm60_vm1, %v10524_v43  ;;  %v10733_v43 = vsel %vm521_vm2, %v2842_v20, %v2843_v58  ;;  %v2363_v20 = vld [vmem:[#allocation2 + $0x160] sm:$0xff]  ;;  %v10787_v58 = vsel %vm2405_vm3, %v3180_v8, %v3181_v41  ;;  %v10793_v61 = vsel %vm521_vm2, %v2860_v42, %v2861_v23  ;;  %v10827_v8 = vld [vmem:[#allocation2 + $0x1b8] sm:$0xff] }
 0x165   :  { %8710 = vmatprep.mubr.msk.f32.mxu1 %vm60_vm1, %v10721_v26  ;;  %8758 = vmatpush3.msk.msra.mxu1 %vm109_vm0, %v10503_v45  ;;  %v2851_v45 = vrot.slane %v10560_v62, 1  ;;  %v2870_v21 = vrot.slane %v2363_v20, 1  ;;  %v3205_v23 = vrot.slane %v10827_v8, 7  ;;  %v3664_v20 = vrot.slane %v10827_v8, 1 }
 0x166   :  { %8809 = vmatprep.subr.msk.mxu1 %vm109_vm0, %v10713_v40 }
 0x167   :  { %8734 = vmatmul.mubr.msk.f32.vlgmr.msra.gmra.mxu0 %vm60_vm1, %v10541_v47  ;;  %v10817_v2 = vsel %vm521_vm2, %v2869_v32, %v2870_v21  ;;  %v3888_v32 = vld [vmem:[#allocation2 + $0xe0] sm:$0xff] }
 0x168   :  { %8711 = vmatmul.mubr.msk.f32.gmra.mxu1 %vm60_vm1, %v10733_v43  ;;  %8736 = vmatprep.mubr.msk.f32.mxu0 %vm60_vm1, %v10569_v16 }
 0x169   :  { %8713 = vmatprep.mubr.msk.f32.mxu1 %vm60_vm1, %v10746_v59  ;;  %8784 = vmatpush3.msk.msra.mxu0 %vm109_vm0, %v10547_v48  ;;  %v10768_v48 = vsel %vm521_vm2, %v2851_v45, %v2852_v60  ;;  %v2369_v45 = vld [vmem:[#allocation2 + $0x190] sm:$0xff]  ;;  %v2872_v60 = vrot.slane %v10669_v31, 1 }
 0x16a   :  { %8835 = vmatprep.subr.msk.mxu0 %vm109_vm0, %v10738_v4  ;;  %v2876_v57 = vrot.slane %v2369_v45, 1 }
 0x16b   :  { %8737 = vmatmul.mubr.msk.f32.gmra.mxu0 %vm60_vm1, %v10584_v10  ;;  %v10825_v25 = vsel %vm521_vm2, %v2872_v60, %v2873_v39 }
 0x16c   :  { %8714 = vmatmul.mubr.msk.f32.gmra.mxu1 %vm60_vm1, %v10759_v37  ;;  %8739 = vmatprep.mubr.msk.f32.mxu0 %vm60_vm1, %v10601_v28 }
 0x16d   :  { %8716 = vmatprep.mubr.msk.f32.mxu1 %vm60_vm1, %v10768_v48 }
 0x16f   :  { %8740 = vmatmul.mubr.msk.f32.gmra.mxu0 %vm60_vm1, %v10608_v54 }
 0x170   :  { %8717 = vmatmul.mubr.msk.f32.gmra.mxu1 %vm60_vm1, %v10778_v63  ;;  %8742 = vmatprep.mubr.msk.f32.mxu0 %vm60_vm1, %v10625_v0 }
 0x171   :  { %8719 = vmatprep.mubr.msk.f32.mxu1 %vm60_vm1, %v2859_v5  ;;  %v3124_v5 = vld [vmem:[#allocation2 + $0x1b0] sm:$0xff] }
 0x172   :  { %v3204_v42 = vrot.slane %v3124_v5, 7 }
 0x173   :  { %8743 = vmatmul.mubr.msk.f32.gmra.mxu0 %vm60_vm1, %v10787_v58 }
 0x174   :  { %8720 = vmatmul.mubr.msk.f32.gmra.mxu1 %vm60_vm1, %v10793_v61  ;;  %8745 = vmatprep.mubr.msk.f32.mxu0 %vm60_vm1, %v10643_v38  ;;  %v2875_v38 = vrot.slane %v10661_v12, 1  ;;  %v10851_v36 = vsel %vm2405_vm3, %v3204_v42, %v3205_v23 }
 0x175   :  { %8722 = vmatprep.mubr.msk.f32.mxu1 %vm60_vm1, %v10801_v1 }
 0x176   :  { %v10834_v41 = vsel %vm521_vm2, %v2875_v38, %v2876_v57 }
 0x177   :  { %8746 = vmatmul.mubr.msk.f32.gmra.mxu0 %vm60_vm1, %v10650_v33 }
 0x178   :  { %8723 = vmatmul.mubr.msk.f32.gmra.mxu1 %vm60_vm1, %v10809_v35  ;;  %8748 = vmatprep.mubr.msk.f32.mxu0 %vm60_vm1, %v10665_v27 }
 0x179   :  { %8725 = vmatprep.mubr.msk.f32.mxu1 %vm60_vm1, %v10817_v2 }
 0x17b   :  { %8749 = vmatmul.mubr.msk.f32.gmra.mxu0 %vm60_vm1, %v10672_v14 }
 0x17c   :  { %8726 = vmatmul.mubr.msk.f32.gmra.mxu1 %vm60_vm1, %v10825_v25  ;;  %8751 = vmatprep.mubr.msk.f32.mxu0 %vm60_vm1, %v10683_v30 }
 0x17d   :  { %8728 = vmatprep.mubr.msk.f32.mxu1 %vm60_vm1, %v10834_v41 }
 0x17f   :  { %8752 = vmatmul.mubr.msk.f32.gmra.mxu0 %vm60_vm1, %v10692_v7 }
 0x180   :  { %8729 = vmatmul.mubr.msk.f32.gmra.mxu1 %vm60_vm1, %v10842_v24  ;;  %8754 = vmatprep.mubr.msk.f32.mxu0 %vm60_vm1, %v10702_v6 }
 0x181   :  { %8759 = vmatprep.mubr.msk.f32.mxu1 %vm60_vm1, %v10497_v51  ;;  %v3102_v51 = vld [vmem:[#allocation2 + $0xd0] sm:$0xff] }
 0x183   :  { %8755 = vmatmul.mubr.msk.f32.gmra.mxu0 %vm60_vm1, %v10851_v36 }
 0x184   :  { %8760 = vmatmul.mubr.msk.f32.vlgmr.msra.gmra.mxu1 %vm60_vm1, %v10486_v52  ;;  %8785 = vmatprep.mubr.msk.f32.mxu0 %vm60_vm1, %v10708_v22  ;;  %v3640_v22 = vrot.slane %v10761_v13, 1 }
 0x185   :  { %8762 = vmatprep.mubr.msk.f32.mxu1 %vm60_vm1, %v10536_v29  ;;  %8810 = vmatpush3.msk.msra.mxu1 %vm109_vm0, %v10713_v40  ;;  %v3641_v40 = vrot.slane %v3102_v51, 1 }
 0x186   :  { %8861 = vmatprep.subr.msk.mxu1 %vm109_vm0, %v7790_v49 }
 0x187   :  { %8786 = vmatmul.mubr.msk.f32.vlgmr.msra.gmra.mxu0 %vm60_vm1, %v10721_v26 }
 0x188   :  { %8763 = vmatmul.mubr.msk.f32.gmra.mxu1 %vm60_vm1, %v10518_v46  ;;  %8788 = vmatprep.mubr.msk.f32.mxu0 %vm60_vm1, %v10733_v43 }
 0x189   :  { %8765 = vmatprep.mubr.msk.f32.mxu1 %vm60_vm1, %v10579_v44  ;;  %8836 = vmatpush3.msk.msra.mxu0 %vm109_vm0, %v10738_v4  ;;  %v10895_v4 = vsel %vm521_vm2, %v3640_v22, %v3641_v40 }
 0x18b   :  { %8789 = vmatmul.mubr.msk.f32.gmra.mxu0 %vm60_vm1, %v10746_v59 }
 0x18c   :  { %8766 = vmatmul.mubr.msk.f32.gmra.mxu1 %vm60_vm1, %v10560_v62  ;;  %8791 = vmatprep.mubr.msk.f32.mxu0 %vm60_vm1, %v10759_v37 }
 0x18d   :  { %8768 = vmatprep.mubr.msk.f32.mxu1 %vm60_vm1, %v10605_v56 }
 0x18f   :  { %8792 = vmatmul.mubr.msk.f32.gmra.mxu0 %vm60_vm1, %v10768_v48 }
 0x190   :  { %8769 = vmatmul.mubr.msk.f32.gmra.mxu1 %vm60_vm1, %v10761_v13  ;;  %8794 = vmatprep.mubr.msk.f32.mxu0 %vm60_vm1, %v10778_v63 }
 0x191   :  { %8771 = vmatprep.mubr.msk.f32.mxu1 %vm60_vm1, %v10629_v9  ;;  %v3126_v9 = vld [vmem:[#allocation2 + $0x1c0] sm:$0xff] }
 0x192   :  { %v3665_v50 = vrot.slane %v3126_v9, 1 }
 0x193   :  { %8795 = vmatmul.mubr.msk.f32.gmra.mxu0 %vm60_vm1, %v10895_v4 }
 0x194   :  { %8772 = vmatmul.mubr.msk.f32.gmra.mxu1 %vm60_vm1, %v10619_v17  ;;  %8797 = vmatprep.mubr.msk.f32.mxu0 %vm60_vm1, %v10793_v61  ;;  %v10931_v61 = vsel %vm521_vm2, %v3664_v20, %v3665_v50 }
 0x195   :  { %8774 = vmatprep.mubr.msk.f32.mxu1 %vm60_vm1, %v10647_v11 }
 0x197   :  { %8798 = vmatmul.mubr.msk.f32.gmra.mxu0 %vm60_vm1, %v10801_v1 }
 0x198   :  { %8775 = vmatmul.mubr.msk.f32.gmra.mxu1 %vm60_vm1, %v10639_v34  ;;  %8800 = vmatprep.mubr.msk.f32.mxu0 %vm60_vm1, %v10809_v35 }
 0x199   :  { %8777 = vmatprep.mubr.msk.f32.mxu1 %vm60_vm1, %v10669_v31 }
 0x19b   :  { %8801 = vmatmul.mubr.msk.f32.gmra.mxu0 %vm60_vm1, %v10817_v2 }
 0x19c   :  { %8778 = vmatmul.mubr.msk.f32.gmra.mxu1 %vm60_vm1, %v10661_v12  ;;  %8803 = vmatprep.mubr.msk.f32.mxu0 %vm60_vm1, %v10825_v25 }
 0x19d   :  { %8780 = vmatprep.mubr.msk.f32.mxu1 %vm60_vm1, %v10689_v19 }
 0x19f   :  { %8804 = vmatmul.mubr.msk.f32.gmra.mxu0 %vm60_vm1, %v10834_v41 }
 0x1a0   :  { %8781 = vmatmul.mubr.msk.f32.gmra.mxu1 %vm60_vm1, %v10827_v8  ;;  %8806 = vmatprep.mubr.msk.f32.mxu0 %vm60_vm1, %v10842_v24 }
 0x1a1   :  { %8811 = vmatprep.mubr.msk.f32.mxu1 %vm60_vm1, %v10541_v47  ;;  %v3968_v47 = vrot.slane %v3888_v32, 7 }
 0x1a3   :  { %8807 = vmatmul.mubr.msk.f32.gmra.mxu0 %vm60_vm1, %v10931_v61 }
 0x1a4   :  { %8812 = vmatmul.mubr.msk.f32.vlgmr.msra.gmra.mxu1 %vm60_vm1, %v10569_v16  ;;  %8837 = vmatprep.mubr.msk.f32.mxu0 %vm60_vm1, %v10486_v52  ;;  %v3967_v52 = vrot.slane %v3887_v3, 7 }
 0x1a5   :  { %8814 = vmatprep.mubr.msk.f32.mxu1 %vm60_vm1, %v10584_v10  ;;  %8862 = vmatpush3.msk.msra.mxu1 %vm109_vm0, %v7790_v49 }
 0x1a7   :  { %8838 = vmatmul.mubr.msk.f32.vlgmr.msra.gmra.mxu0 %vm60_vm1, %v10536_v29  ;;  %v3969_v29 = vsel %vm2405_vm3, %v3967_v52, %v3968_v47 }
 0x1a8   :  { %8815 = vmatmul.mubr.msk.f32.gmra.mxu1 %vm60_vm1, %v10601_v28  ;;  %8840 = vmatprep.mubr.msk.f32.mxu0 %vm60_vm1, %v10518_v46  ;;  %v3911_v46 = vld [vmem:[#allocation2 + $0x1c8] sm:$0xff] }
 0x1a9   :  { %8817 = vmatprep.mubr.msk.f32.mxu1 %vm60_vm1, %v10608_v54  ;;  %v3991_v16 = vrot.slane %v3911_v46, 7  ;;  %v3889_v28 = vld [vmem:[#allocation2 + $0xe8] sm:$0xff] }
 0x1aa   :  { %v4428_v54 = vrot.slane %v3889_v28, 1 }
 0x1ab   :  { %8841 = vmatmul.mubr.msk.f32.gmra.mxu0 %vm60_vm1, %v10579_v44 }
 0x1ac   :  { %8818 = vmatmul.mubr.msk.f32.gmra.mxu1 %vm60_vm1, %v10625_v0  ;;  %8843 = vmatprep.mubr.msk.f32.mxu0 %vm60_vm1, %v10560_v62  ;;  %v3912_v62 = vld [vmem:[#allocation2 + $0x1d0] sm:$0xff]  ;;  %v3913_v0 = vld [vmem:[#allocation2 + $0x1d8] sm:$0xff] }
 0x1ad   :  { %8820 = vmatprep.mubr.msk.f32.mxu1 %vm60_vm1, %v10787_v58  ;;  %v3992_v44 = vrot.slane %v3912_v62, 7 }
 0x1af   :  { %8844 = vmatmul.mubr.msk.f32.gmra.mxu0 %vm60_vm1, %v10605_v56  ;;  %v3993_v10 = vsel %vm2405_vm3, %v3991_v16, %v3992_v44  ;;  %v4427_v56 = vrot.slane %v3888_v32, 1 }
 0x1b0   :  { %8821 = vmatmul.mubr.msk.f32.gmra.mxu1 %vm60_vm1, %v3969_v29  ;;  %8846 = vmatprep.mubr.msk.f32.mxu0 %vm60_vm1, %v10761_v13 }
 0x1b1   :  { %8823 = vmatprep.mubr.msk.f32.mxu1 %vm60_vm1, %v10650_v33 }
 0x1b3   :  { %8847 = vmatmul.mubr.msk.f32.gmra.mxu0 %vm60_vm1, %v3888_v32 }
 0x1b4   :  { %8824 = vmatmul.mubr.msk.f32.gmra.mxu1 %vm60_vm1, %v10665_v27  ;;  %8849 = vmatprep.mubr.msk.f32.mxu0 %vm60_vm1, %v10619_v17  ;;  %v4429_v17 = vsel %vm521_vm2, %v4427_v56, %v4428_v54 }
 0x1b5   :  { %8826 = vmatprep.mubr.msk.f32.mxu1 %vm60_vm1, %v10672_v14 }
 0x1b7   :  { %8850 = vmatmul.mubr.msk.f32.gmra.mxu0 %vm60_vm1, %v10647_v11  ;;  %v4452_v11 = vrot.slane %v3913_v0, 1 }
 0x1b8   :  { %8827 = vmatmul.mubr.msk.f32.gmra.mxu1 %vm60_vm1, %v10683_v30  ;;  %8852 = vmatprep.mubr.msk.f32.mxu0 %vm60_vm1, %v10639_v34  ;;  %v4451_v34 = vrot.slane %v3912_v62, 1 }
 0x1b9   :  { %8829 = vmatprep.mubr.msk.f32.mxu1 %vm60_vm1, %v10692_v7 }
 0x1ba   :  { %v4453_v33 = vsel %vm521_vm2, %v4451_v34, %v4452_v11 }
 0x1bb   :  { %8853 = vmatmul.mubr.msk.f32.gmra.mxu0 %vm60_vm1, %v10669_v31  ;;  %v12682_v31 = vmov 0.0  }
 0x1bc   :  { %8830 = vmatmul.mubr.msk.f32.gmra.mxu1 %vm60_vm1, %v10702_v6  ;;  %8855 = vmatprep.mubr.msk.f32.mxu0 %vm60_vm1, %v10661_v12  ;;  %4815 = vst.msk [vmem:[#allocation3] sm:$0xff] %vm4652_vm4, %v12682_v31  ;;  %4816 = vst.msk [vmem:[#allocation3 + $0x8] sm:$0xff] %vm4652_vm4, %v12682_v31 }
 0x1bd   :  { %8832 = vmatprep.mubr.msk.f32.mxu1 %vm60_vm1, %v10851_v36  ;;  %4817 = vst.msk [vmem:[#allocation3 + $0x10] sm:$0xff] %vm4652_vm4, %v12682_v31  ;;  %4818 = vst.msk [vmem:[#allocation3 + $0x18] sm:$0xff] %vm4652_vm4, %v12682_v31 }
 0x1be   :  { %4819 = vst.msk [vmem:[#allocation3 + $0x20] sm:$0xff] %vm4652_vm4, %v12682_v31  ;;  %4820 = vst.msk [vmem:[#allocation3 + $0x28] sm:$0xff] %vm4652_vm4, %v12682_v31 }
 0x1bf   :  { %8856 = vmatmul.mubr.msk.f32.gmra.mxu0 %vm60_vm1, %v10689_v19  ;;  %4821 = vst.msk [vmem:[#allocation3 + $0x30] sm:$0xff] %vm4652_vm4, %v12682_v31  ;;  %4822 = vst.msk [vmem:[#allocation3 + $0x38] sm:$0xff] %vm4652_vm4, %v12682_v31 }
 0x1c0   :  { %8833 = vmatmul.mubr.msk.f32.gmra.mxu1 %vm60_vm1, %v3993_v10  ;;  %8858 = vmatprep.mubr.msk.f32.mxu0 %vm60_vm1, %v10827_v8  ;;  %4823 = vst.msk [vmem:[#allocation3 + $0x40] sm:$0xff] %vm4652_vm4, %v12682_v31  ;;  %4824 = vst.msk [vmem:[#allocation3 + $0x48] sm:$0xff] %vm4652_vm4, %v12682_v31 }
 0x1c1   :  { %8863 = vmatprep.mubr.msk.f32.mxu1 %vm60_vm1, %v10721_v26  ;;  %4825 = vst.msk [vmem:[#allocation3 + $0x50] sm:$0xff] %vm4652_vm4, %v12682_v31  ;;  %4826 = vst.msk [vmem:[#allocation3 + $0x58] sm:$0xff] %vm4652_vm4, %v12682_v31 }
 0x1c2   :  { %4827 = vst.msk [vmem:[#allocation3 + $0x60] sm:$0xff] %vm4652_vm4, %v12682_v31  ;;  %4828 = vst.msk [vmem:[#allocation3 + $0x68] sm:$0xff] %vm4652_vm4, %v12682_v31 }
 0x1c3   :  { %8859 = vmatmul.mubr.msk.f32.gmra.mxu0 %vm60_vm1, %v3912_v62  ;;  %4829 = vst.msk [vmem:[#allocation3 + $0x70] sm:$0xff] %vm4652_vm4, %v12682_v31  ;;  %4830 = vst.msk [vmem:[#allocation3 + $0x78] sm:$0xff] %vm4652_vm4, %v12682_v31 }
 0x1c4   :  { %8864 = vmatmul.mubr.msk.f32.vlgmr.msra.gmra.mxu1 %vm60_vm1, %v10733_v43  ;;  %4831 = vst.msk [vmem:[#allocation3 + $0x80] sm:$0xff] %vm4652_vm4, %v12682_v31  ;;  %4832 = vst.msk [vmem:[#allocation3 + $0x88] sm:$0xff] %vm4652_vm4, %v12682_v31 }
 0x1c5   :  { %8866 = vmatprep.mubr.msk.f32.mxu1 %vm60_vm1, %v10746_v59  ;;  %4833 = vst.msk [vmem:[#allocation3 + $0x90] sm:$0xff] %vm4652_vm4, %v12682_v31  ;;  %4834 = vst.msk [vmem:[#allocation3 + $0x98] sm:$0xff] %vm4652_vm4, %v12682_v31 }
 0x1c6   :  { %4835 = vst.msk [vmem:[#allocation3 + $0xa0] sm:$0xff] %vm4652_vm4, %v12682_v31  ;;  %4836 = vst.msk [vmem:[#allocation3 + $0xa8] sm:$0xff] %vm4652_vm4, %v12682_v31 }
 0x1c7   :  { %4837 = vst.msk [vmem:[#allocation3 + $0xb0] sm:$0xff] %vm4652_vm4, %v12682_v31  ;;  %4838 = vst.msk [vmem:[#allocation3 + $0xb8] sm:$0xff] %vm4652_vm4, %v12682_v31 }
 0x1c8   :  { %8867 = vmatmul.mubr.msk.f32.gmra.mxu1 %vm60_vm1, %v10759_v37  ;;  %4839 = vst.msk [vmem:[#allocation3 + $0xc0] sm:$0xff] %vm4652_vm4, %v12682_v31  ;;  %4840 = vst.msk [vmem:[#allocation3 + $0xc8] sm:$0xff] %vm4652_vm4, %v12682_v31 }
 0x1c9   :  { %8869 = vmatprep.mubr.msk.f32.mxu1 %vm60_vm1, %v10768_v48  ;;  %4841 = vst.msk [vmem:[#allocation3 + $0xd0] sm:$0xff] %vm4652_vm4, %v12682_v31  ;;  %4842 = vst.msk [vmem:[#allocation3 + $0xd8] sm:$0xff] %vm4652_vm4, %v12682_v31 }
 0x1ca   :  { %4843 = vst.msk [vmem:[#allocation3 + $0xe0] sm:$0xff] %vm4652_vm4, %v12682_v31  ;;  %4844 = vst.msk [vmem:[#allocation3 + $0xe8] sm:$0xff] %vm4652_vm4, %v12682_v31 }
 0x1cb   :  { %4845 = vst.msk [vmem:[#allocation3 + $0xf0] sm:$0xff] %vm4652_vm4, %v12682_v31  ;;  %4846 = vst.msk [vmem:[#allocation3 + $0xf8] sm:$0xff] %vm4652_vm4, %v12682_v31 }
 0x1cc   :  { %8870 = vmatmul.mubr.msk.f32.gmra.mxu1 %vm60_vm1, %v10778_v63  ;;  %4847 = vst.msk [vmem:[#allocation3 + $0x100] sm:$0xff] %vm4652_vm4, %v12682_v31  ;;  %4848 = vst.msk [vmem:[#allocation3 + $0x108] sm:$0xff] %vm4652_vm4, %v12682_v31 }
 0x1cd   :  { %8872 = vmatprep.mubr.msk.f32.mxu1 %vm60_vm1, %v10895_v4  ;;  %4849 = vst.msk [vmem:[#allocation3 + $0x110] sm:$0xff] %vm4652_vm4, %v12682_v31  ;;  %4850 = vst.msk [vmem:[#allocation3 + $0x118] sm:$0xff] %vm4652_vm4, %v12682_v31 }
 0x1ce   :  { %4851 = vst.msk [vmem:[#allocation3 + $0x120] sm:$0xff] %vm4652_vm4, %v12682_v31  ;;  %4852 = vst.msk [vmem:[#allocation3 + $0x128] sm:$0xff] %vm4652_vm4, %v12682_v31 }
 0x1cf   :  { %4853 = vst.msk [vmem:[#allocation3 + $0x130] sm:$0xff] %vm4652_vm4, %v12682_v31  ;;  %4854 = vst.msk [vmem:[#allocation3 + $0x138] sm:$0xff] %vm4652_vm4, %v12682_v31 }
 0x1d0   :  { %8873 = vmatmul.mubr.msk.f32.gmra.mxu1 %vm60_vm1, %v4429_v17  ;;  %4855 = vst.msk [vmem:[#allocation3 + $0x140] sm:$0xff] %vm4652_vm4, %v12682_v31  ;;  %4856 = vst.msk [vmem:[#allocation3 + $0x148] sm:$0xff] %vm4652_vm4, %v12682_v31 }
 0x1d1   :  { %8875 = vmatprep.mubr.msk.f32.mxu1 %vm60_vm1, %v10801_v1  ;;  %4857 = vst.msk [vmem:[#allocation3 + $0x150] sm:$0xff] %vm4652_vm4, %v12682_v31  ;;  %4858 = vst.msk [vmem:[#allocation3 + $0x158] sm:$0xff] %vm4652_vm4, %v12682_v31 }
 0x1d2   :  { %4859 = vst.msk [vmem:[#allocation3 + $0x160] sm:$0xff] %vm4652_vm4, %v12682_v31  ;;  %4860 = vst.msk [vmem:[#allocation3 + $0x168] sm:$0xff] %vm4652_vm4, %v12682_v31 }
 0x1d3   :  { %4861 = vst.msk [vmem:[#allocation3 + $0x170] sm:$0xff] %vm4652_vm4, %v12682_v31  ;;  %4862 = vst.msk [vmem:[#allocation3 + $0x178] sm:$0xff] %vm4652_vm4, %v12682_v31 }
 0x1d4   :  { %8876 = vmatmul.mubr.msk.f32.gmra.mxu1 %vm60_vm1, %v10809_v35  ;;  %4863 = vst.msk [vmem:[#allocation3 + $0x180] sm:$0xff] %vm4652_vm4, %v12682_v31  ;;  %4864 = vst.msk [vmem:[#allocation3 + $0x188] sm:$0xff] %vm4652_vm4, %v12682_v31 }
 0x1d5   :  { %8878 = vmatprep.mubr.msk.f32.mxu1 %vm60_vm1, %v10817_v2  ;;  %4865 = vst.msk [vmem:[#allocation3 + $0x190] sm:$0xff] %vm4652_vm4, %v12682_v31  ;;  %4866 = vst.msk [vmem:[#allocation3 + $0x198] sm:$0xff] %vm4652_vm4, %v12682_v31 }
 0x1d6   :  { %4867 = vst.msk [vmem:[#allocation3 + $0x1a0] sm:$0xff] %vm4652_vm4, %v12682_v31  ;;  %4868 = vst.msk [vmem:[#allocation3 + $0x1a8] sm:$0xff] %vm4652_vm4, %v12682_v31 }
 0x1d7   :  { %4869 = vst.msk [vmem:[#allocation3 + $0x1b0] sm:$0xff] %vm4652_vm4, %v12682_v31  ;;  %4870 = vst.msk [vmem:[#allocation3 + $0x1b8] sm:$0xff] %vm4652_vm4, %v12682_v31 }
 0x1d8   :  { %8879 = vmatmul.mubr.msk.f32.gmra.mxu1 %vm60_vm1, %v10825_v25  ;;  %4871 = vst.msk [vmem:[#allocation3 + $0x1c0] sm:$0xff] %vm4652_vm4, %v12682_v31  ;;  %4872 = vst.msk [vmem:[#allocation3 + $0x1c8] sm:$0xff] %vm4652_vm4, %v12682_v31 }
 0x1d9   :  { %8881 = vmatprep.mubr.msk.f32.mxu1 %vm60_vm1, %v10834_v41  ;;  %4873 = vst.msk [vmem:[#allocation3 + $0x1d0] sm:$0xff] %vm4652_vm4, %v12682_v31  ;;  %4874 = vst.msk [vmem:[#allocation3 + $0x1d8] sm:$0xff] %vm4652_vm4, %v12682_v31 }
 0x1dc   :  { %8882 = vmatmul.mubr.msk.f32.gmra.mxu1 %vm60_vm1, %v10842_v24 }
 0x1dd   :  { %8884 = vmatprep.mubr.msk.f32.mxu1 %vm60_vm1, %v10931_v61 }
 0x1e0   :  { %8885 = vmatmul.mubr.msk.f32.gmra.mxu1 %vm60_vm1, %v4453_v33 }
 0x204   :  { %v11028_v12 = vpop.f32.mrf.mxu1 }
 0x206   :  { %v11030_v27 = vpop.f32.mrf.mxu1 }
 0x207   :  { %v8683_v14 = vpop.f32.mrf.mxu0 }
 0x208   :  { %v2744_v30 = vadd.f32 %v8683_v14, %v11028_v12  ;;  %v8660_v19 = vpop.f32.mrf.mxu1 }
 0x209   :  { %v11153_v7 = vpop.f32.mrf.mxu0 }
 0x20a   :  { %v11155_v6 = vpop.f32.mrf.mxu1 }
 0x20b   :  { %v8686_v26 = vpop.f32.mrf.mxu0 }
 0x20c   :  { %v2754_v43 = vadd.f32 %v8686_v26, %v8660_v19  ;;  %v8663_v59 = vpop.f32.mrf.mxu1 }
 0x20d   :  { %v11157_v37 = vpop.f32.mrf.mxu0 }
 0x20e   :  { %v11159_v13 = vpop.f32.mrf.mxu1 }
 0x20f   :  { %v8689_v48 = vpop.f32.mrf.mxu0 }
 0x210   :  { %v2764_v63 = vadd.f32 %v8689_v48, %v8663_v59  ;;  %v8666_v58 = vpop.f32.mrf.mxu1 }
 0x211   :  { %v11161_v1 = vpop.f32.mrf.mxu0 }
 0x212   :  { %v11163_v21 = vpop.f32.mrf.mxu1 }
 0x213   :  { %v8692_v15 = vpop.f32.mrf.mxu0 }
 0x214   :  { %v2774_v45 = vadd.f32 %v8692_v15, %v8666_v58  ;;  %v8669_v60 = vpop.f32.mrf.mxu1 }
 0x215   :  { %v11165_v35 = vpop.f32.mrf.mxu0 }
 0x216   :  { %v11167_v39 = vpop.f32.mrf.mxu1 }
 0x217   :  { %v8695_v38 = vpop.f32.mrf.mxu0 }
 0x218   :  { %v2784_v2 = vadd.f32 %v8695_v38, %v8669_v60  ;;  %v8672_v57 = vpop.f32.mrf.mxu1 }
 0x219   :  { %v11169_v53 = vpop.f32.mrf.mxu0 }
 0x21a   :  { %v11171_v18 = vpop.f32.mrf.mxu1 }
 0x21b   :  { %v8698_v25 = vpop.f32.mrf.mxu0 }
 0x21c   :  { %v2794_v55 = vadd.f32 %v8698_v25, %v8672_v57  ;;  %v8675_v5 = vpop.f32.mrf.mxu1 }
 0x21d   :  { %v11173_v8 = vpop.f32.mrf.mxu0 }
 0x21e   :  { %v11175_v41 = vpop.f32.mrf.mxu1 }
 0x21f   :  { %v8701_v42 = vpop.f32.mrf.mxu0 }
 0x220   :  { %v2804_v23 = vadd.f32 %v8701_v42, %v8675_v5  ;;  %v8678_v24 = vpop.f32.mrf.mxu1 }
 0x221   :  { %v11177_v36 = vpop.f32.mrf.mxu0 }
 0x222   :  { %v11179_v49 = vpop.f32.mrf.mxu1 }
 0x223   :  { %v8704_v51 = vpop.f32.mrf.mxu0 }
 0x224   :  { %v2814_v22 = vadd.f32 %v8704_v51, %v8678_v24  ;;  %v8709_v40 = vpop.f32.mrf.mxu1  ;;  %v11260_v51 = vld [vmem:[#allocation3 + $0x8] sm:$0xff] }
 0x225   :  { %v11181_v4 = vadd.f32 %v8709_v40, %v2744_v30  ;;  %v11183_v9 = vpop.f32.mrf.mxu0  ;;  %12687 = vst [vmem:[#allocation7_spill] sm:$0xff] %v11260_v51  ;;  %8889 = vmatprep.mubr.msk.f32.mxu0 %vm4652_vm4, %v11260_v51 }
 0x226   :  { %v11185_v20 = vpop.f32.mrf.mxu1 }
 0x227   :  { %v11187_v50 = vpop.f32.mrf.mxu0 }
 0x228   :  { %v8712_v61 = vpop.f32.mrf.mxu1 }
 0x229   :  { %v11189_v3 = vadd.f32 %v8712_v61, %v2754_v43  ;;  %v11191_v32 = vpop.f32.mrf.mxu0  ;;  %v4973_v61 = vrot.slane %v11260_v51, 7 }
 0x22a   :  { %v11193_v52 = vpop.f32.mrf.mxu1 }
 0x22b   :  { %v11195_v47 = vpop.f32.mrf.mxu0 }
 0x22c   :  { %v8715_v29 = vpop.f32.mrf.mxu1 }
 0x22d   :  { %v11197_v46 = vadd.f32 %v8715_v29, %v2764_v63  ;;  %v11199_v62 = vpop.f32.mrf.mxu0 }
 0x22e   :  { %v11201_v16 = vpop.f32.mrf.mxu1 }
 0x22f   :  { %v11203_v44 = vpop.f32.mrf.mxu0 }
 0x230   :  { %v8718_v10 = vpop.f32.mrf.mxu1 }
 0x231   :  { %v11205_v28 = vadd.f32 %v8718_v10, %v2774_v45  ;;  %v11207_v56 = vpop.f32.mrf.mxu0 }
 0x232   :  { %v11209_v54 = vpop.f32.mrf.mxu1 }
 0x233   :  { %v11211_v17 = vpop.f32.mrf.mxu0 }
 0x234   :  { %v8721_v0 = vpop.f32.mrf.mxu1 }
 0x235   :  { %v11213_v34 = vadd.f32 %v8721_v0, %v2784_v2  ;;  %v11215_v11 = vpop.f32.mrf.mxu0  ;;  %v5020_v0 = vld [vmem:[%s12584_s4] sm:$0xff] }
 0x236   :  { %v11217_v33 = vpop.f32.mrf.mxu1  ;;  %8913 = vmatprep.subr.mxu1 %v5020_v0 }
 0x237   :  { %v11219_v12 = vpop.f32.mrf.mxu0  ;;  %8914 = vmatpush3.msra.mxu1 %v5020_v0 }
 0x238   :  { %v8724_v31 = vpop.f32.mrf.mxu1 }
 0x239   :  { %v11221_v14 = vadd.f32 %v8724_v31, %v2794_v55  ;;  %v11223_v30 = vpop.f32.mrf.mxu0 }
 0x23a   :  { %v11225_v19 = vpop.f32.mrf.mxu1 }
 0x23b   :  { %v11227_v26 = vpop.f32.mrf.mxu0 }
 0x23c   :  { %v8727_v43 = vpop.f32.mrf.mxu1 }
 0x23d   :  { %v11229_v59 = vadd.f32 %v8727_v43, %v2804_v23  ;;  %v11231_v48 = vpop.f32.mrf.mxu0  ;;  %v7808_v23 = vld [vmem:[%s12584_s4 + $0x8] sm:$0xff] }
 0x23e   :  { %v11233_v63 = vpop.f32.mrf.mxu1  ;;  %8887 = vmatprep.subr.mxu0 %v7808_v23 }
 0x23f   :  { %v11235_v58 = vpop.f32.mrf.mxu0  ;;  %8888 = vmatpush3.msra.mxu0 %v7808_v23 }
 0x240   :  { %v8730_v15 = vpop.f32.mrf.mxu1 }
 0x241   :  { %v11237_v45 = vadd.f32 %v8730_v15, %v2814_v22  ;;  %v11239_v60 = vpop.f32.mrf.mxu0  ;;  %v4892_v22 = vld [vmem:[#allocation3] sm:$0xff] }
 0x242   :  { %v11241_v38 = vpop.f32.mrf.mxu1  ;;  %v4972_v29 = vrot.slane %v4892_v22, 7 }
 0x243   :  { %12683 = vst [vmem:[#allocation14_spill] sm:$0xff] %v11237_v45  ;;  %v11243_v2 = vpop.f32.mrf.mxu0 }
 0x244   :  { %12684 = vst [vmem:[#allocation28_spill] sm:$0xff] %v11243_v2  ;;  %v11245_v57 = vpop.f32.mrf.mxu1  ;;  %v4974_v43 = vsel %vm2405_vm3, %v4972_v29, %v4973_v61  ;;  %v11293_v61 = vld [vmem:[%s12584_s4 + $0x10] sm:$0xff] }
 0x245   :  { %v11247_v25 = vpop.f32.mrf.mxu0  ;;  %8915 = vmatprep.mubr.msk.f32.mxu1 %vm4652_vm4, %v4974_v43  ;;  %12694 = vst [vmem:[#allocation18_spill] sm:$0xff] %v11293_v61  ;;  %8939 = vmatprep.subr.mxu0 %v11293_v61 }
 0x246   :  { %12685 = vst [vmem:[#allocation30_spill] sm:$0xff] %v11247_v25  ;;  %v11249_v55 = vpop.f32.mrf.mxu1 }
 0x247   :  { %v11251_v5 = vpop.f32.mrf.mxu0 }
 0x248   :  { %v11253_v42 = vpop.f32.mrf.mxu1 }
 0x249   :  { %v11258_v24 = vpop.f32.mrf.mxu0 }
 0x24a   :  { %12686 = vst [vmem:[#allocation10_spill] sm:$0xff] %v11258_v24  ;;  %v11262_v40 = vpop.f32.mrf.mxu1 }
 0x24b   :  { %v11267_v10 = vpop.f32.mrf.mxu0 }
 0x24c   :  { %12688 = vst [vmem:[#allocation13_spill] sm:$0xff] %v11267_v10  ;;  %v11272_v31 = vpop.f32.mrf.mxu1 }
 0x24d   :  { %v11275_v15 = vpop.f32.mrf.mxu0 }
 0x24e   :  { %12689 = vst [vmem:[#allocation9_spill] sm:$0xff] %v11275_v15  ;;  %v11278_v23 = vpop.f32.mrf.mxu1 }
 0x24f   :  { %v11280_v51 = vpop.f32.mrf.mxu0 }
 0x250   :  { %12690 = vst [vmem:[#allocation16_spill] sm:$0xff] %v11280_v51  ;;  %v11282_v22 = vpop.f32.mrf.mxu1 }
 0x251   :  { %v11284_v10 = vpop.f32.mrf.mxu0 }
 0x252   :  { %12691 = vst [vmem:[#allocation29_spill] sm:$0xff] %v11284_v10  ;;  %v11286_v25 = vpop.f32.mrf.mxu1 }
 0x253   :  { %12692 = vst [vmem:[#allocation32_spill] sm:$0xff] %v11286_v25  ;;  %v11288_v2 = vpop.f32.mrf.mxu0 }
 0x254   :  { %12693 = vst [vmem:[#allocation15_spill] sm:$0xff] %v11288_v2  ;;  %v11295_v29 = vpop.f32.mrf.mxu1 }
 0x255   :  { %12695 = vst [vmem:[#allocation6_spill] sm:$0xff] %v11295_v29  ;;  %v11298_v0 = vpop.f32.mrf.mxu0 }
 0x256   :  { %12696 = vst [vmem:[#allocation20_spill] sm:$0xff] %v11298_v0  ;;  %v11300_v43 = vpop.f32.mrf.mxu1 }
 0x257   :  { %12697 = vst [vmem:[#allocation34_spill] sm:$0xff] %v11300_v43  ;;  %v11302_v51 = vpop.f32.mrf.mxu0 }
 0x258   :  { %12698 = vst [vmem:[#allocation31_spill] sm:$0xff] %v11302_v51  ;;  %v11304_v10 = vpop.f32.mrf.mxu1 }
 0x259   :  { %12699 = vst [vmem:[#allocation12_spill] sm:$0xff] %v11304_v10  ;;  %v11306_v15 = vpop.f32.mrf.mxu0 }
 0x25a   :  { %12700 = vst [vmem:[#allocation22_spill] sm:$0xff] %v11306_v15  ;;  %v11308_v2 = vpop.f32.mrf.mxu1 }
 0x25b   :  { %12701 = vst [vmem:[#allocation36_spill] sm:$0xff] %v11308_v2  ;;  %v11310_v25 = vpop.f32.mrf.mxu0 }
 0x25c   :  { %12702 = vst [vmem:[#allocation17_spill] sm:$0xff] %v11310_v25  ;;  %v11312_v45 = vpop.f32.mrf.mxu1 }
 0x25d   :  { %12703 = vst [vmem:[#allocation33_spill] sm:$0xff] %v11312_v45  ;;  %v11314_v24 = vpop.f32.mrf.mxu0 }
 0x25e   :  { %12704 = vst [vmem:[#allocation19_spill] sm:$0xff] %v11314_v24  ;;  %v11316_v29 = vpop.f32.mrf.mxu1 }
 0x25f   :  { %12705 = vst [vmem:[#allocation21_spill] sm:$0xff] %v11316_v29  ;;  %v11318_v61 = vpop.f32.mrf.mxu0 }
 0x260   :  { %12706 = vst [vmem:[#allocation35_spill] sm:$0xff] %v11318_v61  ;;  %v11320_v0 = vpop.f32.mrf.mxu1  ;;  %v11339_v61 = vld [vmem:[%s12584_s4 + $0x18] sm:$0xff] }
 0x261   :  { %12707 = vst [vmem:[#allocation23_spill] sm:$0xff] %v11320_v0  ;;  %v11322_v43 = vpop.f32.mrf.mxu0  ;;  %12715 = vst [vmem:[#allocation27_spill] sm:$0xff] %v11339_v61  ;;  %8965 = vmatprep.subr.mxu1 %v11339_v61  ;;  %v2739_v61 = vadd.f32 %v11153_v7, %v11030_v27 }
 0x262   :  { %12708 = vst [vmem:[#allocation11_spill] sm:$0xff] %v11322_v43  ;;  %v11324_v51 = vpop.f32.mrf.mxu1 }
 0x263   :  { %12709 = vst [vmem:[#allocation24_spill] sm:$0xff] %v11324_v51  ;;  %v11326_v10 = vpop.f32.mrf.mxu0 }
 0x264   :  { %12710 = vst [vmem:[#allocation37_spill] sm:$0xff] %v11326_v10  ;;  %v11328_v15 = vpop.f32.mrf.mxu1 }
 0x265   :  { %12711 = vst [vmem:[#allocation8_spill] sm:$0xff] %v11328_v15  ;;  %v11330_v2 = vpop.f32.mrf.mxu0 }
 0x266   :  { %12712 = vst [vmem:[#allocation26_spill] sm:$0xff] %v11330_v2  ;;  %v11332_v25 = vpop.f32.mrf.mxu1 }
 0x267   :  { %12713 = vst [vmem:[#allocation25_spill] sm:$0xff] %v11332_v25  ;;  %v11334_v45 = vpop.f32.mrf.mxu0 }
 0x268   :  { %12714 = vst [vmem:[#allocation5_spill] sm:$0xff] %v11334_v45  ;;  %v11341_v24 = vpop.f32.mrf.mxu1 }
 0x269   :  { %12716 = vst [vmem:[#allocation4_spill] sm:$0xff] %v11341_v24  ;;  %v11344_v43 = vpop.f32.mrf.mxu0 }
 0x26a   :  { %12717 = vst [vmem:[#allocation38_spill] sm:$0xff] %v11344_v43  ;;  %v11346_v10 = vpop.f32.mrf.mxu1 }
 0x26b   :  { %v11348_v51 = vpop.f32.mrf.mxu0 }
 0x26c   :  { %12718 = vst [vmem:[#allocation39_spill] sm:$0xff] %v11348_v51  ;;  %v11350_v2 = vpop.f32.mrf.mxu1  ;;  %v2749_v51 = vadd.f32 %v11157_v37, %v11155_v6  ;;  %v2789_v6 = vadd.f32 %v11173_v8, %v11171_v18  ;;  %v3390_v37 = vadd.f32 %v11187_v50, %v11181_v4  ;;  %v2809_v4 = vadd.f32 %v11183_v9, %v11179_v49 }
 0x26d   :  { %v11352_v0 = vpop.f32.mrf.mxu0  ;;  %v3392_v50 = vadd.f32 %v11195_v47, %v11189_v3  ;;  %v3398_v9 = vadd.f32 %v11219_v12, %v11213_v34 }
 0x26e   :  { %12719 = vst [vmem:[#allocation40_spill] sm:$0xff] %v11352_v0  ;;  %v11354_v29 = vpop.f32.mrf.mxu1  ;;  %v2759_v0 = vadd.f32 %v11161_v1, %v11159_v13  ;;  %v3065_v27 = vadd.f32 %v11193_v52, %v2749_v51  ;;  %v3588_v18 = vadd.f32 %v11245_v57, %v3390_v37  ;;  %v3077_v47 = vadd.f32 %v11241_v38, %v2809_v4  ;;  %v12725_v38 = vld [vmem:[#allocation8_spill] sm:$0xff] }
 0x26f   :  { %12720 = vst [vmem:[#allocation41_spill] sm:$0xff] %v11354_v29  ;;  %v11356_v45 = vpop.f32.mrf.mxu0  ;;  %v3063_v29 = vadd.f32 %v11185_v20, %v2739_v61  ;;  %v12731_v61 = vld [vmem:[#allocation13_spill] sm:$0xff] }
 0x270   :  { %12721 = vst [vmem:[#allocation42_spill] sm:$0xff] %v11356_v45  ;;  %v11358_v25 = vpop.f32.mrf.mxu1  ;;  %v3067_v13 = vadd.f32 %v11201_v16, %v2759_v0  ;;  %v3391_v52 = vadd.f32 %v11199_v62, %v3065_v27  ;;  %v3394_v16 = vadd.f32 %v11203_v44, %v11197_v46  ;;  %v3400_v62 = vadd.f32 %v11227_v26, %v11221_v14  ;;  %v12734_v27 = vld [vmem:[#allocation25_spill] sm:$0xff] }
 0x271   :  { %v11360_v15 = vpop.f32.mrf.mxu0  ;;  %v3402_v14 = vadd.f32 %v11235_v58, %v11229_v59  ;;  %v12732_v59 = vld [vmem:[#allocation34_spill] sm:$0xff] }
 0x272   :  { %12722 = vst [vmem:[#allocation43_spill] sm:$0xff] %v11360_v15  ;;  %v11362_v24 = vpop.f32.mrf.mxu1  ;;  %v2769_v15 = vadd.f32 %v11165_v35, %v11163_v21  ;;  %v2799_v35 = vadd.f32 %v11177_v36, %v11175_v41  ;;  %v3393_v36 = vadd.f32 %v11207_v56, %v3067_v13  ;;  %v3590_v56 = vadd.f32 %v11253_v42, %v3392_v50  ;;  %v12735_v13 = vld [vmem:[#allocation9_spill] sm:$0xff] }
 0x273   :  { %12723 = vst [vmem:[#allocation44_spill] sm:$0xff] %v11362_v24  ;;  %v11373_v45 = vpop.f32.mrf.mxu0  ;;  %v2779_v24 = vadd.f32 %v11169_v53, %v11167_v39  ;;  %v3389_v39 = vadd.f32 %v11191_v32, %v3063_v29  ;;  %v3073_v53 = vadd.f32 %v11225_v19, %v2789_v6  ;;  %v3396_v32 = vadd.f32 %v11211_v17, %v11205_v28 }
 0x274   :  { %v11368_v43 = vpop.f32.mrf.mxu1  ;;  %v3069_v1 = vadd.f32 %v11209_v54, %v2769_v15  ;;  %v3075_v54 = vadd.f32 %v11233_v63, %v2799_v35  ;;  %v3850_v28 = vadd.f32 %v11251_v5, %v3588_v18  ;;  %v3592_v34 = vadd.f32 %v11272_v31, %v3394_v16  ;;  %v12727_v5 = vld [vmem:[#allocation28_spill] sm:$0xff]  ;;  %v12730_v15 = vld [vmem:[#allocation6_spill] sm:$0xff]  ;;  %v12738_v18 = vld [vmem:[#allocation15_spill] sm:$0xff] }
 0x275   :  { %v3071_v20 = vadd.f32 %v11217_v33, %v2779_v24  ;;  %v11396_v8 = vpop.f32.mrf.mxu0  ;;  %v3587_v33 = vadd.f32 %v11249_v55, %v3389_v39  ;;  %v3399_v44 = vadd.f32 %v11231_v48, %v3073_v53  ;;  %v3591_v12 = vadd.f32 %v11278_v23, %v3393_v36  ;;  %v12724_v48 = vld [vmem:[#allocation10_spill] sm:$0xff]  ;;  %v12737_v39 = vld [vmem:[#allocation29_spill] sm:$0xff] }
 0x276   :  { %v11380_v7 = vpop.f32.mrf.mxu1  ;;  %v3395_v49 = vadd.f32 %v11215_v11, %v3069_v1  ;;  %v3589_v11 = vadd.f32 %v11262_v40, %v3391_v52  ;;  %v3401_v26 = vadd.f32 %v11239_v60, %v3075_v54  ;;  %v4177_v57 = vadd.f32 %v12725_v38, %v3850_v28  ;;  %v12726_v55 = vld [vmem:[#allocation14_spill] sm:$0xff]  ;;  %v12729_v40 = vld [vmem:[#allocation32_spill] sm:$0xff]  ;;  %v12740_v36 = vld [vmem:[#allocation33_spill] sm:$0xff] }
 0x277   :  { %v3397_v3 = vadd.f32 %v11223_v30, %v3071_v20  ;;  %v11424_v17 = vpop.f32.mrf.mxu0  ;;  %v3594_v30 = vadd.f32 %v11282_v22, %v3396_v32  ;;  %v3849_v63 = vadd.f32 %v12724_v48, %v3587_v33  ;;  %v3404_v42 = vadd.f32 %v12727_v5, %v12726_v55  ;;  %v12728_v24 = vld [vmem:[#allocation30_spill] sm:$0xff]  ;;  %v12733_v60 = vld [vmem:[#allocation12_spill] sm:$0xff]  ;;  %v12741_v54 = vld [vmem:[#allocation5_spill] sm:$0xff] }
 0x278   :  { %v11389_v21 = vpop.f32.mrf.mxu1  ;;  %v3403_v51 = vadd.f32 %v12728_v24, %v3077_v47  ;;  %v3593_v31 = vadd.f32 %v12729_v40, %v3395_v49  ;;  %v3596_v23 = vadd.f32 %v12730_v15, %v3398_v9  ;;  %v3852_v29 = vadd.f32 %v12731_v61, %v3590_v56  ;;  %v12736_v20 = vld [vmem:[#allocation16_spill] sm:$0xff]  ;;  %v12745_v56 = vld [vmem:[#allocation21_spill] sm:$0xff] }
 0x279   :  { %v3595_v58 = vadd.f32 %v12732_v59, %v3397_v3  ;;  %v3598_v0 = vadd.f32 %v12733_v60, %v3400_v62  ;;  %v4176_v6 = vadd.f32 %v12734_v27, %v3849_v63  ;;  %v11448_v37 = vpop.f32.mrf.mxu0  ;;  %v3851_v1 = vadd.f32 %v12735_v13, %v3589_v11  ;;  %v12739_v52 = vld [vmem:[#allocation36_spill] sm:$0xff]  ;;  %v12744_v62 = vld [vmem:[#allocation31_spill] sm:$0xff]  ;;  %v12747_v63 = vld [vmem:[#allocation17_spill] sm:$0xff] }
 0x27a   :  { %v11405_v41 = vpop.f32.mrf.mxu1  ;;  %v3854_v35 = vadd.f32 %v12736_v20, %v3592_v34  ;;  %v3853_v53 = vadd.f32 %v12737_v39, %v3591_v12  ;;  %v3856_v4 = vadd.f32 %v12738_v18, %v3594_v30  ;;  %v3597_v16 = vadd.f32 %v12739_v52, %v3399_v44  ;;  %v12742_v49 = vld [vmem:[#allocation4_spill] sm:$0xff]  ;;  %v12746_v30 = vld [vmem:[#allocation22_spill] sm:$0xff]  ;;  %v12753_v59 = vld [vmem:[#allocation35_spill] sm:$0xff] }
 0x27b   :  { %v3600_v32 = vadd.f32 %v12740_v36, %v3402_v14  ;;  %v4375_v33 = vadd.f32 %v12741_v54, %v4177_v57  ;;  %v4179_v9 = vadd.f32 %v12742_v49, %v3852_v29  ;;  %v12743_v3 = vld [vmem:[#allocation20_spill] sm:$0xff]  ;;  %v3858_v28 = vadd.f32 %v12744_v62, %v3596_v23  ;;  %v12748_v44 = vld [vmem:[#allocation38_spill] sm:$0xff]  ;;  %v8854_v14 = vpop.f32.mrf.mxu0  ;;  %v12749_v57 = vld [vmem:[#allocation23_spill] sm:$0xff] }
 0x27c   :  { %v11417_v46 = vpop.f32.mrf.mxu1  ;;  %v3855_v47 = vadd.f32 %v12743_v3, %v3593_v31  ;;  %v3599_v11 = vadd.f32 %v12745_v56, %v3401_v26  ;;  %v4178_v34 = vadd.f32 %v11346_v10, %v3851_v1  ;;  %v3857_v48 = vadd.f32 %v12746_v30, %v3595_v58  ;;  %v12750_v40 = vld [vmem:[#allocation24_spill] sm:$0xff]  ;;  %v12751_v23 = vld [vmem:[#allocation41_spill] sm:$0xff]  ;;  %v12752_v10 = vld [vmem:[#allocation19_spill] sm:$0xff] }
 0x27d   :  { %v3860_v38 = vadd.f32 %v12747_v63, %v3598_v0  ;;  %v4374_v55 = vadd.f32 %v12748_v44, %v4176_v6  ;;  %v3602_v24 = vadd.f32 %v12749_v57, %v3404_v42  ;;  %v3601_v31 = vadd.f32 %v12750_v40, %v3403_v51  ;;  %v12754_v60 = vld [vmem:[#allocation39_spill] sm:$0xff]  ;;  %v12756_v1 = vld [vmem:[#allocation40_spill] sm:$0xff]  ;;  %v4345_v39 = vpop.f32.mrf.mxu0  ;;  %v12758_v36 = vld [vmem:[#allocation37_spill] sm:$0xff] }
 0x27e   :  { %v11430_v19 = vpop.f32.mrf.mxu1  ;;  %v4181_v15 = vadd.f32 %v11350_v2, %v3854_v35  ;;  %v4180_v26 = vadd.f32 %v12751_v23, %v3853_v53  ;;  %v3859_v29 = vadd.f32 %v12752_v10, %v3597_v16  ;;  %v3862_v58 = vadd.f32 %v12753_v59, %v3600_v32  ;;  %v12755_v6 = vld [vmem:[#allocation11_spill] sm:$0xff]  ;;  %v12757_v20 = vld [vmem:[#allocation44_spill] sm:$0xff]  ;;  %v12759_v54 = vld [vmem:[#allocation26_spill] sm:$0xff] }
 0x27f   :  { %v4377_v0 = vadd.f32 %v12754_v60, %v4179_v9  ;;  %v11479_v13 = vadd.f32 %v12755_v6, %v3599_v11  ;;  %v4376_v42 = vadd.f32 %v12756_v1, %v4178_v34  ;;  %v4183_v51 = vadd.f32 %v11358_v25, %v3856_v4  ;;  %v12760_v25 = vld [vmem:[#allocation42_spill] sm:$0xff]  ;;  %v12761_v49 = vld [vmem:[#allocation43_spill] sm:$0xff] }
 0x280   :  { %v11442_v22 = vpop.f32.mrf.mxu1  ;;  %v4182_v2 = vadd.f32 %v12757_v20, %v3855_v47  ;;  %v3864_v32 = vadd.f32 %v12758_v36, %v3602_v24  ;;  %v4379_v4 = vadd.f32 %v12760_v25, %v4181_v15  ;;  %v4378_v9 = vadd.f32 %v12761_v49, %v4180_v26 }
 0x281   :  { %v4185_v47 = vadd.f32 %v11368_v43, %v3858_v28  ;;  %v4381_v34 = vadd.f32 %v11373_v45, %v4183_v51  ;;  %v4184_v45 = vadd.f32 %v11380_v7, %v3857_v48  ;;  %v4186_v59 = vadd.f32 %v11405_v41, %v3859_v29 }
 0x282   :  { %v11454_v50 = vpop.f32.mrf.mxu1 }
 0x283   :  { %v4383_v23 = vadd.f32 %v11424_v17, %v4185_v47 }
 0x284   :  { %v8865_v12 = vpop.f32.mrf.mxu1 }
 0x285   :  { %v11467_v5 = vadd.f32 %v8865_v12, %v4375_v33  ;;  %v11494_v33 = vadd.f32 %v12759_v54, %v3601_v31  ;;  %v4380_v12 = vadd.f32 %v11396_v8, %v4182_v2  ;;  %v4187_v8 = vadd.f32 %v11389_v21, %v3860_v38 }
 0x286   :  { %v4557_v61 = vpop.f32.mrf.mxu1  ;;  %v4189_v2 = vadd.f32 %v11417_v46, %v3862_v58 }
 0x287   :  { %v11476_v27 = vadd.f32 %v4557_v61, %v4374_v55  ;;  %v4696_v53 = vmul.f32 %v11467_v5, %v11467_v5  ;;  %v4654_v62 = vsel %vm4652_vm4, %v11467_v5, 0.0  ;;  %v8857_v55 = vpop.f32.mrf.mxu0  ;;  %v4385_v41 = vadd.f32 %v8854_v14, %v4187_v8 }
 0x288   :  { %v8868_v35 = vpop.f32.mrf.mxu1 }
 0x289   :  { %v4653_v18 = vsel %vm4652_vm4, %v11476_v27, 0.0  ;;  %v4695_v52 = vmul.f32 %v11476_v27, %v11476_v27  ;;  %v11490_v16 = vadd.f32 %v8868_v35, %v4377_v0  ;;  %v4712_v57 = vsel %vm4652_vm4, %v4696_v53, 0.0  ;;  %v4355_v21 = vpop.f32.mrf.mxu0 }
 0x28a   :  { %v4567_v3 = vpop.f32.mrf.mxu1  ;;  %v4655_v30 = vadd.f32 %v4654_v62, %v4653_v18 }
 0x28b   :  { %v4711_v56 = vsel %vm4652_vm4, %v4695_v52, 0.0  ;;  %v11502_v11 = vadd.f32 %v4567_v3, %v4376_v42  ;;  %v4698_v63 = vmul.f32 %v11490_v16, %v11490_v16  ;;  %v4658_v26 = vsel %vm4652_vm4, %v11490_v16, 0.0  ;;  %v8860_v14 = vpop.f32.mrf.mxu0 }
 0x28c   :  { %v8871_v44 = vpop.f32.mrf.mxu1  ;;  %v4713_v40 = vadd.f32 %v4712_v57, %v4711_v56  ;;  %v4382_v42 = vadd.f32 %v11448_v37, %v4184_v45  ;;  %v4384_v52 = vadd.f32 %v4345_v39, %v4186_v59  ;;  %v4188_v39 = vadd.f32 %v11430_v19, %v11479_v13 }
 0x28d   :  { %v4656_v43 = vsel %vm4652_vm4, %v11502_v11, 0.0  ;;  %v4697_v28 = vmul.f32 %v11502_v11, %v11502_v11  ;;  %v11513_v24 = vadd.f32 %v8871_v44, %v4379_v4  ;;  %v4716_v60 = vsel %vm4652_vm4, %v4698_v63, 0.0 }
 0x28e   :  { %v4657_v31 = vadd.f32 %v4656_v43, %v4655_v30  ;;  %v4577_v15 = vpop.f32.mrf.mxu1  ;;  %v4387_v56 = vadd.f32 %v8857_v55, %v4189_v2  ;;  %v4190_v63 = vadd.f32 %v11454_v50, %v11494_v33  ;;  %v4386_v45 = vadd.f32 %v4355_v21, %v4188_v39 }
 0x28f   :  { %v4714_v61 = vsel %vm4652_vm4, %v4697_v28, 0.0  ;;  %v11521_v10 = vadd.f32 %v4577_v15, %v4378_v9  ;;  %v4700_v38 = vmul.f32 %v11513_v24, %v11513_v24  ;;  %v4662_v35 = vsel %vm4652_vm4, %v11513_v24, 0.0 }
 0x290   :  { %v4715_v0 = vadd.f32 %v4714_v61, %v4713_v40  ;;  %v4659_v7 = vadd.f32 %v4658_v26, %v4657_v31  ;;  %v8874_v48 = vpop.f32.mrf.mxu1  ;;  %v4191_v9 = vadd.f32 %v11442_v22, %v3864_v32  ;;  %v4365_v22 = vpop.f32.mrf.mxu0 }
 0x291   :  { %v4660_v17 = vsel %vm4652_vm4, %v11521_v10, 0.0  ;;  %v4699_v6 = vmul.f32 %v11521_v10, %v11521_v10  ;;  %v11531_v1 = vadd.f32 %v8874_v48, %v4381_v34  ;;  %v4720_v4 = vsel %vm4652_vm4, %v4700_v38, 0.0 }
 0x292   :  { %v4661_v29 = vadd.f32 %v4660_v17, %v4659_v7  ;;  %v4717_v51 = vadd.f32 %v4716_v60, %v4715_v0  ;;  %v4587_v20 = vpop.f32.mrf.mxu1  ;;  %v4389_v8 = vadd.f32 %v8860_v14, %v4191_v9  ;;  %v4388_v61 = vadd.f32 %v4365_v22, %v4190_v63 }
 0x293   :  { %v4718_v53 = vsel %vm4652_vm4, %v4699_v6, 0.0  ;;  %v11538_v18 = vadd.f32 %v4587_v20, %v4380_v12  ;;  %v4702_v54 = vmul.f32 %v11531_v1, %v11531_v1  ;;  %v4666_v34 = vsel %vm4652_vm4, %v11531_v1, 0.0 }
 0x294   :  { %v4719_v36 = vadd.f32 %v4718_v53, %v4717_v51  ;;  %v4663_v25 = vadd.f32 %v4662_v35, %v4661_v29  ;;  %v8877_v37 = vpop.f32.mrf.mxu1 }
 0x295   :  { %v4664_v46 = vsel %vm4652_vm4, %v11538_v18, 0.0  ;;  %v4701_v58 = vmul.f32 %v11538_v18, %v11538_v18  ;;  %v11547_v49 = vadd.f32 %v8877_v37, %v4383_v23  ;;  %v4724_v44 = vsel %vm4652_vm4, %v4702_v54, 0.0 }
 0x296   :  { %v4665_v3 = vadd.f32 %v4664_v46, %v4663_v25  ;;  %v4721_v47 = vadd.f32 %v4720_v4, %v4719_v36  ;;  %v4597_v62 = vpop.f32.mrf.mxu1 }
 0x297   :  { %v4722_v12 = vsel %vm4652_vm4, %v4701_v58, 0.0  ;;  %v11555_v30 = vadd.f32 %v4597_v62, %v4382_v42  ;;  %v4704_v32 = vmul.f32 %v11547_v49, %v11547_v49  ;;  %v4675_v31 = vsel %vm4652_vm4, %v11547_v49, 0.0 }
 0x298   :  { %v4667_v57 = vadd.f32 %v4666_v34, %v4665_v3  ;;  %v4723_v19 = vadd.f32 %v4722_v12, %v4721_v47  ;;  %v8880_v13 = vpop.f32.mrf.mxu1 }
 0x299   :  { %v4674_v55 = vsel %vm4652_vm4, %v11555_v30, 0.0  ;;  %v4703_v43 = vmul.f32 %v11555_v30, %v11555_v30  ;;  %v11566_v28 = vadd.f32 %v8880_v13, %v4385_v41  ;;  %v4733_v48 = vsel %vm4652_vm4, %v4704_v32, 0.0 }
 0x29a   :  { %v4668_v50 = vrot.slane %v4667_v57, 4  ;;  %v4725_v33 = vadd.f32 %v4724_v44, %v4723_v19  ;;  %v4607_v40 = vpop.f32.mrf.mxu1  ;;  %v4676_v0 = vadd.f32 %v4675_v31, %v4674_v55 }
 0x29b   :  { %v4732_v15 = vsel %vm4652_vm4, %v4703_v43, 0.0  ;;  %v4706_v23 = vmul.f32 %v11566_v28, %v11566_v28  ;;  %v11573_v26 = vadd.f32 %v4607_v40, %v4384_v52  ;;  %v4679_v20 = vsel %vm4652_vm4, %v11566_v28, 0.0 }
 0x29c   :  { %v4669_v59 = vadd.f32 %v4668_v50, %v4667_v57  ;;  %v4726_v60 = vrot.slane %v4725_v33, 4  ;;  %v8883_v7 = vpop.f32.mrf.mxu1  ;;  %v4734_v41 = vadd.f32 %v4733_v48, %v4732_v15 }
 0x29d   :  { %v4677_v21 = vsel %vm4652_vm4, %v11573_v26, 0.0  ;;  %v4705_v38 = vmul.f32 %v11573_v26, %v11573_v26  ;;  %v11580_v17 = vadd.f32 %v8883_v7, %v4387_v56  ;;  %v4737_v2 = vsel %vm4652_vm4, %v4706_v23, 0.0 }
 0x29e   :  { %v4670_v6 = vrot.slane %v4669_v59, 2  ;;  %v4727_v42 = vadd.f32 %v4726_v60, %v4725_v33  ;;  %v4678_v29 = vadd.f32 %v4677_v21, %v4676_v0  ;;  %v4617_v51 = vpop.f32.mrf.mxu1 }
 0x29f   :  { %v4735_v35 = vsel %vm4652_vm4, %v4705_v38, 0.0  ;;  %v11586_v53 = vadd.f32 %v4617_v51, %v4386_v45  ;;  %v4708_v14 = vmul.f32 %v11580_v17, %v11580_v17  ;;  %v4683_v56 = vsel %vm4652_vm4, %v11580_v17, 0.0 }
 0x2a0   :  { %v4671_v52 = vadd.f32 %v4670_v6, %v4669_v59  ;;  %v4728_v36 = vrot.slane %v4727_v42, 2  ;;  %v4736_v54 = vadd.f32 %v4735_v35, %v4734_v41  ;;  %v4680_v25 = vadd.f32 %v4679_v20, %v4678_v29  ;;  %v8886_v37 = vpop.f32.mrf.mxu1 }
 0x2a1   :  { %v4681_v4 = vsel %vm4652_vm4, %v11586_v53, 0.0  ;;  %v4707_v46 = vmul.f32 %v11586_v53, %v11586_v53  ;;  %v11594_v58 = vadd.f32 %v8886_v37, %v4389_v8  ;;  %v4741_v13 = vsel %vm4652_vm4, %v4708_v14, 0.0 }
 0x2a2   :  { %v4672_v39 = vrot.slane %v4671_v52, 1  ;;  %v4729_v9 = vadd.f32 %v4728_v36, %v4727_v42  ;;  %v4682_v3 = vadd.f32 %v4681_v4, %v4680_v25  ;;  %v4738_v47 = vadd.f32 %v4737_v2, %v4736_v54  ;;  %v4627_v62 = vpop.f32.mrf.mxu1 }
 0x2a3   :  { %v4739_v34 = vsel %vm4652_vm4, %v4707_v46, 0.0  ;;  %v11599_v12 = vadd.f32 %v4627_v62, %v4388_v61  ;;  %v4710_v22 = vmul.f32 %v11594_v58, %v11594_v58  ;;  %v4687_v33 = vsel %vm4652_vm4, %v11594_v58, 0.0 }
 0x2a4   :  { %v4673_v63 = vadd.f32 %v4672_v39, %v4671_v52  ;;  %v4730_v44 = vrot.slane %v4729_v9, 1  ;;  %v4740_v57 = vadd.f32 %v4739_v34, %v4738_v47  ;;  %v4684_v19 = vadd.f32 %v4683_v56, %v4682_v3 }
 0x2a5   :  { %v4685_v32 = vsel %vm4652_vm4, %v11599_v12, 0.0  ;;  %v4709_v55 = vmul.f32 %v11599_v12, %v11599_v12  ;;  %v4745_v0 = vsel %vm4652_vm4, %v4710_v22, 0.0 }
 0x2a6   :  { %v4731_v43 = vadd.f32 %v4730_v44, %v4729_v9  ;;  %v11608_v45 = vmul.f32 0.015625, %v4673_v63  ;;  %v4686_v8 = vadd.f32 %v4685_v32, %v4684_v19  ;;  %v4742_v50 = vadd.f32 %v4741_v13, %v4740_v57 }
 0x2a7   :  { %v4743_v40 = vsel %vm4652_vm4, %v4709_v55, 0.0 }
 0x2a8   :  { %v4755_v31 = vmul.f32 0.015625, %v4731_v43  ;;  %v4757_v15 = vmul.f32 %v11608_v45, %v11608_v45  ;;  %v4688_v23 = vadd.f32 %v4687_v33, %v4686_v8  ;;  %v4744_v61 = vadd.f32 %v4743_v40, %v4742_v50 }
 0x2a9   :  { %v4764_v59 = vsub.f32 %v11467_v5, %v11608_v45  ;;  %v4766_v48 = vsub.f32 %v11490_v16, %v11608_v45  ;;  %v4768_v38 = vsub.f32 %v11513_v24, %v11608_v45  ;;  %v4770_v6 = vsub.f32 %v11531_v1, %v11608_v45 }
 0x2aa   :  { %v4759_v60 = vsub.f32 %v4755_v31, %v4757_v15  ;;  %v4689_v7 = vrot.slane %v4688_v23, 4  ;;  %v4746_v21 = vadd.f32 %v4745_v0, %v4744_v61  ;;  %v4769_v3 = vsub.f32 %v11538_v18, %v11608_v45  ;;  %v4895_v31 = vld [vmem:[#allocation3 + $0x18] sm:$0xff]  ;;  %v4898_v15 = vld [vmem:[#allocation3 + $0x30] sm:$0xff]  ;;  %v11655_v0 = vld [vmem:[%s12584_s4 + $0x20] sm:$0xff] }
 0x2ab   :  { %v4763_v47 = vsub.f32 %v11476_v27, %v11608_v45  ;;  %v4765_v62 = vsub.f32 %v11502_v11, %v11608_v45  ;;  %v4767_v63 = vsub.f32 %v11521_v10, %v11608_v45  ;;  %v4975_v61 = vrot.slane %v4895_v31, 7 }
 0x2ac   :  { %v4761_v42 = vmax.f32 %v4759_v60, 0.0  ;;  %v4690_v41 = vadd.f32 %v4689_v7, %v4688_v23  ;;  %v4747_v29 = vrot.slane %v4746_v21, 4  ;;  %v4901_v23 = vld [vmem:[#allocation3 + $0x48] sm:$0xff]  ;;  %v4904_v60 = vld [vmem:[#allocation3 + $0x60] sm:$0xff] }
 0x2ae   :  { %v4779_v51 = vadd.f32 1e-05, %v4761_v42  ;;  %v4691_v20 = vrot.slane %v4690_v41, 2  ;;  %v4748_v5 = vadd.f32 %v4747_v29, %v4746_v21  ;;  %v4907_v29 = vld [vmem:[#allocation3 + $0x78] sm:$0xff] }
 0x2b0   :  { %9124 = vrsqrt.f32 %v4779_v51  ;;  %v4692_v2 = vadd.f32 %v4691_v20, %v4690_v41  ;;  %v4749_v35 = vrot.slane %v4748_v5, 2  ;;  %v4981_v41 = vrot.slane %v4901_v23, 7  ;;  %v11669_v51 = vld [vmem:[#allocation3 + $0x90] sm:$0xff]  ;;  %v4922_v23 = vld [vmem:[#allocation3 + $0x120] sm:$0xff] }
 0x2b1   :  { %v12762_v20 = vld [vmem:[#allocation18_spill] sm:$0xff] }
 0x2b2   :  { %v4693_v52 = vrot.slane %v4692_v2, 1  ;;  %v4750_v36 = vadd.f32 %v4749_v35, %v4748_v5 }
 0x2b4   :  { %v4694_v54 = vadd.f32 %v4693_v52, %v4692_v2  ;;  %v4751_v16 = vrot.slane %v4750_v36, 1  ;;  %v4984_v52 = vrot.slane %v4904_v60, 7 }
 0x2b6   :  { %v11624_v25 = vmul.f32 0.015625, %v4694_v54  ;;  %v4752_v37 = vadd.f32 %v4751_v16, %v4750_v36 }
 0x2b8   :  { %v4758_v24 = vmul.f32 %v11624_v25, %v11624_v25  ;;  %v4772_v1 = vsub.f32 %v11547_v49, %v11624_v25  ;;  %v4756_v14 = vmul.f32 0.015625, %v4752_v37  ;;  %v4774_v4 = vsub.f32 %v11566_v28, %v11624_v25  ;;  %v4913_v49 = vld [vmem:[#allocation3 + $0xa8] sm:$0xff] }
 0x2b9   :  { %v4776_v46 = vsub.f32 %v11580_v17, %v11624_v25  ;;  %v4778_v39 = vsub.f32 %v11594_v58, %v11624_v25  ;;  %v4777_v16 = vsub.f32 %v11599_v12, %v11624_v25 }
 0x2ba   :  { %v4760_v9 = vsub.f32 %v4756_v14, %v4758_v24  ;;  %v4987_v24 = vrot.slane %v4907_v29, 7  ;;  %v4990_v14 = vrot.slane %v11669_v51, 7 }
 0x2bc   :  { %v4762_v34 = vmax.f32 %v4760_v9, 0.0  ;;  %v4771_v9 = vsub.f32 %v11555_v30, %v11624_v25  ;;  %v11709_v30 = vld [vmem:[%s12584_s4 + $0x28] sm:$0xff] }
 0x2bd   :  { %v9125_v56 = vpop.eup %9124 }
 0x2be   :  { %v4789_v44 = vmul.f32 %v9125_v56, %v4769_v3  ;;  %v4783_v57 = vmul.f32 %v9125_v56, %v4763_v47  ;;  %v4784_v19 = vmul.f32 %v9125_v56, %v4764_v59  ;;  %v4785_v13 = vmul.f32 %v9125_v56, %v4765_v62 }
 0x2bf   :  { %v4780_v22 = vadd.f32 1e-05, %v4762_v34  ;;  %v4786_v32 = vmul.f32 %v9125_v56, %v4766_v48  ;;  %v4787_v55 = vmul.f32 %v9125_v56, %v4767_v63  ;;  %v4788_v43 = vmul.f32 %v9125_v56, %v4768_v38 }
 0x2c0   :  { %v4805_v18 = vmax.f32 %v4789_v44, 0.0  ;;  %v4799_v8 = vmax.f32 %v4783_v57, 0.0  ;;  %v4800_v50 = vmax.f32 %v4784_v19, 0.0  ;;  %v4801_v27 = vmax.f32 %v4785_v13, 0.0  ;;  %v4916_v19 = vld [vmem:[#allocation3 + $0xf0] sm:$0xff] }
 0x2c1   :  { %9126 = vrsqrt.f32 %v4780_v22  ;;  %v4802_v33 = vmax.f32 %v4786_v32, 0.0  ;;  %v4803_v11 = vmax.f32 %v4787_v55, 0.0  ;;  %v4804_v40 = vmax.f32 %v4788_v43, 0.0  ;;  %v12763_v55 = vld [vmem:[#allocation27_spill] sm:$0xff] }
 0x2c2   :  { %4882 = vst.msk [vmem:[#allocation3 + $0xb0] sm:$0xff] %vm4652_vm4, %v4805_v18  ;;  %4876 = vst.msk [vmem:[#allocation3 + $0x20] sm:$0xff] %vm4652_vm4, %v4799_v8  ;;  %v4790_v10 = vmul.f32 %v9125_v56, %v4770_v6  ;;  %v4978_v59 = vrot.slane %v4898_v15, 7  ;;  %v4773_v62 = vsub.f32 %v11573_v26, %v11624_v25  ;;  %v4775_v56 = vsub.f32 %v11586_v53, %v11624_v25  ;;  %v11720_v53 = vld [vmem:[#allocation3 + $0xf8] sm:$0xff]  ;;  %v4919_v15 = vld [vmem:[#allocation3 + $0x108] sm:$0xff] }
 0x2c3   :  { %4877 = vst.msk [vmem:[#allocation3 + $0x38] sm:$0xff] %vm4652_vm4, %v4800_v50  ;;  %4878 = vst.msk [vmem:[#allocation3 + $0x50] sm:$0xff] %vm4652_vm4, %v4801_v27  ;;  %v4996_v17 = vrot.slane %v4916_v19, 7 }
 0x2c4   :  { %4879 = vst.msk [vmem:[#allocation3 + $0x68] sm:$0xff] %vm4652_vm4, %v4802_v33  ;;  %4880 = vst.msk [vmem:[#allocation3 + $0x80] sm:$0xff] %vm4652_vm4, %v4803_v11  ;;  %v4806_v45 = vmax.f32 %v4790_v10, 0.0  ;;  %v4997_v33 = vrot.slane %v11720_v53, 7  ;;  %v4993_v10 = vrot.slane %v4913_v49, 7 }
 0x2c5   :  { %4881 = vst.msk [vmem:[#allocation3 + $0x98] sm:$0xff] %vm4652_vm4, %v4804_v40 }
 0x2c6   :  { %4883 = vst.msk [vmem:[#allocation3 + $0xc8] sm:$0xff] %vm4652_vm4, %v4806_v45  ;;  %v4998_v58 = vsel %vm2405_vm3, %v4996_v17, %v4997_v33 }
 0x2c9   :  { %v11657_v7 = vld [vmem:[#allocation3 + $0x20] sm:$0xff]  ;;  %v11728_v18 = vld [vmem:[#allocation3 + $0xb0] sm:$0xff] }
 0x2ca   :  { %v11659_v48 = vld [vmem:[#allocation3 + $0x38] sm:$0xff]  ;;  %v11661_v21 = vld [vmem:[#allocation3 + $0x50] sm:$0xff]  ;;  %v4976_v38 = vrot.slane %v11657_v7, 7  ;;  %8890 = vmatmul.mubr.msk.f32.vlgmr.msra.gmra.mxu0 %vm4652_vm4, %v11657_v7  ;;  %v4994_v40 = vrot.slane %v11728_v18, 7  ;;  %v5396_v17 = vrot.slane %v11657_v7, 1 }
 0x2cb   :  { %v4979_v6 = vrot.slane %v11659_v48, 7  ;;  %v11667_v42 = vld [vmem:[#allocation3 + $0x68] sm:$0xff]  ;;  %8892 = vmatprep.mubr.msk.f32.mxu0 %vm4652_vm4, %v11659_v48  ;;  %8940 = vmatpush3.msra.mxu0 %v12762_v20  ;;  %v4982_v5 = vrot.slane %v11661_v21, 7  ;;  %v11676_v35 = vld [vmem:[#allocation3 + $0x80] sm:$0xff] }
 0x2cc   :  { %v4985_v2 = vrot.slane %v11667_v42, 7  ;;  %v11679_v36 = vsel %vm2405_vm3, %v4975_v61, %v4976_v38  ;;  %8991 = vmatprep.subr.mxu0 %v11655_v0  ;;  %v11689_v37 = vld [vmem:[#allocation3 + $0x98] sm:$0xff]  ;;  %v4988_v47 = vrot.slane %v11676_v35, 7  ;;  %v11768_v25 = vsel %vm2405_vm3, %v4993_v10, %v4994_v40 }
 0x2cd   :  { %v11682_v54 = vsel %vm2405_vm3, %v4978_v59, %v4979_v6  ;;  %8916 = vmatmul.mubr.msk.f32.vlgmr.msra.gmra.mxu1 %vm4652_vm4, %v11679_v36  ;;  %v11699_v12 = vsel %vm2405_vm3, %v4981_v41, %v4982_v5  ;;  %v4991_v57 = vrot.slane %v11689_v37, 7  ;;  %v5002_v59 = vrot.slane %v4922_v23, 7  ;;  %v4925_v6 = vld [vmem:[#allocation3 + $0x138] sm:$0xff]  ;;  %v4928_v5 = vld [vmem:[#allocation3 + $0x150] sm:$0xff] }
 0x2ce   :  { %v9127_v3 = vpop.eup %9126  ;;  %8893 = vmatmul.mubr.msk.f32.gmra.mxu0 %vm4652_vm4, %v11661_v21  ;;  %8918 = vmatprep.mubr.msk.f32.mxu1 %vm4652_vm4, %v11682_v54  ;;  %v11714_v63 = vsel %vm2405_vm3, %v4984_v52, %v4985_v2  ;;  %v11745_v11 = vsel %vm2405_vm3, %v4987_v24, %v4988_v47  ;;  %v5005_v24 = vrot.slane %v4925_v6, 7  ;;  %v4931_v47 = vld [vmem:[#allocation3 + $0x168] sm:$0xff]  ;;  %v5399_v10 = vrot.slane %v11659_v48, 1  ;;  %v4906_v23 = vld [vmem:[#allocation3 + $0x70] sm:$0xff] }
 0x2cf   :  { %v4797_v34 = vmul.f32 %v9127_v3, %v4777_v16  ;;  %8895 = vmatprep.mubr.msk.f32.mxu0 %vm4652_vm4, %v11667_v42  ;;  %v4791_v44 = vmul.f32 %v9127_v3, %v4771_v9  ;;  %v4792_v26 = vmul.f32 %v9127_v3, %v4772_v1  ;;  %v4793_v13 = vmul.f32 %v9127_v3, %v4773_v62  ;;  %v4894_v62 = vld [vmem:[#allocation3 + $0x10] sm:$0xff] }
 0x2d0   :  { %v4794_v22 = vmul.f32 %v9127_v3, %v4774_v4  ;;  %v4795_v32 = vmul.f32 %v9127_v3, %v4775_v56  ;;  %8966 = vmatpush3.msra.mxu1 %v12763_v55  ;;  %v4796_v50 = vmul.f32 %v9127_v3, %v4776_v46  ;;  %v4798_v45 = vmul.f32 %v9127_v3, %v4778_v39  ;;  %v11856_v6 = vld [vmem:[%s12584_s4 + $0x30] sm:$0xff] }
 0x2d1   :  { %v4813_v43 = vmax.f32 %v4797_v34, 0.0  ;;  %8919 = vmatmul.mubr.msk.f32.gmra.mxu1 %vm4652_vm4, %v11699_v12  ;;  %v4807_v1 = vmax.f32 %v4791_v44, 0.0  ;;  %v4808_v8 = vmax.f32 %v4792_v26, 0.0  ;;  %9017 = vmatprep.subr.mxu1 %v11709_v30  ;;  %v4809_v28 = vmax.f32 %v4793_v13, 0.0  ;;  %v4934_v34 = vld [vmem:[#allocation3 + $0x180] sm:$0xff]  ;;  %v12764_v44 = vld [vmem:[#allocation7_spill] sm:$0xff] }
 0x2d2   :  { %8896 = vmatmul.mubr.msk.f32.gmra.mxu0 %vm4652_vm4, %v11676_v35  ;;  %8921 = vmatprep.mubr.msk.f32.mxu1 %vm4652_vm4, %v11714_v63  ;;  %v4810_v4 = vmax.f32 %v4794_v22, 0.0  ;;  %v4811_v27 = vmax.f32 %v4795_v32, 0.0  ;;  %v4812_v46 = vmax.f32 %v4796_v50, 0.0  ;;  %v11757_v31 = vsel %vm2405_vm3, %v4990_v14, %v4991_v57  ;;  %v4900_v50 = vld [vmem:[#allocation3 + $0x40] sm:$0xff] }
 0x2d3   :  { %4890 = vst.msk [vmem:[#allocation3 + $0x1a0] sm:$0xff] %vm4652_vm4, %v4813_v43  ;;  %8898 = vmatprep.mubr.msk.f32.mxu0 %vm4652_vm4, %v11689_v37  ;;  %4884 = vst.msk [vmem:[#allocation3 + $0x110] sm:$0xff] %vm4652_vm4, %v4807_v1  ;;  %v4814_v61 = vmax.f32 %v4798_v45, 0.0  ;;  %v4999_v39 = vrot.slane %v4919_v15, 7  ;;  %v5008_v3 = vrot.slane %v4928_v5, 7  ;;  %v5393_v26 = vrot.slane %v12764_v44, 1 }
 0x2d4   :  { %4885 = vst.msk [vmem:[#allocation3 + $0x128] sm:$0xff] %vm4652_vm4, %v4808_v8  ;;  %4886 = vst.msk [vmem:[#allocation3 + $0x140] sm:$0xff] %vm4652_vm4, %v4809_v28  ;;  %v5011_v13 = vrot.slane %v4931_v47, 7  ;;  %v5394_v22 = vrot.slane %v4894_v62, 1  ;;  %v5014_v49 = vrot.slane %v4934_v34, 7  ;;  %v4937_v1 = vld [vmem:[#allocation3 + $0x198] sm:$0xff] }
 0x2d5   :  { %4887 = vst.msk [vmem:[#allocation3 + $0x158] sm:$0xff] %vm4652_vm4, %v4810_v4  ;;  %4888 = vst.msk [vmem:[#allocation3 + $0x170] sm:$0xff] %vm4652_vm4, %v4811_v27  ;;  %8922 = vmatmul.mubr.msk.f32.gmra.mxu1 %vm4652_vm4, %v11745_v11  ;;  %v4897_v8 = vld [vmem:[#allocation3 + $0x28] sm:$0xff]  ;;  %v5017_v27 = vrot.slane %v4937_v1, 7  ;;  %v5400_v45 = vrot.slane %v4900_v50, 1  ;;  %v4903_v15 = vld [vmem:[#allocation3 + $0x58] sm:$0xff] }
 0x2d6   :  { %4889 = vst.msk [vmem:[#allocation3 + $0x188] sm:$0xff] %vm4652_vm4, %v4812_v46  ;;  %8899 = vmatmul.mubr.msk.f32.gmra.mxu0 %vm4652_vm4, %v11728_v18  ;;  %8924 = vmatprep.mubr.msk.f32.mxu1 %vm4652_vm4, %v11757_v31  ;;  %4891 = vst.msk [vmem:[#allocation3 + $0x1b8] sm:$0xff] %vm4652_vm4, %v4814_v61  ;;  %v5395_v33 = vsel %vm521_vm2, %v5393_v26, %v5394_v22  ;;  %v5397_v40 = vrot.slane %v4897_v8, 1  ;;  %v5406_v5 = vrot.slane %v4906_v23, 1  ;;  %v4918_v47 = vld [vmem:[#allocation3 + $0x100] sm:$0xff]  ;;  %v11879_v62 = vld [vmem:[%s12584_s4 + $0x38] sm:$0xff] }
 0x2d7   :  { %8901 = vmatprep.mubr.msk.f32.mxu0 %vm4652_vm4, %v11720_v53  ;;  %v4915_v26 = vld [vmem:[#allocation3 + $0xb8] sm:$0xff]  ;;  %v5414_v22 = vrot.slane %v11728_v18, 1  ;;  %v5657_v1 = vld [vmem:[#allocation3 + $0xc0] sm:$0xff]  ;;  %v11900_v8 = vld [vmem:[#allocation3 + $0xc8] sm:$0xff] }
 0x2d8   :  { %v4924_v50 = vld [vmem:[#allocation3 + $0x130] sm:$0xff]  ;;  %v4927_v23 = vld [vmem:[#allocation3 + $0x148] sm:$0xff] }
 0x2d9   :  { %8925 = vmatmul.mubr.msk.f32.gmra.mxu1 %vm4652_vm4, %v11768_v25 }
 0x2da   :  { %v11773_v60 = vld [vmem:[#allocation3 + $0x110] sm:$0xff]  ;;  %8927 = vmatprep.mubr.msk.f32.mxu1 %vm4652_vm4, %v4998_v58  ;;  %v11819_v43 = vld [vmem:[#allocation3 + $0x1a0] sm:$0xff]  ;;  %v5402_v58 = vrot.slane %v11661_v21, 1 }
 0x2db   :  { %v11775_v38 = vld [vmem:[#allocation3 + $0x128] sm:$0xff]  ;;  %v5000_v41 = vrot.slane %v11773_v60, 7  ;;  %8902 = vmatmul.mubr.msk.f32.gmra.mxu0 %vm4652_vm4, %v11773_v60  ;;  %v11782_v51 = vld [vmem:[#allocation3 + $0x140] sm:$0xff]  ;;  %v5018_v4 = vrot.slane %v11819_v43, 7 }
 0x2dc   :  { %v5003_v29 = vrot.slane %v11775_v38, 7  ;;  %v11784_v20 = vld [vmem:[#allocation3 + $0x158] sm:$0xff]  ;;  %8904 = vmatprep.mubr.msk.f32.mxu0 %vm4652_vm4, %v11775_v38  ;;  %v5006_v52 = vrot.slane %v11782_v51, 7  ;;  %v11798_v9 = vld [vmem:[#allocation3 + $0x170] sm:$0xff] }
 0x2dd   :  { %v11789_v2 = vsel %vm2405_vm3, %v4999_v39, %v5000_v41  ;;  %v5009_v14 = vrot.slane %v11784_v20, 7  ;;  %v11804_v56 = vld [vmem:[#allocation3 + $0x188] sm:$0xff]  ;;  %v5012_v19 = vrot.slane %v11798_v9, 7  ;;  %v11845_v61 = vsel %vm2405_vm3, %v5017_v27, %v5018_v4 }
 0x2de   :  { %v11793_v16 = vsel %vm2405_vm3, %v5002_v59, %v5003_v29  ;;  %8928 = vmatmul.mubr.msk.f32.gmra.mxu1 %vm4652_vm4, %v11789_v2  ;;  %v11810_v57 = vsel %vm2405_vm3, %v5005_v24, %v5006_v52  ;;  %v5015_v55 = vrot.slane %v11804_v56, 7  ;;  %v11851_v39 = vsel %vm521_vm2, %v5396_v17, %v5397_v40  ;;  %v4909_v52 = vld [vmem:[#allocation3 + $0x88] sm:$0xff]  ;;  %v4912_v24 = vld [vmem:[#allocation3 + $0xa0] sm:$0xff] }
 0x2df   :  { %8905 = vmatmul.mubr.msk.f32.gmra.mxu0 %vm4652_vm4, %v11782_v51  ;;  %8930 = vmatprep.mubr.msk.f32.mxu1 %vm4652_vm4, %v11793_v16  ;;  %v11816_v32 = vsel %vm2405_vm3, %v5008_v3, %v5009_v14  ;;  %v11828_v28 = vsel %vm2405_vm3, %v5011_v13, %v5012_v19  ;;  %v5403_v59 = vrot.slane %v4903_v15, 1  ;;  %v5405_v41 = vrot.slane %v11667_v42, 1 }
 0x2e0   :  { %8907 = vmatprep.mubr.msk.f32.mxu0 %vm4652_vm4, %v11784_v20  ;;  %v11836_v46 = vsel %vm2405_vm3, %v5014_v49, %v5015_v55  ;;  %v11864_v29 = vsel %vm521_vm2, %v5399_v10, %v5400_v45  ;;  %v5408_v14 = vrot.slane %v11676_v35, 1  ;;  %v5409_v3 = vrot.slane %v4909_v52, 1 }
 0x2e1   :  { %v11887_v34 = vsel %vm521_vm2, %v5405_v41, %v5406_v5  ;;  %v5412_v44 = vrot.slane %v4912_v24, 1  ;;  %v5417_v19 = vrot.slane %v11720_v53, 1  ;;  %v5418_v13 = vrot.slane %v4918_v47, 1  ;;  %v4921_v53 = vld [vmem:[#allocation3 + $0x118] sm:$0xff] }
 0x2e2   :  { %8931 = vmatmul.mubr.msk.f32.gmra.mxu1 %vm4652_vm4, %v11810_v57  ;;  %v11898_v55 = vsel %vm521_vm2, %v5408_v14, %v5409_v3  ;;  %v5415_v49 = vrot.slane %v4915_v26, 1  ;;  %v5737_v27 = vrot.slane %v5657_v1, 7  ;;  %v5420_v17 = vrot.slane %v11773_v60, 1  ;;  %v4933_v47 = vld [vmem:[#allocation3 + $0x178] sm:$0xff] }
 0x2e3   :  { %8908 = vmatmul.mubr.msk.f32.gmra.mxu0 %vm4652_vm4, %v11798_v9  ;;  %8933 = vmatprep.mubr.msk.f32.mxu1 %vm4652_vm4, %v11816_v32  ;;  %v5419_v4 = vsel %vm521_vm2, %v5417_v19, %v5418_v13  ;;  %v5421_v10 = vrot.slane %v4921_v53, 1  ;;  %v5423_v45 = vrot.slane %v11775_v38, 1  ;;  %v5424_v15 = vrot.slane %v4924_v50, 1 }
 0x2e4   :  { %8910 = vmatprep.mubr.msk.f32.mxu0 %vm4652_vm4, %v11804_v56  ;;  %v11917_v40 = vsel %vm521_vm2, %v5414_v22, %v5415_v49  ;;  %v5426_v41 = vrot.slane %v11782_v51, 1  ;;  %v5427_v52 = vrot.slane %v4927_v23, 1  ;;  %v5429_v24 = vrot.slane %v11784_v20, 1  ;;  %v4939_v49 = vld [vmem:[#allocation3 + $0x1a8] sm:$0xff]  ;;  %v7943_v23 = vld [vmem:[%s12584_s4 + $0x40] sm:$0xff] }
 0x2e5   :  { %v11932_v5 = vsel %vm521_vm2, %v5420_v17, %v5421_v10  ;;  %v11940_v14 = vsel %vm521_vm2, %v5423_v45, %v5424_v15  ;;  %v5433_v19 = vrot.slane %v4933_v47, 1  ;;  %v5438_v1 = vrot.slane %v11819_v43, 1 }
 0x2e6   :  { %8934 = vmatmul.mubr.msk.f32.gmra.mxu1 %vm4652_vm4, %v11828_v28  ;;  %v11948_v26 = vsel %vm521_vm2, %v5426_v41, %v5427_v52  ;;  %v5439_v50 = vrot.slane %v4939_v49, 1  ;;  %v6435_v52 = vld [vmem:[#allocation3 + $0xd8] sm:$0xff] }
 0x2e7   :  { %8911 = vmatmul.mubr.msk.f32.gmra.mxu0 %vm4652_vm4, %v11819_v43  ;;  %8936 = vmatprep.mubr.msk.f32.mxu1 %vm4652_vm4, %v11836_v46 }
 0x2e8   :  { %8941 = vmatprep.mubr.msk.f32.mxu0 %vm4652_vm4, %v5395_v33  ;;  %v5738_v33 = vrot.slane %v11900_v8, 7  ;;  %v11981_v45 = vsel %vm521_vm2, %v5438_v1, %v5439_v50 }
 0x2ea   :  { %8937 = vmatmul.mubr.msk.f32.gmra.mxu1 %vm4652_vm4, %v11845_v61 }
 0x2eb   :  { %8942 = vmatmul.mubr.msk.f32.vlgmr.msra.gmra.mxu0 %vm4652_vm4, %v11851_v39  ;;  %8967 = vmatprep.mubr.msk.f32.mxu1 %vm4652_vm4, %v11679_v36  ;;  %v11874_v36 = vsel %vm521_vm2, %v5402_v58, %v5403_v59  ;;  %v4930_v58 = vld [vmem:[#allocation3 + $0x160] sm:$0xff]  ;;  %v11926_v59 = vsel %vm2405_vm3, %v5737_v27, %v5738_v33  ;;  %v11966_v27 = vld [vmem:[#allocation3 + $0x1b8] sm:$0xff] }
 0x2ec   :  { %8944 = vmatprep.mubr.msk.f32.mxu0 %vm4652_vm4, %v11864_v29  ;;  %8992 = vmatpush3.msra.mxu0 %v11655_v0  ;;  %v5411_v0 = vrot.slane %v11689_v37, 1  ;;  %v5430_v3 = vrot.slane %v4930_v58, 1  ;;  %v5762_v10 = vrot.slane %v11966_v27, 7  ;;  %v6215_v58 = vrot.slane %v11966_v27, 1 }
 0x2ed   :  { %9043 = vmatprep.subr.mxu0 %v11856_v6 }
 0x2ee   :  { %8968 = vmatmul.mubr.msk.f32.vlgmr.msra.gmra.mxu1 %vm4652_vm4, %v11682_v54  ;;  %v11956_v13 = vsel %vm521_vm2, %v5429_v24, %v5430_v3  ;;  %v6436_v24 = vld [vmem:[#allocation3 + $0xe0] sm:$0xff] }
 0x2ef   :  { %8945 = vmatmul.mubr.msk.f32.gmra.mxu0 %vm4652_vm4, %v11874_v36  ;;  %8970 = vmatprep.mubr.msk.f32.mxu1 %vm4652_vm4, %v11699_v12 }
 0x2f0   :  { %8947 = vmatprep.mubr.msk.f32.mxu0 %vm4652_vm4, %v11887_v34  ;;  %9018 = vmatpush3.msra.mxu1 %v11709_v30  ;;  %v11907_v30 = vsel %vm521_vm2, %v5411_v0, %v5412_v44  ;;  %v4936_v0 = vld [vmem:[#allocation3 + $0x190] sm:$0xff]  ;;  %v5432_v44 = vrot.slane %v11798_v9, 1 }
 0x2f1   :  { %9069 = vmatprep.subr.mxu1 %v11879_v62  ;;  %v5436_v22 = vrot.slane %v4936_v0, 1 }
 0x2f2   :  { %8971 = vmatmul.mubr.msk.f32.gmra.mxu1 %vm4652_vm4, %v11714_v63  ;;  %v11964_v53 = vsel %vm521_vm2, %v5432_v44, %v5433_v19 }
 0x2f3   :  { %8948 = vmatmul.mubr.msk.f32.gmra.mxu0 %vm4652_vm4, %v11898_v55  ;;  %8973 = vmatprep.mubr.msk.f32.mxu1 %vm4652_vm4, %v11745_v11 }
 0x2f4   :  { %8950 = vmatprep.mubr.msk.f32.mxu0 %vm4652_vm4, %v11907_v30 }
 0x2f6   :  { %8974 = vmatmul.mubr.msk.f32.gmra.mxu1 %vm4652_vm4, %v11757_v31 }
 0x2f7   :  { %8951 = vmatmul.mubr.msk.f32.gmra.mxu0 %vm4652_vm4, %v11917_v40  ;;  %8976 = vmatprep.mubr.msk.f32.mxu1 %vm4652_vm4, %v11768_v25 }
 0x2f8   :  { %8953 = vmatprep.mubr.msk.f32.mxu0 %vm4652_vm4, %v5419_v4  ;;  %v5681_v4 = vld [vmem:[#allocation3 + $0x1b0] sm:$0xff] }
 0x2f9   :  { %v5761_v17 = vrot.slane %v5681_v4, 7 }
 0x2fa   :  { %8977 = vmatmul.mubr.msk.f32.gmra.mxu1 %vm4652_vm4, %v11926_v59 }
 0x2fb   :  { %8954 = vmatmul.mubr.msk.f32.gmra.mxu0 %vm4652_vm4, %v11932_v5  ;;  %8979 = vmatprep.mubr.msk.f32.mxu1 %vm4652_vm4, %v11789_v2  ;;  %v5435_v2 = vrot.slane %v11804_v56, 1  ;;  %v11990_v15 = vsel %vm2405_vm3, %v5761_v17, %v5762_v10 }
 0x2fc   :  { %8956 = vmatprep.mubr.msk.f32.mxu0 %vm4652_vm4, %v11940_v14 }
 0x2fd   :  { %v11973_v33 = vsel %vm521_vm2, %v5435_v2, %v5436_v22 }
 0x2fe   :  { %8980 = vmatmul.mubr.msk.f32.gmra.mxu1 %vm4652_vm4, %v11793_v16 }
 0x2ff   :  { %8957 = vmatmul.mubr.msk.f32.gmra.mxu0 %vm4652_vm4, %v11948_v26  ;;  %8982 = vmatprep.mubr.msk.f32.mxu1 %vm4652_vm4, %v11810_v57 }
 0x300   :  { %8959 = vmatprep.mubr.msk.f32.mxu0 %vm4652_vm4, %v11956_v13 }
 0x302   :  { %8983 = vmatmul.mubr.msk.f32.gmra.mxu1 %vm4652_vm4, %v11816_v32 }
 0x303   :  { %8960 = vmatmul.mubr.msk.f32.gmra.mxu0 %vm4652_vm4, %v11964_v53  ;;  %8985 = vmatprep.mubr.msk.f32.mxu1 %vm4652_vm4, %v11828_v28 }
 0x304   :  { %8962 = vmatprep.mubr.msk.f32.mxu0 %vm4652_vm4, %v11973_v33 }
 0x306   :  { %8986 = vmatmul.mubr.msk.f32.gmra.mxu1 %vm4652_vm4, %v11836_v46 }
 0x307   :  { %8963 = vmatmul.mubr.msk.f32.gmra.mxu0 %vm4652_vm4, %v11981_v45  ;;  %8988 = vmatprep.mubr.msk.f32.mxu1 %vm4652_vm4, %v11845_v61 }
 0x308   :  { %8993 = vmatprep.mubr.msk.f32.mxu0 %vm4652_vm4, %v11657_v7  ;;  %v5659_v7 = vld [vmem:[#allocation3 + $0xd0] sm:$0xff] }
 0x30a   :  { %8989 = vmatmul.mubr.msk.f32.gmra.mxu1 %vm4652_vm4, %v11990_v15 }
 0x30b   :  { %8994 = vmatmul.mubr.msk.f32.vlgmr.msra.gmra.mxu0 %vm4652_vm4, %v11659_v48  ;;  %9019 = vmatprep.mubr.msk.f32.mxu1 %vm4652_vm4, %v11851_v39  ;;  %v6191_v39 = vrot.slane %v11900_v8, 1 }
 0x30c   :  { %8996 = vmatprep.mubr.msk.f32.mxu0 %vm4652_vm4, %v11661_v21  ;;  %9044 = vmatpush3.msra.mxu0 %v11856_v6  ;;  %v6192_v6 = vrot.slane %v5659_v7, 1 }
 0x30d   :  { %9095 = vmatprep.subr.mxu0 %v7943_v23 }
 0x30e   :  { %9020 = vmatmul.mubr.msk.f32.vlgmr.msra.gmra.mxu1 %vm4652_vm4, %v11864_v29 }
 0x30f   :  { %8997 = vmatmul.mubr.msk.f32.gmra.mxu0 %vm4652_vm4, %v11667_v42  ;;  %9022 = vmatprep.mubr.msk.f32.mxu1 %vm4652_vm4, %v11874_v36 }
 0x310   :  { %8999 = vmatprep.mubr.msk.f32.mxu0 %vm4652_vm4, %v11676_v35  ;;  %9070 = vmatpush3.msra.mxu1 %v11879_v62  ;;  %v12031_v62 = vsel %vm521_vm2, %v6191_v39, %v6192_v6 }
 0x312   :  { %9023 = vmatmul.mubr.msk.f32.gmra.mxu1 %vm4652_vm4, %v11887_v34 }
 0x313   :  { %9000 = vmatmul.mubr.msk.f32.gmra.mxu0 %vm4652_vm4, %v11689_v37  ;;  %9025 = vmatprep.mubr.msk.f32.mxu1 %vm4652_vm4, %v11898_v55 }
 0x314   :  { %9002 = vmatprep.mubr.msk.f32.mxu0 %vm4652_vm4, %v11728_v18 }
 0x316   :  { %9026 = vmatmul.mubr.msk.f32.gmra.mxu1 %vm4652_vm4, %v11907_v30 }
 0x317   :  { %9003 = vmatmul.mubr.msk.f32.gmra.mxu0 %vm4652_vm4, %v11900_v8  ;;  %9028 = vmatprep.mubr.msk.f32.mxu1 %vm4652_vm4, %v11917_v40 }
 0x318   :  { %9005 = vmatprep.mubr.msk.f32.mxu0 %vm4652_vm4, %v11773_v60  ;;  %v5683_v60 = vld [vmem:[#allocation3 + $0x1c0] sm:$0xff] }
 0x319   :  { %v6216_v41 = vrot.slane %v5683_v60, 1 }
 0x31a   :  { %9029 = vmatmul.mubr.msk.f32.gmra.mxu1 %vm4652_vm4, %v12031_v62 }
 0x31b   :  { %9006 = vmatmul.mubr.msk.f32.gmra.mxu0 %vm4652_vm4, %v11775_v38  ;;  %9031 = vmatprep.mubr.msk.f32.mxu1 %vm4652_vm4, %v11932_v5  ;;  %v12067_v5 = vsel %vm521_vm2, %v6215_v58, %v6216_v41 }
 0x31c   :  { %9008 = vmatprep.mubr.msk.f32.mxu0 %vm4652_vm4, %v11782_v51 }
 0x31e   :  { %9032 = vmatmul.mubr.msk.f32.gmra.mxu1 %vm4652_vm4, %v11940_v14 }
 0x31f   :  { %9009 = vmatmul.mubr.msk.f32.gmra.mxu0 %vm4652_vm4, %v11784_v20  ;;  %9034 = vmatprep.mubr.msk.f32.mxu1 %vm4652_vm4, %v11948_v26 }
 0x320   :  { %9011 = vmatprep.mubr.msk.f32.mxu0 %vm4652_vm4, %v11798_v9 }
 0x322   :  { %9035 = vmatmul.mubr.msk.f32.gmra.mxu1 %vm4652_vm4, %v11956_v13 }
 0x323   :  { %9012 = vmatmul.mubr.msk.f32.gmra.mxu0 %vm4652_vm4, %v11804_v56  ;;  %9037 = vmatprep.mubr.msk.f32.mxu1 %vm4652_vm4, %v11964_v53 }
 0x324   :  { %9014 = vmatprep.mubr.msk.f32.mxu0 %vm4652_vm4, %v11819_v43 }
 0x326   :  { %9038 = vmatmul.mubr.msk.f32.gmra.mxu1 %vm4652_vm4, %v11973_v33 }
 0x327   :  { %9015 = vmatmul.mubr.msk.f32.gmra.mxu0 %vm4652_vm4, %v11966_v27  ;;  %9040 = vmatprep.mubr.msk.f32.mxu1 %vm4652_vm4, %v11981_v45 }
 0x328   :  { %9045 = vmatprep.mubr.msk.f32.mxu0 %vm4652_vm4, %v11682_v54  ;;  %v6515_v54 = vrot.slane %v6435_v52, 7 }
 0x32a   :  { %9041 = vmatmul.mubr.msk.f32.gmra.mxu1 %vm4652_vm4, %v12067_v5 }
 0x32b   :  { %9046 = vmatmul.mubr.msk.f32.vlgmr.msra.gmra.mxu0 %vm4652_vm4, %v11699_v12  ;;  %9071 = vmatprep.mubr.msk.f32.mxu1 %vm4652_vm4, %v11659_v48  ;;  %v6516_v48 = vrot.slane %v6436_v24, 7 }
 0x32c   :  { %9048 = vmatprep.mubr.msk.f32.mxu0 %vm4652_vm4, %v11714_v63  ;;  %9096 = vmatpush3.msra.mxu0 %v7943_v23 }
 0x32e   :  { %9072 = vmatmul.mubr.msk.f32.vlgmr.msra.gmra.mxu1 %vm4652_vm4, %v11661_v21  ;;  %v6517_v21 = vsel %vm2405_vm3, %v6515_v54, %v6516_v48 }
 0x32f   :  { %9049 = vmatmul.mubr.msk.f32.gmra.mxu0 %vm4652_vm4, %v11745_v11  ;;  %9074 = vmatprep.mubr.msk.f32.mxu1 %vm4652_vm4, %v11667_v42  ;;  %v6459_v42 = vld [vmem:[#allocation3 + $0x1c8] sm:$0xff]  ;;  %v6969_v11 = vrot.slane %v6436_v24, 1 }
 0x330   :  { %9051 = vmatprep.mubr.msk.f32.mxu0 %vm4652_vm4, %v11757_v31 }
 0x332   :  { %9075 = vmatmul.mubr.msk.f32.gmra.mxu1 %vm4652_vm4, %v11676_v35  ;;  %v6460_v35 = vld [vmem:[#allocation3 + $0x1d0] sm:$0xff] }
 0x333   :  { %9052 = vmatmul.mubr.msk.f32.gmra.mxu0 %vm4652_vm4, %v11768_v25  ;;  %9077 = vmatprep.mubr.msk.f32.mxu1 %vm4652_vm4, %v11689_v37  ;;  %v6539_v37 = vrot.slane %v6459_v42, 7  ;;  %v6540_v12 = vrot.slane %v6460_v35, 7 }
 0x334   :  { %9054 = vmatprep.mubr.msk.f32.mxu0 %vm4652_vm4, %v11926_v59 }
 0x335   :  { %v6541_v63 = vsel %vm2405_vm3, %v6539_v37, %v6540_v12 }
 0x336   :  { %9078 = vmatmul.mubr.msk.f32.gmra.mxu1 %vm4652_vm4, %v11728_v18  ;;  %v6437_v18 = vld [vmem:[#allocation3 + $0xe8] sm:$0xff] }
 0x337   :  { %9055 = vmatmul.mubr.msk.f32.gmra.mxu0 %vm4652_vm4, %v6517_v21  ;;  %9080 = vmatprep.mubr.msk.f32.mxu1 %vm4652_vm4, %v11900_v8  ;;  %v6970_v31 = vrot.slane %v6437_v18, 1 }
 0x338   :  { %9057 = vmatprep.mubr.msk.f32.mxu0 %vm4652_vm4, %v11793_v16 }
 0x339   :  { %v6971_v25 = vsel %vm521_vm2, %v6969_v11, %v6970_v31 }
 0x33a   :  { %9081 = vmatmul.mubr.msk.f32.gmra.mxu1 %vm4652_vm4, %v6436_v24 }
 0x33b   :  { %9058 = vmatmul.mubr.msk.f32.gmra.mxu0 %vm4652_vm4, %v11810_v57  ;;  %9083 = vmatprep.mubr.msk.f32.mxu1 %vm4652_vm4, %v11775_v38  ;;  %v6461_v38 = vld [vmem:[#allocation3 + $0x1d8] sm:$0xff] }
 0x33c   :  { %9060 = vmatprep.mubr.msk.f32.mxu0 %vm4652_vm4, %v11816_v32 }
 0x33e   :  { %9084 = vmatmul.mubr.msk.f32.gmra.mxu1 %vm4652_vm4, %v11782_v51  ;;  %v6993_v51 = vrot.slane %v6460_v35, 1 }
 0x33f   :  { %9061 = vmatmul.mubr.msk.f32.gmra.mxu0 %vm4652_vm4, %v11828_v28  ;;  %9086 = vmatprep.mubr.msk.f32.mxu1 %vm4652_vm4, %v11784_v20  ;;  %v6994_v20 = vrot.slane %v6461_v38, 1 }
 0x340   :  { %9063 = vmatprep.mubr.msk.f32.mxu0 %vm4652_vm4, %v11836_v46 }
 0x341   :  { %v6995_v16 = vsel %vm521_vm2, %v6993_v51, %v6994_v20 }
 0x342   :  { %9087 = vmatmul.mubr.msk.f32.gmra.mxu1 %vm4652_vm4, %v11798_v9 }
 0x343   :  { %9064 = vmatmul.mubr.msk.f32.gmra.mxu0 %vm4652_vm4, %v11845_v61  ;;  %9089 = vmatprep.mubr.msk.f32.mxu1 %vm4652_vm4, %v11804_v56 }
 0x344   :  { %9066 = vmatprep.mubr.msk.f32.mxu0 %vm4652_vm4, %v11990_v15 }
 0x346   :  { %9090 = vmatmul.mubr.msk.f32.gmra.mxu1 %vm4652_vm4, %v11819_v43 }
 0x347   :  { %9067 = vmatmul.mubr.msk.f32.gmra.mxu0 %vm4652_vm4, %v6541_v63  ;;  %9092 = vmatprep.mubr.msk.f32.mxu1 %vm4652_vm4, %v11966_v27 }
 0x348   :  { %9097 = vmatprep.mubr.msk.f32.mxu0 %vm4652_vm4, %v11864_v29 }
 0x34a   :  { %9093 = vmatmul.mubr.msk.f32.gmra.mxu1 %vm4652_vm4, %v6460_v35 }
 0x34b   :  { %9098 = vmatmul.mubr.msk.f32.vlgmr.msra.gmra.mxu0 %vm4652_vm4, %v11874_v36 }
 0x34c   :  { %9100 = vmatprep.mubr.msk.f32.mxu0 %vm4652_vm4, %v11887_v34 }
 0x34f   :  { %9101 = vmatmul.mubr.msk.f32.gmra.mxu0 %vm4652_vm4, %v11898_v55 }
 0x350   :  { %9103 = vmatprep.mubr.msk.f32.mxu0 %vm4652_vm4, %v11907_v30 }
 0x353   :  { %9104 = vmatmul.mubr.msk.f32.gmra.mxu0 %vm4652_vm4, %v11917_v40 }
 0x354   :  { %9106 = vmatprep.mubr.msk.f32.mxu0 %vm4652_vm4, %v12031_v62 }
 0x357   :  { %9107 = vmatmul.mubr.msk.f32.gmra.mxu0 %vm4652_vm4, %v6971_v25 }
 0x358   :  { %9109 = vmatprep.mubr.msk.f32.mxu0 %vm4652_vm4, %v11940_v14 }
 0x35b   :  { %9110 = vmatmul.mubr.msk.f32.gmra.mxu0 %vm4652_vm4, %v11948_v26 }
 0x35c   :  { %9112 = vmatprep.mubr.msk.f32.mxu0 %vm4652_vm4, %v11956_v13 }
 0x35f   :  { %9113 = vmatmul.mubr.msk.f32.gmra.mxu0 %vm4652_vm4, %v11964_v53 }
 0x360   :  { %9115 = vmatprep.mubr.msk.f32.mxu0 %vm4652_vm4, %v11973_v33 }
 0x363   :  { %9116 = vmatmul.mubr.msk.f32.gmra.mxu0 %vm4652_vm4, %v11981_v45 }
 0x364   :  { %9118 = vmatprep.mubr.msk.f32.mxu0 %vm4652_vm4, %v12067_v5 }
 0x367   :  { %9119 = vmatmul.mubr.msk.f32.gmra.mxu0 %vm4652_vm4, %v6995_v16 }
 0x38a   :  { %v8891_v9 = vpop.f32.mrf.mxu0 }
 0x38c   :  { %v5121_v56 = vpop.f32.mrf.mxu0 }
 0x38d   :  { %v8917_v57 = vpop.f32.mrf.mxu1 }
 0x38e   :  { %v5304_v32 = vadd.f32 %v8917_v57, %v8891_v9  ;;  %v8894_v43 = vpop.f32.mrf.mxu0 }
 0x38f   :  { %v5298_v28 = vpop.f32.mrf.mxu1 }
 0x390   :  { %v5299_v46 = vadd.f32 %v5298_v28, %v5121_v56  ;;  %v5131_v61 = vpop.f32.mrf.mxu0 }
 0x391   :  { %v8920_v29 = vpop.f32.mrf.mxu1 }
 0x392   :  { %v5314_v36 = vadd.f32 %v8920_v29, %v8894_v43  ;;  %v8897_v34 = vpop.f32.mrf.mxu0 }
 0x393   :  { %v5308_v55 = vpop.f32.mrf.mxu1 }
 0x394   :  { %v5309_v8 = vadd.f32 %v5308_v55, %v5131_v61  ;;  %v5141_v30 = vpop.f32.mrf.mxu0 }
 0x395   :  { %v8923_v40 = vpop.f32.mrf.mxu1 }
 0x396   :  { %v5324_v59 = vadd.f32 %v8923_v40, %v8897_v34  ;;  %v8900_v14 = vpop.f32.mrf.mxu0 }
 0x397   :  { %v5318_v3 = vpop.f32.mrf.mxu1 }
 0x398   :  { %v5319_v47 = vadd.f32 %v5318_v3, %v5141_v30  ;;  %v5151_v0 = vpop.f32.mrf.mxu0 }
 0x399   :  { %v8926_v44 = vpop.f32.mrf.mxu1 }
 0x39a   :  { %v5334_v26 = vadd.f32 %v8926_v44, %v8900_v14 }
 0x39b   :  { %v8903_v19 = vpop.f32.mrf.mxu0  ;;  %v5328_v2 = vpop.f32.mrf.mxu1 }
 0x39c   :  { %v5329_v13 = vadd.f32 %v5328_v2, %v5151_v0 }
 0x39d   :  { %v5161_v22 = vpop.f32.mrf.mxu0 }
 0x39e   :  { %v8929_v49 = vpop.f32.mrf.mxu1 }
 0x39f   :  { %v5344_v1 = vadd.f32 %v8929_v49, %v8903_v19  ;;  %v8906_v53 = vpop.f32.mrf.mxu0 }
 0x3a0   :  { %v5338_v50 = vpop.f32.mrf.mxu1 }
 0x3a1   :  { %v5339_v4 = vadd.f32 %v5338_v50, %v5161_v22  ;;  %v5171_v27 = vpop.f32.mrf.mxu0 }
 0x3a2   :  { %v8932_v33 = vpop.f32.mrf.mxu1 }
 0x3a3   :  { %v5354_v17 = vadd.f32 %v8932_v33, %v8906_v53  ;;  %v8909_v10 = vpop.f32.mrf.mxu0 }
 0x3a4   :  { %v5348_v45 = vpop.f32.mrf.mxu1 }
 0x3a5   :  { %v5349_v15 = vadd.f32 %v5348_v45, %v5171_v27  ;;  %v5181_v23 = vpop.f32.mrf.mxu0 }
 0x3a6   :  { %v8935_v7 = vpop.f32.mrf.mxu1 }
 0x3a7   :  { %v5364_v39 = vadd.f32 %v8935_v7, %v8909_v10  ;;  %v8912_v6 = vpop.f32.mrf.mxu0 }
 0x3a8   :  { %v5358_v62 = vpop.f32.mrf.mxu1 }
 0x3a9   :  { %v5359_v60 = vadd.f32 %v5358_v62, %v5181_v23  ;;  %v5191_v58 = vpop.f32.mrf.mxu0 }
 0x3aa   :  { %v8938_v41 = vpop.f32.mrf.mxu1 }
 0x3ab   :  { %v5374_v5 = vadd.f32 %v8938_v41, %v8912_v6  ;;  %v8943_v52 = vpop.f32.mrf.mxu0 }
 0x3ac   :  { %v12163_v24 = vadd.f32 %v8943_v52, %v5304_v32  ;;  %v5368_v54 = vpop.f32.mrf.mxu1 }
 0x3ad   :  { %v5369_v48 = vadd.f32 %v5368_v54, %v5191_v58  ;;  %v5541_v21 = vpop.f32.mrf.mxu0 }
 0x3ae   :  { %v12165_v42 = vadd.f32 %v5541_v21, %v5299_v46  ;;  %v12167_v35 = vpop.f32.mrf.mxu1 }
 0x3af   :  { %v8946_v37 = vpop.f32.mrf.mxu0 }
 0x3b0   :  { %v12169_v12 = vadd.f32 %v8946_v37, %v5314_v36  ;;  %v12171_v63 = vpop.f32.mrf.mxu1 }
 0x3b1   :  { %v5551_v18 = vpop.f32.mrf.mxu0 }
 0x3b2   :  { %v12173_v11 = vadd.f32 %v5551_v18, %v5309_v8  ;;  %v12175_v31 = vpop.f32.mrf.mxu1 }
 0x3b3   :  { %v8949_v25 = vpop.f32.mrf.mxu0 }
 0x3b4   :  { %v12177_v38 = vadd.f32 %v8949_v25, %v5324_v59  ;;  %v12179_v51 = vpop.f32.mrf.mxu1 }
 0x3b5   :  { %v5561_v20 = vpop.f32.mrf.mxu0 }
 0x3b6   :  { %v12181_v16 = vadd.f32 %v5561_v20, %v5319_v47  ;;  %v12183_v9 = vpop.f32.mrf.mxu1 }
 0x3b7   :  { %v8952_v56 = vpop.f32.mrf.mxu0 }
 0x3b8   :  { %v12185_v57 = vadd.f32 %v8952_v56, %v5334_v26  ;;  %v12187_v32 = vpop.f32.mrf.mxu1 }
 0x3b9   :  { %v5571_v43 = vpop.f32.mrf.mxu0 }
 0x3ba   :  { %v12189_v28 = vadd.f32 %v5571_v43, %v5329_v13  ;;  %v12191_v46 = vpop.f32.mrf.mxu1 }
 0x3bb   :  { %v8955_v61 = vpop.f32.mrf.mxu0 }
 0x3bc   :  { %v5629_v29 = vadd.f32 %v8955_v61, %v5344_v1  ;;  %v12193_v36 = vpop.f32.mrf.mxu1 }
 0x3bd   :  { %v5581_v34 = vpop.f32.mrf.mxu0 }
 0x3be   :  { %v5628_v55 = vadd.f32 %v5581_v34, %v5339_v4  ;;  %v8981_v8 = vpop.f32.mrf.mxu1 }
 0x3bf   :  { %v5952_v30 = vadd.f32 %v8981_v8, %v5629_v29  ;;  %v8958_v40 = vpop.f32.mrf.mxu0 }
 0x3c0   :  { %v5631_v59 = vadd.f32 %v8958_v40, %v5354_v17  ;;  %v5904_v14 = vpop.f32.mrf.mxu1 }
 0x3c1   :  { %v5951_v3 = vadd.f32 %v5904_v14, %v5628_v55  ;;  %v5591_v47 = vpop.f32.mrf.mxu0 }
 0x3c2   :  { %v12195_v0 = vadd.f32 %v5591_v47, %v5349_v15  ;;  %v8984_v44 = vpop.f32.mrf.mxu1 }
 0x3c3   :  { %v5954_v26 = vadd.f32 %v8984_v44, %v5631_v59  ;;  %v8961_v19 = vpop.f32.mrf.mxu0 }
 0x3c4   :  { %v5633_v2 = vadd.f32 %v8961_v19, %v5364_v39  ;;  %v12197_v13 = vpop.f32.mrf.mxu1 }
 0x3c5   :  { %v5601_v22 = vpop.f32.mrf.mxu0 }
 0x3c6   :  { %v12199_v49 = vadd.f32 %v5601_v22, %v5359_v60  ;;  %v8987_v1 = vpop.f32.mrf.mxu1 }
 0x3c7   :  { %v5956_v53 = vadd.f32 %v8987_v1, %v5633_v2  ;;  %v8964_v50 = vpop.f32.mrf.mxu0 }
 0x3c8   :  { %v5635_v4 = vadd.f32 %v8964_v50, %v5374_v5  ;;  %v12201_v27 = vpop.f32.mrf.mxu1 }
 0x3c9   :  { %v5611_v33 = vpop.f32.mrf.mxu0 }
 0x3ca   :  { %v12203_v17 = vadd.f32 %v5611_v33, %v5369_v48  ;;  %v8990_v10 = vpop.f32.mrf.mxu1 }
 0x3cb   :  { %v5958_v45 = vadd.f32 %v8990_v10, %v5635_v4  ;;  %v8995_v15 = vpop.f32.mrf.mxu0 }
 0x3cc   :  { %v12205_v23 = vpop.f32.mrf.mxu1 }
 0x3cd   :  { %v6059_v7 = vpop.f32.mrf.mxu0 }
 0x3ce   :  { %v12207_v39 = vpop.f32.mrf.mxu1 }
 0x3cf   :  { %v12209_v6 = vpop.f32.mrf.mxu0 }
 0x3d0   :  { %v12211_v62 = vpop.f32.mrf.mxu1 }
 0x3d1   :  { %v12213_v60 = vpop.f32.mrf.mxu0 }
 0x3d2   :  { %v12215_v58 = vpop.f32.mrf.mxu1 }
 0x3d3   :  { %v12217_v41 = vpop.f32.mrf.mxu0 }
 0x3d4   :  { %v12219_v5 = vpop.f32.mrf.mxu1 }
 0x3d5   :  { %v12221_v52 = vpop.f32.mrf.mxu0 }
 0x3d6   :  { %v12223_v54 = vpop.f32.mrf.mxu1 }
 0x3d7   :  { %v12225_v48 = vpop.f32.mrf.mxu0 }
 0x3d8   :  { %v12227_v21 = vpop.f32.mrf.mxu1 }
 0x3d9   :  { %v12229_v37 = vpop.f32.mrf.mxu0 }
 0x3da   :  { %v12231_v18 = vpop.f32.mrf.mxu1 }
 0x3db   :  { %v9007_v25 = vpop.f32.mrf.mxu0 }
 0x3dc   :  { %v12233_v20 = vadd.f32 %v9007_v25, %v5952_v30  ;;  %v12235_v56 = vpop.f32.mrf.mxu1 }
 0x3dd   :  { %v6099_v43 = vpop.f32.mrf.mxu0 }
 0x3de   :  { %v12237_v61 = vadd.f32 %v6099_v43, %v5951_v3  ;;  %v12239_v29 = vpop.f32.mrf.mxu1 }
 0x3df   :  { %v9010_v34 = vpop.f32.mrf.mxu0 }
 0x3e0   :  { %v12241_v55 = vadd.f32 %v9010_v34, %v5954_v26  ;;  %v12243_v8 = vpop.f32.mrf.mxu1 }
 0x3e1   :  { %v6109_v40 = vpop.f32.mrf.mxu0 }
 0x3e2   :  { %v12245_v59 = vpop.f32.mrf.mxu1 }
 0x3e3   :  { %v9013_v14 = vpop.f32.mrf.mxu0 }
 0x3e4   :  { %v12247_v47 = vadd.f32 %v9013_v14, %v5956_v53  ;;  %v12249_v30 = vpop.f32.mrf.mxu1 }
 0x3e5   :  { %v12251_v44 = vpop.f32.mrf.mxu0 }
 0x3e6   :  { %v12253_v19 = vpop.f32.mrf.mxu1 }
 0x3e7   :  { %12765 = vst [vmem:[#allocation10_spill] sm:$0xff] %v12253_v19  ;;  %v9016_v3 = vpop.f32.mrf.mxu0 }
 0x3e8   :  { %v12255_v2 = vadd.f32 %v9016_v3, %v5958_v45  ;;  %v12257_v22 = vpop.f32.mrf.mxu1 }
 0x3e9   :  { %12767 = vst [vmem:[#allocation14_spill] sm:$0xff] %v12257_v22  ;;  %v12259_v26 = vpop.f32.mrf.mxu0 }
 0x3ea   :  { %12766 = vst [vmem:[#allocation8_spill] sm:$0xff] %v12255_v2  ;;  %12768 = vst [vmem:[#allocation28_spill] sm:$0xff] %v12259_v26  ;;  %v12261_v1 = vpop.f32.mrf.mxu1 }
 0x3eb   :  { %12769 = vst [vmem:[#allocation30_spill] sm:$0xff] %v12261_v1  ;;  %v9047_v50 = vpop.f32.mrf.mxu0 }
 0x3ec   :  { %v12263_v4 = vpop.f32.mrf.mxu1 }
 0x3ed   :  { %12770 = vst [vmem:[#allocation32_spill] sm:$0xff] %v12263_v4  ;;  %v6642_v53 = vpop.f32.mrf.mxu0 }
 0x3ee   :  { %v9073_v33 = vpop.f32.mrf.mxu1 }
 0x3ef   :  { %v9050_v10 = vpop.f32.mrf.mxu0 }
 0x3f0   :  { %v6837_v25 = vpop.f32.mrf.mxu1 }
 0x3f1   :  { %v6652_v43 = vpop.f32.mrf.mxu0 }
 0x3f2   :  { %v12265_v34 = vpop.f32.mrf.mxu1 }
 0x3f3   :  { %12771 = vst [vmem:[#allocation6_spill] sm:$0xff] %v12265_v34  ;;  %v12267_v14 = vpop.f32.mrf.mxu0  ;;  %v5944_v34 = vadd.f32 %v12167_v35, %v12163_v24  ;;  %v5948_v35 = vadd.f32 %v12183_v9, %v12177_v38 }
 0x3f4   :  { %12772 = vst [vmem:[#allocation13_spill] sm:$0xff] %v12267_v14  ;;  %v12269_v45 = vpop.f32.mrf.mxu1 }
 0x3f5   :  { %12773 = vst [vmem:[#allocation34_spill] sm:$0xff] %v12269_v45  ;;  %v12271_v3 = vpop.f32.mrf.mxu0  ;;  %v6143_v38 = vadd.f32 %v12217_v41, %v5948_v35 }
 0x3f6   :  { %12774 = vst [vmem:[#allocation12_spill] sm:$0xff] %v12271_v3  ;;  %v12273_v2 = vpop.f32.mrf.mxu1  ;;  %v6139_v3 = vadd.f32 %v8995_v15, %v5944_v34 }
 0x3f7   :  { %12775 = vst [vmem:[#allocation25_spill] sm:$0xff] %v12273_v2  ;;  %v12275_v26 = vpop.f32.mrf.mxu0  ;;  %v5943_v2 = vadd.f32 %v12171_v63, %v12165_v42  ;;  %v5947_v63 = vadd.f32 %v12187_v32, %v12181_v16  ;;  %v6402_v41 = vadd.f32 %v12223_v54, %v6143_v38  ;;  %v6405_v54 = vadd.f32 %v12243_v8, %v12237_v61  ;;  %v12785_v61 = vld [vmem:[#allocation14_spill] sm:$0xff] }
 0x3f8   :  { %12776 = vst [vmem:[#allocation9_spill] sm:$0xff] %v12275_v26  ;;  %v12279_v4 = vpop.f32.mrf.mxu1 }
 0x3f9   :  { %v12277_v1 = vpop.f32.mrf.mxu0  ;;  %12778 = vst [vmem:[#allocation29_spill] sm:$0xff] %v12279_v4  ;;  %v5946_v4 = vadd.f32 %v12175_v31, %v12169_v12  ;;  %v5950_v12 = vadd.f32 %v12191_v46, %v12185_v57  ;;  %v6142_v16 = vadd.f32 %v12221_v52, %v5947_v63  ;;  %v12789_v63 = vld [vmem:[#allocation8_spill] sm:$0xff] }
 0x3fa   :  { %12777 = vst [vmem:[#allocation16_spill] sm:$0xff] %v12277_v1  ;;  %v12287_v14 = vpop.f32.mrf.mxu1  ;;  %v6138_v1 = vadd.f32 %v6059_v7, %v5943_v2  ;;  %v5953_v7 = vadd.f32 %v12197_v13, %v12195_v0  ;;  %v5957_v13 = vadd.f32 %v12205_v23, %v12203_v17 }
 0x3fb   :  { %v12281_v22 = vpop.f32.mrf.mxu0  ;;  %v6141_v42 = vadd.f32 %v12209_v6, %v5946_v4  ;;  %v6145_v32 = vadd.f32 %v12225_v48, %v5950_v12  ;;  %v5955_v6 = vadd.f32 %v12201_v27, %v12199_v49  ;;  %v12790_v12 = vld [vmem:[#allocation30_spill] sm:$0xff] }
 0x3fc   :  { %12779 = vst [vmem:[#allocation15_spill] sm:$0xff] %v12281_v22  ;;  %v12299_v22 = vpop.f32.mrf.mxu1  ;;  %v6397_v15 = vadd.f32 %v12211_v62, %v6138_v1 }
 0x3fd   :  { %v12283_v19 = vpop.f32.mrf.mxu0 }
 0x3fe   :  { %12780 = vst [vmem:[#allocation36_spill] sm:$0xff] %v12283_v19  ;;  %v5945_v19 = vadd.f32 %v12179_v51, %v12173_v11  ;;  %v5949_v51 = vadd.f32 %v12193_v36, %v12189_v28  ;;  %v12322_v57 = vpop.f32.mrf.mxu1  ;;  %v6721_v36 = vadd.f32 %v6642_v53, %v6397_v15  ;;  %v12784_v53 = vld [vmem:[#allocation13_spill] sm:$0xff] }
 0x3ff   :  { %v12289_v45 = vpop.f32.mrf.mxu0 }
 0x400   :  { %12781 = vst [vmem:[#allocation33_spill] sm:$0xff] %v12289_v45  ;;  %v6398_v45 = vadd.f32 %v12207_v39, %v6139_v3  ;;  %v6140_v31 = vadd.f32 %v12213_v60, %v5945_v19  ;;  %v6400_v39 = vadd.f32 %v12215_v58, %v6141_v42  ;;  %v6144_v28 = vadd.f32 %v12229_v37, %v5949_v51  ;;  %v12339_v49 = vpop.f32.mrf.mxu1  ;;  %v12791_v51 = vld [vmem:[#allocation9_spill] sm:$0xff] }
 0x401   :  { %v12293_v26 = vpop.f32.mrf.mxu0  ;;  %v6148_v60 = vadd.f32 %v6109_v40, %v5953_v7  ;;  %v6401_v58 = vadd.f32 %v12227_v21, %v6142_v16  ;;  %v6404_v37 = vadd.f32 %v12231_v18, %v6145_v32  ;;  %v6150_v19 = vadd.f32 %v12251_v44, %v5955_v6  ;;  %v12782_v44 = vld [vmem:[#allocation10_spill] sm:$0xff]  ;;  %v12792_v38 = vld [vmem:[#allocation16_spill] sm:$0xff]  ;;  %v12793_v32 = vld [vmem:[#allocation25_spill] sm:$0xff] }
 0x402   :  { %v6722_v9 = vadd.f32 %v9047_v50, %v6398_v45  ;;  %v6399_v62 = vadd.f32 %v12219_v5, %v6140_v31  ;;  %v6724_v48 = vadd.f32 %v9050_v10, %v6400_v39  ;;  %v6403_v5 = vadd.f32 %v12235_v56, %v6144_v28  ;;  %v12783_v56 = vld [vmem:[#allocation6_spill] sm:$0xff] }
 0x403   :  { %v12301_v24 = vpop.f32.mrf.mxu0  ;;  %v6406_v40 = vadd.f32 %v12239_v29, %v12233_v20  ;;  %v6916_v17 = vadd.f32 %v6837_v25, %v6721_v36  ;;  %v6408_v21 = vadd.f32 %v12245_v59, %v12241_v55  ;;  %v6407_v18 = vadd.f32 %v12249_v30, %v6148_v60  ;;  %v12786_v55 = vld [vmem:[#allocation28_spill] sm:$0xff]  ;;  %v12787_v30 = vld [vmem:[#allocation34_spill] sm:$0xff] }
 0x404   :  { %v6917_v52 = vadd.f32 %v9073_v33, %v6722_v9  ;;  %v6723_v2 = vadd.f32 %v6652_v43, %v6399_v62  ;;  %v12353_v1 = vadd.f32 %v12782_v44, %v12247_v47  ;;  %v6919_v4 = vadd.f32 %v12783_v56, %v6724_v48  ;;  %v12788_v25 = vld [vmem:[#allocation12_spill] sm:$0xff]  ;;  %v9088_v43 = vpop.f32.mrf.mxu1 }
 0x405   :  { %v12312_v11 = vpop.f32.mrf.mxu0  ;;  %v6726_v20 = vadd.f32 %v12784_v53, %v6402_v41  ;;  %v12362_v8 = vadd.f32 %v12785_v61, %v6150_v19  ;;  %v6152_v59 = vadd.f32 %v12786_v55, %v5957_v13  ;;  %v6725_v47 = vadd.f32 %v12788_v25, %v6401_v58  ;;  %v12794_v62 = vld [vmem:[#allocation32_spill] sm:$0xff]  ;;  %v12795_v13 = vld [vmem:[#allocation15_spill] sm:$0xff]  ;;  %v12796_v19 = vld [vmem:[#allocation29_spill] sm:$0xff] }
 0x406   :  { %v6918_v10 = vadd.f32 %v12787_v30, %v6723_v2  ;;  %v12377_v31 = vadd.f32 %v12790_v12, %v12789_v63  ;;  %v6728_v15 = vadd.f32 %v12791_v51, %v6404_v37  ;;  %v6727_v9 = vadd.f32 %v12792_v38, %v6403_v5 }
 0x407   :  { %v12324_v46 = vpop.f32.mrf.mxu0  ;;  %v6921_v39 = vadd.f32 %v12793_v32, %v6726_v20  ;;  %v12387_v60 = vadd.f32 %v12794_v62, %v6152_v59  ;;  %v6730_v41 = vadd.f32 %v12795_v13, %v6406_v40  ;;  %v6920_v2 = vadd.f32 %v12796_v19, %v6725_v47  ;;  %v12798_v20 = vld [vmem:[#allocation33_spill] sm:$0xff] }
 0x408   :  { %v6923_v44 = vadd.f32 %v12287_v14, %v6728_v15  ;;  %v6922_v40 = vadd.f32 %v12299_v22, %v6727_v9 }
 0x409   :  { %v12331_v0 = vpop.f32.mrf.mxu0  ;;  %v6925_v30 = vadd.f32 %v12322_v57, %v6730_v41  ;;  %v6731_v57 = vadd.f32 %v12293_v26, %v6407_v18 }
 0x40b   :  { %v9099_v27 = vpop.f32.mrf.mxu0 }
 0x40c   :  { %v12344_v23 = vadd.f32 %v9099_v27, %v6917_v52  ;;  %v6887_v52 = vpop.f32.mrf.mxu1 }
 0x40d   :  { %v7096_v50 = vpop.f32.mrf.mxu0  ;;  %v6926_v62 = vadd.f32 %v6887_v52, %v6731_v57 }
 0x40e   :  { %v7234_v29 = vmul.f32 %v12344_v23, %v12344_v23  ;;  %v12359_v33 = vadd.f32 %v7096_v50, %v6916_v17  ;;  %v7192_v45 = vsel %vm4652_vm4, %v12344_v23, 0.0  ;;  %v12797_v50 = vld [vmem:[#allocation36_spill] sm:$0xff] }
 0x40f   :  { %v9102_v34 = vpop.f32.mrf.mxu0  ;;  %v6729_v56 = vadd.f32 %v12797_v50, %v6405_v54 }
 0x410   :  { %v7191_v3 = vsel %vm4652_vm4, %v12359_v33, 0.0  ;;  %v7233_v35 = vmul.f32 %v12359_v33, %v12359_v33  ;;  %v12373_v42 = vadd.f32 %v9102_v34, %v6919_v4  ;;  %v7250_v28 = vsel %vm4652_vm4, %v7234_v29, 0.0 }
 0x411   :  { %v7193_v7 = vadd.f32 %v7192_v45, %v7191_v3  ;;  %v7106_v16 = vpop.f32.mrf.mxu0  ;;  %v6732_v29 = vadd.f32 %v12798_v20, %v6408_v21  ;;  %v6924_v3 = vadd.f32 %v12339_v49, %v6729_v56 }
 0x412   :  { %v7249_v36 = vsel %vm4652_vm4, %v7233_v35, 0.0  ;;  %v12384_v6 = vadd.f32 %v7106_v16, %v6918_v10  ;;  %v7236_v58 = vmul.f32 %v12373_v42, %v12373_v42  ;;  %v7196_v61 = vsel %vm4652_vm4, %v12373_v42, 0.0  ;;  %v9091_v10 = vpop.f32.mrf.mxu1 }
 0x413   :  { %v7251_v48 = vadd.f32 %v7250_v28, %v7249_v36  ;;  %v9105_v37 = vpop.f32.mrf.mxu0  ;;  %v6927_v51 = vadd.f32 %v9088_v43, %v6732_v29 }
 0x414   :  { %v7194_v27 = vsel %vm4652_vm4, %v12384_v6, 0.0  ;;  %v7235_v5 = vmul.f32 %v12384_v6, %v12384_v6  ;;  %v12397_v17 = vadd.f32 %v9105_v37, %v6921_v39  ;;  %v7254_v14 = vsel %vm4652_vm4, %v7236_v58, 0.0  ;;  %v6897_v16 = vpop.f32.mrf.mxu1 }
 0x415   :  { %v7195_v4 = vadd.f32 %v7194_v27, %v7193_v7  ;;  %v7116_v53 = vpop.f32.mrf.mxu0  ;;  %v6734_v7 = vadd.f32 %v12301_v24, %v12353_v1  ;;  %v6733_v24 = vadd.f32 %v12312_v11, %v12362_v8 }
 0x416   :  { %v7252_v55 = vsel %vm4652_vm4, %v7235_v5, 0.0  ;;  %v12406_v59 = vadd.f32 %v7116_v53, %v6920_v2  ;;  %v7238_v54 = vmul.f32 %v12397_v17, %v12397_v17  ;;  %v7200_v15 = vsel %vm4652_vm4, %v12397_v17, 0.0  ;;  %v9094_v27 = vpop.f32.mrf.mxu1 }
 0x417   :  { %v7253_v25 = vadd.f32 %v7252_v55, %v7251_v48  ;;  %v7197_v22 = vadd.f32 %v7196_v61, %v7195_v4  ;;  %v9108_v47 = vpop.f32.mrf.mxu0  ;;  %v6929_v2 = vadd.f32 %v9091_v10, %v6734_v7  ;;  %v6736_v4 = vadd.f32 %v12324_v46, %v12377_v31 }
 0x418   :  { %v7198_v21 = vsel %vm4652_vm4, %v12406_v59, 0.0  ;;  %v7237_v34 = vmul.f32 %v12406_v59, %v12406_v59  ;;  %v12416_v45 = vadd.f32 %v9108_v47, %v6923_v44  ;;  %v7258_v39 = vsel %vm4652_vm4, %v7238_v54, 0.0 }
 0x419   :  { %v7199_v35 = vadd.f32 %v7198_v21, %v7197_v22  ;;  %v7255_v63 = vadd.f32 %v7254_v14, %v7253_v25  ;;  %v7126_v12 = vpop.f32.mrf.mxu0  ;;  %v6735_v55 = vadd.f32 %v12331_v0, %v12387_v60  ;;  %v6928_v25 = vadd.f32 %v6897_v16, %v6733_v24  ;;  %v6907_v22 = vpop.f32.mrf.mxu1 }
 0x41a   :  { %v7256_v38 = vsel %vm4652_vm4, %v7237_v34, 0.0  ;;  %v12423_v9 = vadd.f32 %v7126_v12, %v6922_v40  ;;  %v7240_v49 = vmul.f32 %v12416_v45, %v12416_v45  ;;  %v7204_v48 = vsel %vm4652_vm4, %v12416_v45, 0.0 }
 0x41b   :  { %v7257_v32 = vadd.f32 %v7256_v38, %v7255_v63  ;;  %v7201_v26 = vadd.f32 %v7200_v15, %v7199_v35  ;;  %v9111_v18 = vpop.f32.mrf.mxu0 }
 0x41c   :  { %v7202_v43 = vsel %vm4652_vm4, %v12423_v9, 0.0  ;;  %v7239_v28 = vmul.f32 %v12423_v9, %v12423_v9  ;;  %v12434_v36 = vadd.f32 %v9111_v18, %v6925_v30  ;;  %v7262_v52 = vsel %vm4652_vm4, %v7240_v49, 0.0 }
 0x41d   :  { %v7203_v1 = vadd.f32 %v7202_v43, %v7201_v26  ;;  %v7259_v13 = vadd.f32 %v7258_v39, %v7257_v32  ;;  %v7136_v41 = vpop.f32.mrf.mxu0 }
 0x41e   :  { %v7260_v58 = vsel %vm4652_vm4, %v7239_v28, 0.0  ;;  %v7242_v37 = vmul.f32 %v12434_v36, %v12434_v36  ;;  %v12443_v19 = vadd.f32 %v7136_v41, %v6924_v3  ;;  %v7213_v8 = vsel %vm4652_vm4, %v12434_v36, 0.0 }
 0x41f   :  { %v7205_v5 = vadd.f32 %v7204_v48, %v7203_v1  ;;  %v7261_v44 = vadd.f32 %v7260_v58, %v7259_v13  ;;  %v9114_v11 = vpop.f32.mrf.mxu0  ;;  %v6931_v3 = vadd.f32 %v9094_v27, %v6736_v4 }
 0x420   :  { %v7212_v40 = vsel %vm4652_vm4, %v12443_v19, 0.0  ;;  %v7241_v50 = vmul.f32 %v12443_v19, %v12443_v19  ;;  %v12452_v56 = vadd.f32 %v9114_v11, %v6927_v51  ;;  %v7271_v30 = vsel %vm4652_vm4, %v7242_v37, 0.0 }
 0x421   :  { %v7206_v53 = vrot.slane %v7205_v5, 4  ;;  %v7263_v20 = vadd.f32 %v7262_v52, %v7261_v44  ;;  %v7214_v29 = vadd.f32 %v7213_v8, %v7212_v40  ;;  %v7146_v61 = vpop.f32.mrf.mxu0  ;;  %v6930_v51 = vadd.f32 %v6907_v22, %v6735_v55 }
 0x422   :  { %v7270_v10 = vsel %vm4652_vm4, %v7241_v50, 0.0  ;;  %v12460_v14 = vadd.f32 %v7146_v61, %v6926_v62  ;;  %v7244_v46 = vmul.f32 %v12452_v56, %v12452_v56  ;;  %v7217_v15 = vsel %vm4652_vm4, %v12452_v56, 0.0 }
 0x423   :  { %v7207_v47 = vadd.f32 %v7206_v53, %v7205_v5  ;;  %v7264_v54 = vrot.slane %v7263_v20, 4  ;;  %v7272_v21 = vadd.f32 %v7271_v30, %v7270_v10  ;;  %v9117_v34 = vpop.f32.mrf.mxu0 }
 0x424   :  { %v7215_v31 = vsel %vm4652_vm4, %v12460_v14, 0.0  ;;  %v7243_v0 = vmul.f32 %v12460_v14, %v12460_v14  ;;  %v12468_v60 = vadd.f32 %v9117_v34, %v6929_v2  ;;  %v7275_v39 = vsel %vm4652_vm4, %v7244_v46, 0.0 }
 0x425   :  { %v7208_v57 = vrot.slane %v7207_v47, 2  ;;  %v7265_v35 = vadd.f32 %v7264_v54, %v7263_v20  ;;  %v7216_v63 = vadd.f32 %v7215_v31, %v7214_v29  ;;  %v7156_v12 = vpop.f32.mrf.mxu0 }
 0x426   :  { %v7273_v38 = vsel %vm4652_vm4, %v7243_v0, 0.0  ;;  %v12473_v7 = vadd.f32 %v7156_v12, %v6928_v25  ;;  %v7246_v43 = vmul.f32 %v12468_v60, %v12468_v60  ;;  %v7221_v58 = vsel %vm4652_vm4, %v12468_v60, 0.0 }
 0x427   :  { %v7209_v16 = vadd.f32 %v7208_v57, %v7207_v47  ;;  %v7266_v32 = vrot.slane %v7265_v35, 2  ;;  %v7274_v49 = vadd.f32 %v7273_v38, %v7272_v21  ;;  %v7218_v26 = vadd.f32 %v7217_v15, %v7216_v63  ;;  %v9120_v18 = vpop.f32.mrf.mxu0 }
 0x428   :  { %v7219_v28 = vsel %vm4652_vm4, %v12473_v7, 0.0  ;;  %v7245_v62 = vmul.f32 %v12473_v7, %v12473_v7  ;;  %v12485_v2 = vadd.f32 %v9120_v18, %v6931_v3  ;;  %v7279_v8 = vsel %vm4652_vm4, %v7246_v43, 0.0 }
 0x429   :  { %v7210_v24 = vrot.slane %v7209_v16, 1  ;;  %v7267_v1 = vadd.f32 %v7266_v32, %v7265_v35  ;;  %v7220_v13 = vadd.f32 %v7219_v28, %v7218_v26  ;;  %v7276_v41 = vadd.f32 %v7275_v39, %v7274_v49  ;;  %v7166_v48 = vpop.f32.mrf.mxu0 }
 0x42a   :  { %v7277_v37 = vsel %vm4652_vm4, %v7245_v62, 0.0  ;;  %v12487_v27 = vadd.f32 %v7166_v48, %v6930_v51  ;;  %v7225_v61 = vsel %vm4652_vm4, %v12485_v2, 0.0  ;;  %v7248_v55 = vmul.f32 %v12485_v2, %v12485_v2 }
 0x42b   :  { %v7211_v52 = vadd.f32 %v7210_v24, %v7209_v16  ;;  %v7268_v5 = vrot.slane %v7267_v1, 1  ;;  %v7278_v44 = vadd.f32 %v7277_v37, %v7276_v41  ;;  %v7222_v11 = vadd.f32 %v7221_v58, %v7220_v13 }
 0x42c   :  { %v7223_v40 = vsel %vm4652_vm4, %v12487_v27, 0.0  ;;  %v7247_v50 = vmul.f32 %v12487_v27, %v12487_v27 }
 0x42d   :  { %v7269_v4 = vadd.f32 %v7268_v5, %v7267_v1  ;;  %v7291_v53 = vmul.f32 0.015625, %v7211_v52  ;;  %v7224_v20 = vadd.f32 %v7223_v40, %v7222_v11  ;;  %v7280_v29 = vadd.f32 %v7279_v8, %v7278_v44 }
 0x42e   :  { %v7281_v30 = vsel %vm4652_vm4, %v7247_v50, 0.0 }
 0x42f   :  { %v7293_v10 = vmul.f32 0.015625, %v7269_v4  ;;  %v7295_v25 = vmul.f32 %v7291_v53, %v7291_v53  ;;  %v7301_v22 = vsub.f32 %v12359_v33, %v7291_v53  ;;  %v7302_v47 = vsub.f32 %v12344_v23, %v7291_v53 }
 0x430   :  { %v7303_v54 = vsub.f32 %v12384_v6, %v7291_v53  ;;  %v7304_v21 = vsub.f32 %v12373_v42, %v7291_v53  ;;  %v7305_v34 = vsub.f32 %v12406_v59, %v7291_v53  ;;  %v7306_v46 = vsub.f32 %v12397_v17, %v7291_v53 }
 0x431   :  { %v7297_v31 = vsub.f32 %v7293_v10, %v7295_v25  ;;  %v7307_v0 = vsub.f32 %v12423_v9, %v7291_v53  ;;  %v7308_v3 = vsub.f32 %v12416_v45, %v7291_v53  ;;  %v7226_v57 = vadd.f32 %v7225_v61, %v7224_v20 }
 0x432   :  { %v7282_v35 = vadd.f32 %v7281_v30, %v7280_v29  ;;  %v7283_v33 = vsel %vm4652_vm4, %v7248_v55, 0.0 }
 0x433   :  { %v7299_v63 = vmax.f32 %v7297_v31, 0.0  ;;  %v7227_v12 = vrot.slane %v7226_v57, 4 }
 0x434   :  { %v7284_v23 = vadd.f32 %v7283_v33, %v7282_v35 }
 0x435   :  { %v7317_v51 = vadd.f32 1e-05, %v7299_v63  ;;  %v7228_v6 = vadd.f32 %v7227_v12, %v7226_v57 }
 0x436   :  { %v7285_v15 = vrot.slane %v7284_v23, 4 }
 0x437   :  { %9128 = vrsqrt.f32 %v7317_v51  ;;  %v7229_v42 = vrot.slane %v7228_v6, 2 }
 0x438   :  { %v7286_v59 = vadd.f32 %v7285_v15, %v7284_v23 }
 0x439   :  { %v7230_v38 = vadd.f32 %v7229_v42, %v7228_v6 }
 0x43a   :  { %v7287_v17 = vrot.slane %v7286_v59, 2 }
 0x43b   :  { %v7231_v16 = vrot.slane %v7230_v38, 1 }
 0x43c   :  { %v7288_v32 = vadd.f32 %v7287_v17, %v7286_v59 }
 0x43d   :  { %v7232_v9 = vadd.f32 %v7231_v16, %v7230_v38 }
 0x43e   :  { %v7289_v49 = vrot.slane %v7288_v32, 1 }
 0x43f   :  { %v7292_v45 = vmul.f32 0.015625, %v7232_v9 }
 0x440   :  { %v7290_v26 = vadd.f32 %v7289_v49, %v7288_v32 }
 0x441   :  { %v7296_v18 = vmul.f32 %v7292_v45, %v7292_v45  ;;  %v7309_v39 = vsub.f32 %v12443_v19, %v7292_v45  ;;  %v7310_v43 = vsub.f32 %v12434_v36, %v7292_v45  ;;  %v7311_v28 = vsub.f32 %v12460_v14, %v7292_v45 }
 0x442   :  { %v7294_v62 = vmul.f32 0.015625, %v7290_v26  ;;  %v7312_v24 = vsub.f32 %v12452_v56, %v7292_v45  ;;  %v7313_v1 = vsub.f32 %v12473_v7, %v7292_v45  ;;  %v7314_v13 = vsub.f32 %v12468_v60, %v7292_v45 }
 0x443   :  { %v7315_v41 = vsub.f32 %v12487_v27, %v7292_v45  ;;  %v7316_v48 = vsub.f32 %v12485_v2, %v7292_v45 }
 0x444   :  { %v9129_v58 = vpop.eup %9128  ;;  %v7298_v37 = vsub.f32 %v7294_v62, %v7296_v18 }
 0x445   :  { %v7321_v52 = vmul.f32 %v9129_v58, %v7301_v22  ;;  %v7322_v5 = vmul.f32 %v9129_v58, %v7302_v47  ;;  %v7323_v19 = vmul.f32 %v9129_v58, %v7303_v54  ;;  %v7324_v44 = vmul.f32 %v9129_v58, %v7304_v21 }
 0x446   :  { %v7325_v36 = vmul.f32 %v9129_v58, %v7305_v34  ;;  %v7326_v11 = vmul.f32 %v9129_v58, %v7306_v46  ;;  %v7327_v14 = vmul.f32 %v9129_v58, %v7307_v0  ;;  %v7328_v8 = vmul.f32 %v9129_v58, %v7308_v3 }
 0x447   :  { %v7337_v40 = vmax.f32 %v7321_v52, 0.0  ;;  %v7338_v56 = vmax.f32 %v7322_v5, 0.0  ;;  %v7339_v50 = vmax.f32 %v7323_v19, 0.0  ;;  %v7340_v7 = vmax.f32 %v7324_v44, 0.0 }
 0x448   :  { %v7341_v4 = vmax.f32 %v7325_v36, 0.0  ;;  %v7342_v60 = vmax.f32 %v7326_v11, 0.0  ;;  %v7343_v53 = vmax.f32 %v7327_v14, 0.0  ;;  %v7344_v27 = vmax.f32 %v7328_v8, 0.0 }
 0x449   :  { %7353 = vst.msk [vmem:[%s12585_s5] sm:$0xff] %vm4652_vm4, %v7337_v40  ;;  %7354 = vst.msk [vmem:[%s12585_s5 + $0x8] sm:$0xff] %vm4652_vm4, %v7338_v56  ;;  %v7300_v2 = vmax.f32 %v7298_v37, 0.0 }
 0x44a   :  { %7355 = vst.msk [vmem:[%s12585_s5 + $0x10] sm:$0xff] %vm4652_vm4, %v7339_v50  ;;  %7356 = vst.msk [vmem:[%s12585_s5 + $0x18] sm:$0xff] %vm4652_vm4, %v7340_v7 }
 0x44b   :  { %7357 = vst.msk [vmem:[%s12585_s5 + $0x20] sm:$0xff] %vm4652_vm4, %v7341_v4  ;;  %7358 = vst.msk [vmem:[%s12585_s5 + $0x28] sm:$0xff] %vm4652_vm4, %v7342_v60  ;;  %v7318_v20 = vadd.f32 1e-05, %v7300_v2 }
 0x44c   :  { %7359 = vst.msk [vmem:[%s12585_s5 + $0x30] sm:$0xff] %vm4652_vm4, %v7343_v53  ;;  %7360 = vst.msk [vmem:[%s12585_s5 + $0x38] sm:$0xff] %vm4652_vm4, %v7344_v27 }
 0x44d   :  { %9130 = vrsqrt.f32 %v7318_v20 }
 0x45a   :  { %v9131_v29 = vpop.eup %9130 }
 0x45b   :  { %v7329_v61 = vmul.f32 %v9131_v29, %v7309_v39  ;;  %v7330_v55 = vmul.f32 %v9131_v29, %v7310_v43  ;;  %v7331_v30 = vmul.f32 %v9131_v29, %v7311_v28  ;;  %v7332_v10 = vmul.f32 %v9131_v29, %v7312_v24 }
 0x45c   :  { %v7333_v25 = vmul.f32 %v9131_v29, %v7313_v1  ;;  %v7334_v22 = vmul.f32 %v9131_v29, %v7314_v13  ;;  %v7335_v47 = vmul.f32 %v9131_v29, %v7315_v41  ;;  %v7336_v54 = vmul.f32 %v9131_v29, %v7316_v48 }
 0x45d   :  { %v7345_v21 = vmax.f32 %v7329_v61, 0.0  ;;  %v7346_v34 = vmax.f32 %v7330_v55, 0.0  ;;  %v7347_v46 = vmax.f32 %v7331_v30, 0.0  ;;  %v7348_v31 = vmax.f32 %v7332_v10, 0.0 }
 0x45e   :  { %v7349_v0 = vmax.f32 %v7333_v25, 0.0  ;;  %v7350_v3 = vmax.f32 %v7334_v22, 0.0  ;;  %v7351_v57 = vmax.f32 %v7335_v47, 0.0  ;;  %v7352_v35 = vmax.f32 %v7336_v54, 0.0 }
 0x45f   :  { %7361 = vst.msk [vmem:[%s12585_s5 + $0x40] sm:$0xff] %vm4652_vm4, %v7345_v21  ;;  %7362 = vst.msk [vmem:[%s12585_s5 + $0x48] sm:$0xff] %vm4652_vm4, %v7346_v34 }
 0x460   :  { %7363 = vst.msk [vmem:[%s12585_s5 + $0x50] sm:$0xff] %vm4652_vm4, %v7347_v46  ;;  %7364 = vst.msk [vmem:[%s12585_s5 + $0x58] sm:$0xff] %vm4652_vm4, %v7348_v31 }
 0x461   :  { %7365 = vst.msk [vmem:[%s12585_s5 + $0x60] sm:$0xff] %vm4652_vm4, %v7349_v0  ;;  %7366 = vst.msk [vmem:[%s12585_s5 + $0x68] sm:$0xff] %vm4652_vm4, %v7350_v3 }
 0x462   :  { %7367 = vst.msk [vmem:[%s12585_s5 + $0x70] sm:$0xff] %vm4652_vm4, %v7351_v57  ;;  %7368 = vst.msk [vmem:[%s12585_s5 + $0x78] sm:$0xff] %vm4652_vm4, %v7352_v35 }

</bundles_post_ra>
